<compile_context>
chip_gen: v5e
topology: v5e:2x2
jax: 0.10.0
libtpu: 0.0.40
codegen_flags: <defaults>
</compile_context>

<pallas_src>
import functools
import math

import jax
import jax.numpy as jnp
from jax.experimental import pallas as pl
from jax.experimental.pallas import tpu as pltpu

BN_EPS = 1e-5


# ---------------------------------------------------------------------------
# Pallas kernels (bf16 MXU operands, f32 accumulate + f32 epilogue)
# ---------------------------------------------------------------------------
def _mm_bias_kernel(a_ref, w_ref, b_ref, o_ref, *, relu):
    y = jnp.dot(a_ref[...], w_ref[...], preferred_element_type=jnp.float32)
    y = y + b_ref[...]
    if relu:
        y = jnp.maximum(y, 0.0)
    o_ref[...] = y.astype(o_ref.dtype)


def _mm_bias_add_kernel(a_ref, w_ref, b_ref, r_ref, o_ref, *, relu):
    # conv (+BN shift) + identity-residual add + ReLU, all in one epilogue.
    y = jnp.dot(a_ref[...], w_ref[...], preferred_element_type=jnp.float32)
    y = y + b_ref[...] + r_ref[...].astype(jnp.float32)
    if relu:
        y = jnp.maximum(y, 0.0)
    o_ref[...] = y.astype(o_ref.dtype)


def _mm_dual_kernel(a_ref, w_ref, a2_ref, w2_ref, b_ref, o_ref, *, relu):
    # out = act(A @ W + A2 @ W2 + shift).  Used for:
    #   * residual conv2 fused with its 1x1 skip conv (downsampling / channel
    #     changing residuals), and
    #   * the inter-stack merge relu(inters_(inter) + cnvs_(cnv)).
    y = jnp.dot(a_ref[...], w_ref[...], preferred_element_type=jnp.float32)
    y = y + jnp.dot(a2_ref[...], w2_ref[...], preferred_element_type=jnp.float32)
    y = y + b_ref[...]
    if relu:
        y = jnp.maximum(y, 0.0)
    o_ref[...] = y.astype(o_ref.dtype)


def _mm_heads_kernel(a_ref, w1_ref, b1_ref, w2_ref, b2_ref, o_ref):
    # Batched heads: y1 = relu(A @ W1_all + b1);  out = y1 @ W2_blockdiag + b2.
    y = jnp.dot(a_ref[...], w1_ref[...], preferred_element_type=jnp.float32)
    y = jnp.maximum(y + b1_ref[...], 0.0)
    z = jnp.dot(y.astype(jnp.bfloat16), w2_ref[...],
                preferred_element_type=jnp.float32)
    o_ref[...] = (z + b2_ref[...]).astype(o_ref.dtype)


def _merge_up_kernel(up_ref, low_ref, o_ref):
    # Lane-dense hourglass merge: up is (TR, 2, W*C), low is (TR, W*C) already
    # width-doubled; broadcasting low over the middle (non-minor) axis performs
    # the nearest-neighbour height upsample; the W*C last dim keeps stores
    # unmasked (full 128-lane vst).
    u = up_ref[...].astype(jnp.float32)
    l = low_ref[...].astype(jnp.float32)
    o_ref[...] = (u + l[:, None, :]).astype(o_ref.dtype)


# ---------------------------------------------------------------------------
# Kernel wrappers
# ---------------------------------------------------------------------------
def _row_tile(M):
    # >= 2 grid steps whenever M >= 128 so dimension_semantics=("parallel",)
    # can shard the row axis across both v7x TensorCores.  Ragged last blocks
    # are masked by Pallas (no pad/slice round trip).
    if M < 128:
        return M
    tm = ((-(-M // 2) + 15) // 16) * 16
    return min(tm, 256)


def matmul_bias(a, w, shift, relu, add=None, out_dtype=jnp.bfloat16):
    """out = act(a @ w + shift [+ add]); bf16 operands, f32 accumulate/epilogue."""
    M, K = a.shape
    C = w.shape[1]
    TM = _row_tile(M)
    in_specs = [
        pl.BlockSpec((TM, K), lambda i: (i, 0)),
        pl.BlockSpec((K, C), lambda i: (0, 0)),
        pl.BlockSpec((1, C), lambda i: (0, 0)),
    ]
    args = [a.astype(jnp.bfloat16), w.astype(jnp.bfloat16), shift.reshape(1, C)]
    if add is None:
        kernel = functools.partial(_mm_bias_kernel, relu=relu)
    else:
        kernel = functools.partial(_mm_bias_add_kernel, relu=relu)
        in_specs.append(pl.BlockSpec((TM, C), lambda i: (i, 0)))
        args.append(add.astype(jnp.bfloat16))
    return pl.pallas_call(
        kernel,
        out_shape=jax.ShapeDtypeStruct((M, C), out_dtype),
        grid=(pl.cdiv(M, TM),),
        in_specs=in_specs,
        out_specs=pl.BlockSpec((TM, C), lambda i: (i, 0)),
        compiler_params=pltpu.CompilerParams(
            dimension_semantics=("parallel",)),
    )(*args)


def matmul_dual(a, w, a2, w2, shift, relu, out_dtype=jnp.bfloat16):
    """out = act(a @ w + a2 @ w2 + shift); two dots, one launch, one writeback."""
    M, K = a.shape
    K2 = a2.shape[1]
    C = w.shape[1]
    TM = _row_tile(M)
    kernel = functools.partial(_mm_dual_kernel, relu=relu)
    return pl.pallas_call(
        kernel,
        out_shape=jax.ShapeDtypeStruct((M, C), out_dtype),
        grid=(pl.cdiv(M, TM),),
        in_specs=[
            pl.BlockSpec((TM, K), lambda i: (i, 0)),
            pl.BlockSpec((K, C), lambda i: (0, 0)),
            pl.BlockSpec((TM, K2), lambda i: (i, 0)),
            pl.BlockSpec((K2, C), lambda i: (0, 0)),
            pl.BlockSpec((1, C), lambda i: (0, 0)),
        ],
        out_specs=pl.BlockSpec((TM, C), lambda i: (i, 0)),
        compiler_params=pltpu.CompilerParams(
            dimension_semantics=("parallel",)),
    )(a.astype(jnp.bfloat16), w.astype(jnp.bfloat16),
      a2.astype(jnp.bfloat16), w2.astype(jnp.bfloat16),
      shift.reshape(1, C))


def matmul_heads(a, w1, b1, w2, b2):
    """Fused, batched head computation: relu(a@w1+b1) @ w2 + b2 (f32 output)."""
    M, K = a.shape
    H1 = w1.shape[1]
    C = w2.shape[1]
    TM = _row_tile(M)
    return pl.pallas_call(
        _mm_heads_kernel,
        out_shape=jax.ShapeDtypeStruct((M, C), jnp.float32),
        grid=(pl.cdiv(M, TM),),
        in_specs=[
            pl.BlockSpec((TM, K), lambda i: (i, 0)),
            pl.BlockSpec((K, H1), lambda i: (0, 0)),
            pl.BlockSpec((1, H1), lambda i: (0, 0)),
            pl.BlockSpec((H1, C), lambda i: (0, 0)),
            pl.BlockSpec((1, C), lambda i: (0, 0)),
        ],
        out_specs=pl.BlockSpec((TM, C), lambda i: (i, 0)),
        compiler_params=pltpu.CompilerParams(
            dimension_semantics=("parallel",)),
    )(a.astype(jnp.bfloat16), w1.astype(jnp.bfloat16), b1.reshape(1, H1),
      w2.astype(jnp.bfloat16), b2.reshape(1, C))


def upsample_add(up1, low3):
    """kp merge: up1 + nearest-2x-upsample(low3); up1:(N,2h,2w,C), low3:(N,h,w,C)."""
    N, H2, W2, C = up1.shape
    h = H2 // 2
    L = W2 * C
    rows = N * h
    # Width duplication on the small bf16 tensor only; height duplication + add
    # fused inside the kernel, so the full 4x upsampled tensor never hits HBM.
    low_w = jnp.repeat(low3, 2, axis=2).reshape(rows, L)
    up_r = up1.reshape(rows, 2, L)
    itemsize = jnp.dtype(up1.dtype).itemsize
    bytes_per_row = (2 * L + L + 2 * L) * itemsize        # up + low + out rows
    TR = rows
    if rows >= 16:
        # >= 2 blocks for v7x TC sharding; per-block budget ~2 MiB keeps the
        # double-buffered working set inside v5e/v7x scoped-VMEM defaults.
        TR = max(8, min(rows // 2, (2 << 20) // max(bytes_per_row, 1)))
        TR = max(8, (TR // 8) * 8)
        TR = min(TR, rows)
    out = pl.pallas_call(
        _merge_up_kernel,
        out_shape=jax.ShapeDtypeStruct((rows, 2, L), up1.dtype),
        grid=(pl.cdiv(rows, TR),),
        in_specs=[
            pl.BlockSpec((TR, 2, L), lambda i: (i, 0, 0)),
            pl.BlockSpec((TR, L), lambda i: (i, 0)),
        ],
        out_specs=pl.BlockSpec((TR, 2, L), lambda i: (i, 0, 0)),
        compiler_params=pltpu.CompilerParams(
            dimension_semantics=("parallel",)),
    )(up_r, low_w)
    return out.reshape(N, H2, W2, C)


# ---------------------------------------------------------------------------
# Convolution glue: im2col (plain-JAX, bf16) feeding the Pallas matmuls.
# ---------------------------------------------------------------------------
def im2col(x, k, stride):
    """x: (N,H,W,Cin) -> (M, k*k*Cin) patch matrix, 'same'-style pad (k-1)//2."""
    N, H, W, Cin = x.shape
    if k == 1:
        xs = x[:, ::stride, ::stride, :]
        n, ho, wo, _ = xs.shape
        return xs.reshape(n * ho * wo, Cin), (n, ho, wo)
    ph = (k - 1) // 2
    Hout = (H + 2 * ph - k) // stride + 1
    Wout = (W + 2 * ph - k) // stride + 1
    xp = jnp.pad(x, ((0, 0), (ph, ph), (ph, ph), (0, 0)))
    cols = []
    for i in range(k):
        for j in range(k):
            cols.append(xp[:, i:i + stride * (Hout - 1) + 1:stride,
                           j:j + stride * (Wout - 1) + 1:stride, :])
    a = jnp.concatenate(cols, axis=-1).reshape(N * Hout * Wout, k * k * Cin)
    return a, (N, Hout, Wout)


def apply_conv(p, x, out_dtype=jnp.bfloat16):
    a, (n, ho, wo) = im2col(x, p['k'], p['stride'])
    y = matmul_bias(a, p['w'], p['shift'], p['relu'], out_dtype=out_dtype)
    return y.reshape(n, ho, wo, p['cout'])


# ---------------------------------------------------------------------------
# Deterministic parameter construction (synthetic, no checkpoint).
# ---------------------------------------------------------------------------
class KeyGen:
    def __init__(self, key):
        self.key = key

    def __call__(self):
        self.key, sub = jax.random.split(self.key)
        return sub


def make_convbn(kg, k, cin, cout, stride=1, with_bn=True, relu=True):
    """conv2d module: Conv2d(bias=not with_bn) [+ BN] [+ ReLU]; BN folded into W."""
    w = jax.random.normal(kg(), (k, k, cin, cout), jnp.float32) / math.sqrt(k * k * cin)
    if with_bn:
        # gamma=1, beta=0, running_mean=0, running_var=1: scale folded into W,
        # shift is zero (one fewer multiply/input stream in the kernel).
        w = w * (1.0 / math.sqrt(1.0 + BN_EPS))
        shift = jnp.zeros((cout,), jnp.float32)
    else:
        shift = jax.random.normal(kg(), (cout,), jnp.float32) * 0.05   # conv bias
    return {'w': w.reshape(k * k * cin, cout).astype(jnp.bfloat16),
            'shift': shift, 'k': k, 'stride': stride, 'cout': cout, 'relu': relu}


def make_residual(kg, k, cin, cout, stride=1):
    p = {'conv1': make_convbn(kg, 3, cin, cout, stride, True, relu=True),
         'conv2': make_convbn(kg, 3, cout, cout, 1, True, relu=False),
         'skip': None}
    if stride != 1 or cin != cout:
        p['skip'] = make_convbn(kg, 1, cin, cout, stride, True, relu=False)
    return p


def apply_residual(p, x):
    n, h, w, cin = x.shape
    c2 = p['conv2']
    y = apply_conv(p['conv1'], x)                       # bf16, ReLU'd
    a2, (n2, ho, wo) = im2col(y, 3, 1)
    M = n2 * ho * wo
    if p['skip'] is None:
        # identity skip: conv2 + BN shift + residual add + final ReLU fused.
        out = matmul_bias(a2, c2['w'], c2['shift'], relu=True,
                          add=x.reshape(M, cin))
    else:
        s = p['skip']
        xs = x[:, ::s['stride'], ::s['stride'], :].reshape(M, cin)
        # conv2 and its 1x1 skip conv fused in one dual-dot kernel.
        out = matmul_dual(a2, c2['w'], xs, s['w'],
                          c2['shift'] + s['shift'], relu=True)
    return out.reshape(n2, ho, wo, c2['cout'])


def make_layer(kg, k, cin, cout, mods):
    layers = [make_residual(kg, k, cin, cout)]
    layers += [make_residual(kg, k, cout, cout) for _ in range(mods - 1)]
    return layers


def make_layer_revr(kg, k, cin, cout, mods):
    layers = [make_residual(kg, k, cin, cin) for _ in range(mods - 1)]
    layers.append(make_residual(kg, k, cin, cout))
    return layers


def make_hg_layer(kg, k, cin, cout, mods):
    layers = [make_residual(kg, k, cin, cout, stride=2)]
    layers += [make_residual(kg, k, cout, cout) for _ in range(mods - 1)]
    return layers


def apply_seq(layers, x):
    for p in layers:
        x = apply_residual(p, x)
    return x


def make_kp_module(kg, n, dims, modules):
    curr_mod, next_mod = modules[0], modules[1]
    curr_dim, next_dim = dims[0], dims[1]
    p = {'n': n}
    p['up1'] = make_layer(kg, 3, curr_dim, curr_dim, curr_mod)
    p['low1'] = make_hg_layer(kg, 3, curr_dim, next_dim, curr_mod)
    if n > 1:
        p['low2'] = make_kp_module(kg, n - 1, dims[1:], modules[1:])
    else:
        p['low2'] = make_layer(kg, 3, next_dim, next_dim, next_mod)
    p['low3'] = make_layer_revr(kg, 3, next_dim, curr_dim, curr_mod)
    return p


def apply_kp_module(p, x):
    up1 = apply_seq(p['up1'], x)
    low1 = apply_seq(p['low1'], x)
    if p['n'] > 1:
        low2 = apply_kp_module(p['low2'], low1)
    else:
        low2 = apply_seq(p['low2'], low1)
    low3 = apply_seq(p['low3'], low2)
    return upsample_add(up1, low3)      # kp output = up1 + upsample2x(low3), no ReLU


def make_heads_fused(kg, heads, num_stacks, cnv_dim, curr_dim):
    """Per stack: all heads batched.  W1 concatenated along Cout; W2 is
    block-diagonal so each head's 1x1 conv only reads its own 3x3 features
    (per-head parameters stay independent, exactly as in the PyTorch module)."""
    names = list(heads.keys())
    total = sum(heads.values())
    per_stack = []
    for _ in range(num_stacks):
        w1_blk, b1_blk, b2_blk = [], [], []
        w2 = jnp.zeros((len(names) * curr_dim, total), jnp.float32)
        off = 0
        for hi, head in enumerate(names):
            ncls = heads[head]
            # c1: conv2d(3, cnv_dim, curr_dim, with_bn=False) -> bias + ReLU.
            w1 = jax.random.normal(kg(), (3, 3, cnv_dim, curr_dim), jnp.float32)
            w1 = w1 / math.sqrt(9 * cnv_dim)
            b1 = jax.random.normal(kg(), (curr_dim,), jnp.float32) * 0.05
            w1_blk.append(w1.reshape(9 * cnv_dim, curr_dim))
            b1_blk.append(b1)
            # c2: 1x1 conv with bias; 'hm' head: weight.fill_(0), bias = -2.19
            # (exactly as in the PyTorch constructor).
            if 'hm' in head:
                blk = jnp.zeros((curr_dim, ncls), jnp.float32)
                b2 = jnp.full((ncls,), -2.19, jnp.float32)
            else:
                blk = jax.random.normal(kg(), (curr_dim, ncls), jnp.float32) / math.sqrt(curr_dim)
                b2 = jax.random.normal(kg(), (ncls,), jnp.float32) * 0.05
            w2 = w2.at[hi * curr_dim:(hi + 1) * curr_dim, off:off + ncls].set(blk)
            b2_blk.append(b2)
            off += ncls
        per_stack.append({'w1': jnp.concatenate(w1_blk, axis=1).astype(jnp.bfloat16),
                          'b1': jnp.concatenate(b1_blk),
                          'w2': w2.astype(jnp.bfloat16),
                          'b2': jnp.concatenate(b2_blk)})
    return per_stack


def make_centernet(kg, heads, num_stacks=2, n=2, cnv_dim=16,
                   dims=(16, 16, 32), modules=(1, 1, 2), pre_mid=8):
    dims, modules = list(dims), list(modules)
    curr_dim = dims[0]
    p = {'nstack': num_stacks,
         'head_channels': [(h, c) for h, c in heads.items()]}
    # pre = Sequential(conv2d(7, 3, pre_mid, stride=2), residual(3, pre_mid, curr_dim, stride=2))
    p['pre_conv'] = make_convbn(kg, 7, 3, pre_mid, stride=2, with_bn=True, relu=True)
    p['pre_res'] = make_residual(kg, 3, pre_mid, curr_dim, stride=2)
    p['kps'] = [make_kp_module(kg, n, dims, modules) for _ in range(num_stacks)]
    p['cnvs'] = [make_convbn(kg, 3, curr_dim, cnv_dim, 1, True, relu=True)
                 for _ in range(num_stacks)]
    p['inters'] = [make_residual(kg, 3, curr_dim, curr_dim) for _ in range(num_stacks - 1)]
    p['inters_'] = [make_convbn(kg, 1, curr_dim, curr_dim, 1, True, relu=False)
                    for _ in range(num_stacks - 1)]
    p['cnvs_'] = [make_convbn(kg, 1, cnv_dim, curr_dim, 1, True, relu=False)
                  for _ in range(num_stacks - 1)]
    p['heads'] = make_heads_fused(kg, heads, num_stacks, cnv_dim, curr_dim)
    return p


# ---------------------------------------------------------------------------
# Forward pass (mirrors CenterNet_HourglassNet.forward).
# ---------------------------------------------------------------------------
def centernet_forward(p, image_nchw):
    x = jnp.transpose(image_nchw, (0, 2, 3, 1)).astype(jnp.bfloat16)   # NCHW -> NHWC bf16
    inter = apply_conv(p['pre_conv'], x)
    inter = apply_residual(p['pre_res'], inter)
    outs = []
    for ind in range(p['nstack']):
        kp = apply_kp_module(p['kps'][ind], inter)
        cnv = apply_conv(p['cnvs'][ind], kp)
        if ind < p['nstack'] - 1:
            n_, h_, w_, ci = inter.shape
            M = n_ * h_ * w_
            pi, pc = p['inters_'][ind], p['cnvs_'][ind]
            # fused: inter = relu(inters_(inter) + cnvs_(cnv)) -- both are 1x1
            # convs, so one dual-dot kernel and no intermediate HBM tensor.
            merged = matmul_dual(inter.reshape(M, ci), pi['w'],
                                 cnv.reshape(M, cnv.shape[-1]), pc['w'],
                                 pi['shift'] + pc['shift'], relu=True)
            inter = merged.reshape(n_, h_, w_, pi['cout'])
            inter = apply_residual(p['inters'][ind], inter)
        # All heads of this stack: one im2col + one fused 2-matmul kernel (f32 out).
        hp = p['heads'][ind]
        a_h, (n, ho, wo) = im2col(cnv, 3, 1)
        y = matmul_heads(a_h, hp['w1'], hp['b1'], hp['w2'], hp['b2'])
        out = {}
        off = 0
        for head, ncls in p['head_channels']:
            hh = y[:, off:off + ncls].reshape(n, ho, wo, ncls)
            out[head] = jnp.transpose(hh, (0, 3, 1, 2))     # back to NCHW
            off += ncls
        outs.append(out)
    return outs


if __name__ == "__main__":
    key = jax.random.PRNGKey(0)
    pkey, xkey = jax.random.split(key)

    heads = {'hm': 5, 'wh': 2, 'reg': 2}
    params = make_centernet(KeyGen(pkey), heads,
                            num_stacks=2, n=2, cnv_dim=16,
                            dims=(16, 16, 32), modules=(1, 1, 2), pre_mid=8)

    # NCHW image, like the PyTorch module.
    image = jax.random.normal(xkey, (2, 3, 32, 32), jnp.float32)

    fwd = jax.jit(lambda img: centernet_forward(params, img))
    outs = fwd(image)
    jax.block_until_ready(outs)

    assert len(outs) == 2
    assert outs[0]['hm'].shape == (2, 5, 8, 8)
    assert outs[0]['wh'].shape == (2, 2, 8, 8)
    assert outs[1]['reg'].shape == (2, 2, 8, 8)
    assert all(o[h].dtype == jnp.float32 for o in outs for h in o)
    print("KERNEL_OK")
</pallas_src>

<mosaic_0001>
module attributes {stable_mosaic.version = 11 : i64} {
  func.func @_mm_bias_kernel(%arg0: i32, %arg1: memref<256x147xbf16, #tpu.memory_space<vmem>>, %arg2: memref<147x8xbf16, #tpu.memory_space<vmem>>, %arg3: memref<1x8xf32, #tpu.memory_space<vmem>>, %arg4: memref<256x8xbf16, #tpu.memory_space<vmem>>) attributes {dimension_semantics = [#tpu.dimension_semantics<parallel>], iteration_bounds = array<i64: 2>, scalar_prefetch = 0 : i64, scratch_operands = 0 : i64, tpu.core_type = #tpu.core_type<tc>, window_params = [{transform_indices = @transform_0, window_bounds = array<i64: 256, 147>}, {pipeline_mode = #tpu.pipeline_mode<synchronous>, transform_indices = @transform_1, window_bounds = array<i64: 147, 8>}, {pipeline_mode = #tpu.pipeline_mode<synchronous>, transform_indices = @transform_2, window_bounds = array<i64: 1, 8>}, {transform_indices = @transform_3, window_bounds = array<i64: 256, 8>}]} {
    %c0 = arith.constant 0 : index
    %c0_0 = arith.constant 0 : index
    %0 = vector.load %arg1[%c0, %c0_0] : memref<256x147xbf16, #tpu.memory_space<vmem>>, vector<256x147xbf16>
    %c0_1 = arith.constant 0 : index
    %c0_2 = arith.constant 0 : index
    %1 = vector.load %arg2[%c0_1, %c0_2] : memref<147x8xbf16, #tpu.memory_space<vmem>>, vector<147x8xbf16>
    %cst = arith.constant dense<0.000000e+00> : vector<256x8xf32>
    %2 = tpu.matmul %0, %1, %cst {dimension_numbers = #tpu.dot_dimension_numbers<[1], [0], [0], [1], [0, 0, 1, 1], [], []>} : vector<256x147xbf16>, vector<147x8xbf16>, vector<256x8xf32> -> vector<256x8xf32>
    %c0_3 = arith.constant 0 : index
    %c0_4 = arith.constant 0 : index
    %3 = vector.load %arg3[%c0_3, %c0_4] : memref<1x8xf32, #tpu.memory_space<vmem>>, vector<1x8xf32>
    %4 = vector.broadcast %3 : vector<1x8xf32> to vector<256x8xf32>
    %5 = arith.addf %2, %4 : vector<256x8xf32>
    %cst_5 = arith.constant 0.000000e+00 : f32
    %6 = vector.broadcast %cst_5 : f32 to vector<256x8xf32>
    %7 = arith.maximumf %5, %6 : vector<256x8xf32>
    %8 = arith.truncf %7 : vector<256x8xf32> to vector<256x8xbf16>
    %c0_6 = arith.constant 0 : index
    %c0_7 = arith.constant 0 : index
    %9 = vector.load %arg4[%c0_6, %c0_7] : memref<256x8xbf16, #tpu.memory_space<vmem>>, vector<256x8xbf16>
    tpu.vector_store %arg4[%c0_6, %c0_7], %8 {strides = array<i32>} : memref<256x8xbf16, #tpu.memory_space<vmem>>, vector<256x8xbf16>,
    return
  }
  func.func @transform_0(%arg0: i32) -> (i32, i32) {
    %c0_i32 = arith.constant 0 : i32
    %c0_i32_0 = arith.constant 0 : i32
    return %arg0, %c0_i32 : i32, i32
  }
  func.func @transform_1(%arg0: i32) -> (i32, i32) {
    %c0_i32 = arith.constant 0 : i32
    %c0_i32_0 = arith.constant 0 : i32
    %c0_i32_1 = arith.constant 0 : i32
    return %c0_i32, %c0_i32_0 : i32, i32
  }
  func.func @transform_2(%arg0: i32) -> (i32, i32) {
    %c0_i32 = arith.constant 0 : i32
    %c0_i32_0 = arith.constant 0 : i32
    %c0_i32_1 = arith.constant 0 : i32
    return %c0_i32, %c0_i32_0 : i32, i32
  }
  func.func @transform_3(%arg0: i32) -> (i32, i32) {
    %c0_i32 = arith.constant 0 : i32
    %c0_i32_0 = arith.constant 0 : i32
    return %arg0, %c0_i32 : i32, i32
  }
}

module attributes {stable_mosaic.version = 11 : i64} {
  func.func @_mm_bias_kernel(%arg0: i32, %arg1: memref<64x72xbf16, #tpu.memory_space<vmem>>, %arg2: memref<72x16xbf16, #tpu.memory_space<vmem>>, %arg3: memref<1x16xf32, #tpu.memory_space<vmem>>, %arg4: memref<64x16xbf16, #tpu.memory_space<vmem>>) attributes {dimension_semantics = [#tpu.dimension_semantics<parallel>], iteration_bounds = array<i64: 2>, scalar_prefetch = 0 : i64, scratch_operands = 0 : i64, tpu.core_type = #tpu.core_type<tc>, window_params = [{transform_indices = @transform_0, window_bounds = array<i64: 64, 72>}, {pipeline_mode = #tpu.pipeline_mode<synchronous>, transform_indices = @transform_1, window_bounds = array<i64: 72, 16>}, {pipeline_mode = #tpu.pipeline_mode<synchronous>, transform_indices = @transform_2, window_bounds = array<i64: 1, 16>}, {transform_indices = @transform_3, window_bounds = array<i64: 64, 16>}]} {
    %c0 = arith.constant 0 : index
    %c0_0 = arith.constant 0 : index
    %0 = vector.load %arg1[%c0, %c0_0] : memref<64x72xbf16, #tpu.memory_space<vmem>>, vector<64x72xbf16>
    %c0_1 = arith.constant 0 : index
    %c0_2 = arith.constant 0 : index
    %1 = vector.load %arg2[%c0_1, %c0_2] : memref<72x16xbf16, #tpu.memory_space<vmem>>, vector<72x16xbf16>
    %cst = arith.constant dense<0.000000e+00> : vector<64x16xf32>
    %2 = tpu.matmul %0, %1, %cst {dimension_numbers = #tpu.dot_dimension_numbers<[1], [0], [0], [1], [0, 0, 1, 1], [], []>} : vector<64x72xbf16>, vector<72x16xbf16>, vector<64x16xf32> -> vector<64x16xf32>
    %c0_3 = arith.constant 0 : index
    %c0_4 = arith.constant 0 : index
    %3 = vector.load %arg3[%c0_3, %c0_4] : memref<1x16xf32, #tpu.memory_space<vmem>>, vector<1x16xf32>
    %4 = vector.broadcast %3 : vector<1x16xf32> to vector<64x16xf32>
    %5 = arith.addf %2, %4 : vector<64x16xf32>
    %cst_5 = arith.constant 0.000000e+00 : f32
    %6 = vector.broadcast %cst_5 : f32 to vector<64x16xf32>
    %7 = arith.maximumf %5, %6 : vector<64x16xf32>
    %8 = arith.truncf %7 : vector<64x16xf32> to vector<64x16xbf16>
    %c0_6 = arith.constant 0 : index
    %c0_7 = arith.constant 0 : index
    %9 = vector.load %arg4[%c0_6, %c0_7] : memref<64x16xbf16, #tpu.memory_space<vmem>>, vector<64x16xbf16>
    tpu.vector_store %arg4[%c0_6, %c0_7], %8 {strides = array<i32>} : memref<64x16xbf16, #tpu.memory_space<vmem>>, vector<64x16xbf16>,
    return
  }
  func.func @transform_0(%arg0: i32) -> (i32, i32) {
    %c0_i32 = arith.constant 0 : i32
    %c0_i32_0 = arith.constant 0 : i32
    return %arg0, %c0_i32 : i32, i32
  }
  func.func @transform_1(%arg0: i32) -> (i32, i32) {
    %c0_i32 = arith.constant 0 : i32
    %c0_i32_0 = arith.constant 0 : i32
    %c0_i32_1 = arith.constant 0 : i32
    return %c0_i32, %c0_i32_0 : i32, i32
  }
  func.func @transform_2(%arg0: i32) -> (i32, i32) {
    %c0_i32 = arith.constant 0 : i32
    %c0_i32_0 = arith.constant 0 : i32
    %c0_i32_1 = arith.constant 0 : i32
    return %c0_i32, %c0_i32_0 : i32, i32
  }
  func.func @transform_3(%arg0: i32) -> (i32, i32) {
    %c0_i32 = arith.constant 0 : i32
    %c0_i32_0 = arith.constant 0 : i32
    return %arg0, %c0_i32 : i32, i32
  }
}

module attributes {stable_mosaic.version = 11 : i64} {
  func.func @_mm_dual_kernel(%arg0: i32, %arg1: memref<64x144xbf16, #tpu.memory_space<vmem>>, %arg2: memref<144x16xbf16, #tpu.memory_space<vmem>>, %arg3: memref<64x8xbf16, #tpu.memory_space<vmem>>, %arg4: memref<8x16xbf16, #tpu.memory_space<vmem>>, %arg5: memref<1x16xf32, #tpu.memory_space<vmem>>, %arg6: memref<64x16xbf16, #tpu.memory_space<vmem>>) attributes {dimension_semantics = [#tpu.dimension_semantics<parallel>], iteration_bounds = array<i64: 2>, scalar_prefetch = 0 : i64, scratch_operands = 0 : i64, tpu.core_type = #tpu.core_type<tc>, window_params = [{transform_indices = @transform_0, window_bounds = array<i64: 64, 144>}, {pipeline_mode = #tpu.pipeline_mode<synchronous>, transform_indices = @transform_1, window_bounds = array<i64: 144, 16>}, {transform_indices = @transform_2, window_bounds = array<i64: 64, 8>}, {pipeline_mode = #tpu.pipeline_mode<synchronous>, transform_indices = @transform_3, window_bounds = array<i64: 8, 16>}, {pipeline_mode = #tpu.pipeline_mode<synchronous>, transform_indices = @transform_4, window_bounds = array<i64: 1, 16>}, {transform_indices = @transform_5, window_bounds = array<i64: 64, 16>}]} {
    %c0 = arith.constant 0 : index
    %c0_0 = arith.constant 0 : index
    %0 = vector.load %arg1[%c0, %c0_0] : memref<64x144xbf16, #tpu.memory_space<vmem>>, vector<64x144xbf16>
    %c0_1 = arith.constant 0 : index
    %c0_2 = arith.constant 0 : index
    %1 = vector.load %arg2[%c0_1, %c0_2] : memref<144x16xbf16, #tpu.memory_space<vmem>>, vector<144x16xbf16>
    %cst = arith.constant dense<0.000000e+00> : vector<64x16xf32>
    %2 = tpu.matmul %0, %1, %cst {dimension_numbers = #tpu.dot_dimension_numbers<[1], [0], [0], [1], [0, 0, 1, 1], [], []>} : vector<64x144xbf16>, vector<144x16xbf16>, vector<64x16xf32> -> vector<64x16xf32>
    %c0_3 = arith.constant 0 : index
    %c0_4 = arith.constant 0 : index
    %3 = vector.load %arg3[%c0_3, %c0_4] : memref<64x8xbf16, #tpu.memory_space<vmem>>, vector<64x8xbf16>
    %c0_5 = arith.constant 0 : index
    %c0_6 = arith.constant 0 : index
    %4 = vector.load %arg4[%c0_5, %c0_6] : memref<8x16xbf16, #tpu.memory_space<vmem>>, vector<8x16xbf16>
    %cst_7 = arith.constant dense<0.000000e+00> : vector<64x16xf32>
    %5 = tpu.matmul %3, %4, %cst_7 {dimension_numbers = #tpu.dot_dimension_numbers<[1], [0], [0], [1], [0, 0, 1, 1], [], []>} : vector<64x8xbf16>, vector<8x16xbf16>, vector<64x16xf32> -> vector<64x16xf32>
    %6 = arith.addf %2, %5 : vector<64x16xf32>
    %c0_8 = arith.constant 0 : index
    %c0_9 = arith.constant 0 : index
    %7 = vector.load %arg5[%c0_8, %c0_9] : memref<1x16xf32, #tpu.memory_space<vmem>>, vector<1x16xf32>
    %8 = vector.broadcast %7 : vector<1x16xf32> to vector<64x16xf32>
    %9 = arith.addf %6, %8 : vector<64x16xf32>
    %cst_10 = arith.constant 0.000000e+00 : f32
    %10 = vector.broadcast %cst_10 : f32 to vector<64x16xf32>
    %11 = arith.maximumf %9, %10 : vector<64x16xf32>
    %12 = arith.truncf %11 : vector<64x16xf32> to vector<64x16xbf16>
    %c0_11 = arith.constant 0 : index
    %c0_12 = arith.constant 0 : index
    %13 = vector.load %arg6[%c0_11, %c0_12] : memref<64x16xbf16, #tpu.memory_space<vmem>>, vector<64x16xbf16>
    tpu.vector_store %arg6[%c0_11, %c0_12], %12 {strides = array<i32>} : memref<64x16xbf16, #tpu.memory_space<vmem>>, vector<64x16xbf16>,
    return
  }
  func.func @transform_0(%arg0: i32) -> (i32, i32) {
    %c0_i32 = arith.constant 0 : i32
    %c0_i32_0 = arith.constant 0 : i32
    return %arg0, %c0_i32 : i32, i32
  }
  func.func @transform_1(%arg0: i32) -> (i32, i32) {
    %c0_i32 = arith.constant 0 : i32
    %c0_i32_0 = arith.constant 0 : i32
    %c0_i32_1 = arith.constant 0 : i32
    return %c0_i32, %c0_i32_0 : i32, i32
  }
  func.func @transform_2(%arg0: i32) -> (i32, i32) {
    %c0_i32 = arith.constant 0 : i32
    %c0_i32_0 = arith.constant 0 : i32
    return %arg0, %c0_i32 : i32, i32
  }
  func.func @transform_3(%arg0: i32) -> (i32, i32) {
    %c0_i32 = arith.constant 0 : i32
    %c0_i32_0 = arith.constant 0 : i32
    %c0_i32_1 = arith.constant 0 : i32
    return %c0_i32, %c0_i32_0 : i32, i32
  }
  func.func @transform_4(%arg0: i32) -> (i32, i32) {
    %c0_i32 = arith.constant 0 : i32
    %c0_i32_0 = arith.constant 0 : i32
    %c0_i32_1 = arith.constant 0 : i32
    return %c0_i32, %c0_i32_0 : i32, i32
  }
  func.func @transform_5(%arg0: i32) -> (i32, i32) {
    %c0_i32 = arith.constant 0 : i32
    %c0_i32_0 = arith.constant 0 : i32
    return %arg0, %c0_i32 : i32, i32
  }
}

module attributes {stable_mosaic.version = 11 : i64} {
  func.func @_mm_bias_kernel(%arg0: i32, %arg1: memref<32x144xbf16, #tpu.memory_space<vmem>>, %arg2: memref<144x16xbf16, #tpu.memory_space<vmem>>, %arg3: memref<1x16xf32, #tpu.memory_space<vmem>>, %arg4: memref<32x16xbf16, #tpu.memory_space<vmem>>) attributes {dimension_semantics = [#tpu.dimension_semantics<parallel>], iteration_bounds = array<i64: 1>, scalar_prefetch = 0 : i64, scratch_operands = 0 : i64, tpu.core_type = #tpu.core_type<tc>, window_params = [{transform_indices = @transform_0, window_bounds = array<i64: 32, 144>}, {pipeline_mode = #tpu.pipeline_mode<synchronous>, transform_indices = @transform_1, window_bounds = array<i64: 144, 16>}, {pipeline_mode = #tpu.pipeline_mode<synchronous>, transform_indices = @transform_2, window_bounds = array<i64: 1, 16>}, {transform_indices = @transform_3, window_bounds = array<i64: 32, 16>}]} {
    %c0 = arith.constant 0 : index
    %c0_0 = arith.constant 0 : index
    %0 = vector.load %arg1[%c0, %c0_0] : memref<32x144xbf16, #tpu.memory_space<vmem>>, vector<32x144xbf16>
    %c0_1 = arith.constant 0 : index
    %c0_2 = arith.constant 0 : index
    %1 = vector.load %arg2[%c0_1, %c0_2] : memref<144x16xbf16, #tpu.memory_space<vmem>>, vector<144x16xbf16>
    %cst = arith.constant dense<0.000000e+00> : vector<32x16xf32>
    %2 = tpu.matmul %0, %1, %cst {dimension_numbers = #tpu.dot_dimension_numbers<[1], [0], [0], [1], [0, 0, 1, 1], [], []>} : vector<32x144xbf16>, vector<144x16xbf16>, vector<32x16xf32> -> vector<32x16xf32>
    %c0_3 = arith.constant 0 : index
    %c0_4 = arith.constant 0 : index
    %3 = vector.load %arg3[%c0_3, %c0_4] : memref<1x16xf32, #tpu.memory_space<vmem>>, vector<1x16xf32>
    %4 = vector.broadcast %3 : vector<1x16xf32> to vector<32x16xf32>
    %5 = arith.addf %2, %4 : vector<32x16xf32>
    %cst_5 = arith.constant 0.000000e+00 : f32
    %6 = vector.broadcast %cst_5 : f32 to vector<32x16xf32>
    %7 = arith.maximumf %5, %6 : vector<32x16xf32>
    %8 = arith.truncf %7 : vector<32x16xf32> to vector<32x16xbf16>
    %c0_6 = arith.constant 0 : index
    %c0_7 = arith.constant 0 : index
    %9 = vector.load %arg4[%c0_6, %c0_7] : memref<32x16xbf16, #tpu.memory_space<vmem>>, vector<32x16xbf16>
    tpu.vector_store %arg4[%c0_6, %c0_7], %8 {strides = array<i32>} : memref<32x16xbf16, #tpu.memory_space<vmem>>, vector<32x16xbf16>,
    return
  }
  func.func @transform_0(%arg0: i32) -> (i32, i32) {
    %c0_i32 = arith.constant 0 : i32
    %c0_i32_0 = arith.constant 0 : i32
    return %arg0, %c0_i32 : i32, i32
  }
  func.func @transform_1(%arg0: i32) -> (i32, i32) {
    %c0_i32 = arith.constant 0 : i32
    %c0_i32_0 = arith.constant 0 : i32
    %c0_i32_1 = arith.constant 0 : i32
    return %c0_i32, %c0_i32_0 : i32, i32
  }
  func.func @transform_2(%arg0: i32) -> (i32, i32) {
    %c0_i32 = arith.constant 0 : i32
    %c0_i32_0 = arith.constant 0 : i32
    %c0_i32_1 = arith.constant 0 : i32
    return %c0_i32, %c0_i32_0 : i32, i32
  }
  func.func @transform_3(%arg0: i32) -> (i32, i32) {
    %c0_i32 = arith.constant 0 : i32
    %c0_i32_0 = arith.constant 0 : i32
    return %arg0, %c0_i32 : i32, i32
  }
}

module attributes {stable_mosaic.version = 11 : i64} {
  func.func @_mm_dual_kernel(%arg0: i32, %arg1: memref<32x144xbf16, #tpu.memory_space<vmem>>, %arg2: memref<144x16xbf16, #tpu.memory_space<vmem>>, %arg3: memref<32x16xbf16, #tpu.memory_space<vmem>>, %arg4: memref<16x16xbf16, #tpu.memory_space<vmem>>, %arg5: memref<1x16xf32, #tpu.memory_space<vmem>>, %arg6: memref<32x16xbf16, #tpu.memory_space<vmem>>) attributes {dimension_semantics = [#tpu.dimension_semantics<parallel>], iteration_bounds = array<i64: 1>, scalar_prefetch = 0 : i64, scratch_operands = 0 : i64, tpu.core_type = #tpu.core_type<tc>, window_params = [{transform_indices = @transform_0, window_bounds = array<i64: 32, 144>}, {pipeline_mode = #tpu.pipeline_mode<synchronous>, transform_indices = @transform_1, window_bounds = array<i64: 144, 16>}, {transform_indices = @transform_2, window_bounds = array<i64: 32, 16>}, {pipeline_mode = #tpu.pipeline_mode<synchronous>, transform_indices = @transform_3, window_bounds = array<i64: 16, 16>}, {pipeline_mode = #tpu.pipeline_mode<synchronous>, transform_indices = @transform_4, window_bounds = array<i64: 1, 16>}, {transform_indices = @transform_5, window_bounds = array<i64: 32, 16>}]} {
    %c0 = arith.constant 0 : index
    %c0_0 = arith.constant 0 : index
    %0 = vector.load %arg1[%c0, %c0_0] : memref<32x144xbf16, #tpu.memory_space<vmem>>, vector<32x144xbf16>
    %c0_1 = arith.constant 0 : index
    %c0_2 = arith.constant 0 : index
    %1 = vector.load %arg2[%c0_1, %c0_2] : memref<144x16xbf16, #tpu.memory_space<vmem>>, vector<144x16xbf16>
    %cst = arith.constant dense<0.000000e+00> : vector<32x16xf32>
    %2 = tpu.matmul %0, %1, %cst {dimension_numbers = #tpu.dot_dimension_numbers<[1], [0], [0], [1], [0, 0, 1, 1], [], []>} : vector<32x144xbf16>, vector<144x16xbf16>, vector<32x16xf32> -> vector<32x16xf32>
    %c0_3 = arith.constant 0 : index
    %c0_4 = arith.constant 0 : index
    %3 = vector.load %arg3[%c0_3, %c0_4] : memref<32x16xbf16, #tpu.memory_space<vmem>>, vector<32x16xbf16>
    %c0_5 = arith.constant 0 : index
    %c0_6 = arith.constant 0 : index
    %4 = vector.load %arg4[%c0_5, %c0_6] : memref<16x16xbf16, #tpu.memory_space<vmem>>, vector<16x16xbf16>
    %cst_7 = arith.constant dense<0.000000e+00> : vector<32x16xf32>
    %5 = tpu.matmul %3, %4, %cst_7 {dimension_numbers = #tpu.dot_dimension_numbers<[1], [0], [0], [1], [0, 0, 1, 1], [], []>} : vector<32x16xbf16>, vector<16x16xbf16>, vector<32x16xf32> -> vector<32x16xf32>
    %6 = arith.addf %2, %5 : vector<32x16xf32>
    %c0_8 = arith.constant 0 : index
    %c0_9 = arith.constant 0 : index
    %7 = vector.load %arg5[%c0_8, %c0_9] : memref<1x16xf32, #tpu.memory_space<vmem>>, vector<1x16xf32>
    %8 = vector.broadcast %7 : vector<1x16xf32> to vector<32x16xf32>
    %9 = arith.addf %6, %8 : vector<32x16xf32>
    %cst_10 = arith.constant 0.000000e+00 : f32
    %10 = vector.broadcast %cst_10 : f32 to vector<32x16xf32>
    %11 = arith.maximumf %9, %10 : vector<32x16xf32>
    %12 = arith.truncf %11 : vector<32x16xf32> to vector<32x16xbf16>
    %c0_11 = arith.constant 0 : index
    %c0_12 = arith.constant 0 : index
    %13 = vector.load %arg6[%c0_11, %c0_12] : memref<32x16xbf16, #tpu.memory_space<vmem>>, vector<32x16xbf16>
    tpu.vector_store %arg6[%c0_11, %c0_12], %12 {strides = array<i32>} : memref<32x16xbf16, #tpu.memory_space<vmem>>, vector<32x16xbf16>,
    return
  }
  func.func @transform_0(%arg0: i32) -> (i32, i32) {
    %c0_i32 = arith.constant 0 : i32
    %c0_i32_0 = arith.constant 0 : i32
    return %arg0, %c0_i32 : i32, i32
  }
  func.func @transform_1(%arg0: i32) -> (i32, i32) {
    %c0_i32 = arith.constant 0 : i32
    %c0_i32_0 = arith.constant 0 : i32
    %c0_i32_1 = arith.constant 0 : i32
    return %c0_i32, %c0_i32_0 : i32, i32
  }
  func.func @transform_2(%arg0: i32) -> (i32, i32) {
    %c0_i32 = arith.constant 0 : i32
    %c0_i32_0 = arith.constant 0 : i32
    return %arg0, %c0_i32 : i32, i32
  }
  func.func @transform_3(%arg0: i32) -> (i32, i32) {
    %c0_i32 = arith.constant 0 : i32
    %c0_i32_0 = arith.constant 0 : i32
    %c0_i32_1 = arith.constant 0 : i32
    return %c0_i32, %c0_i32_0 : i32, i32
  }
  func.func @transform_4(%arg0: i32) -> (i32, i32) {
    %c0_i32 = arith.constant 0 : i32
    %c0_i32_0 = arith.constant 0 : i32
    %c0_i32_1 = arith.constant 0 : i32
    return %c0_i32, %c0_i32_0 : i32, i32
  }
  func.func @transform_5(%arg0: i32) -> (i32, i32) {
    %c0_i32 = arith.constant 0 : i32
    %c0_i32_0 = arith.constant 0 : i32
    return %arg0, %c0_i32 : i32, i32
  }
}

module attributes {stable_mosaic.version = 11 : i64} {
  func.func @_mm_bias_kernel(%arg0: i32, %arg1: memref<8x144xbf16, #tpu.memory_space<vmem>>, %arg2: memref<144x32xbf16, #tpu.memory_space<vmem>>, %arg3: memref<1x32xf32, #tpu.memory_space<vmem>>, %arg4: memref<8x32xbf16, #tpu.memory_space<vmem>>) attributes {dimension_semantics = [#tpu.dimension_semantics<parallel>], iteration_bounds = array<i64: 1>, scalar_prefetch = 0 : i64, scratch_operands = 0 : i64, tpu.core_type = #tpu.core_type<tc>, window_params = [{transform_indices = @transform_0, window_bounds = array<i64: 8, 144>}, {pipeline_mode = #tpu.pipeline_mode<synchronous>, transform_indices = @transform_1, window_bounds = array<i64: 144, 32>}, {pipeline_mode = #tpu.pipeline_mode<synchronous>, transform_indices = @transform_2, window_bounds = array<i64: 1, 32>}, {transform_indices = @transform_3, window_bounds = array<i64: 8, 32>}]} {
    %c0 = arith.constant 0 : index
    %c0_0 = arith.constant 0 : index
    %0 = vector.load %arg1[%c0, %c0_0] : memref<8x144xbf16, #tpu.memory_space<vmem>>, vector<8x144xbf16>
    %c0_1 = arith.constant 0 : index
    %c0_2 = arith.constant 0 : index
    %1 = vector.load %arg2[%c0_1, %c0_2] : memref<144x32xbf16, #tpu.memory_space<vmem>>, vector<144x32xbf16>
    %cst = arith.constant dense<0.000000e+00> : vector<8x32xf32>
    %2 = tpu.matmul %0, %1, %cst {dimension_numbers = #tpu.dot_dimension_numbers<[1], [0], [0], [1], [0, 0, 1, 1], [], []>} : vector<8x144xbf16>, vector<144x32xbf16>, vector<8x32xf32> -> vector<8x32xf32>
    %c0_3 = arith.constant 0 : index
    %c0_4 = arith.constant 0 : index
    %3 = vector.load %arg3[%c0_3, %c0_4] : memref<1x32xf32, #tpu.memory_space<vmem>>, vector<1x32xf32>
    %4 = vector.broadcast %3 : vector<1x32xf32> to vector<8x32xf32>
    %5 = arith.addf %2, %4 : vector<8x32xf32>
    %cst_5 = arith.constant 0.000000e+00 : f32
    %6 = vector.broadcast %cst_5 : f32 to vector<8x32xf32>
    %7 = arith.maximumf %5, %6 : vector<8x32xf32>
    %8 = arith.truncf %7 : vector<8x32xf32> to vector<8x32xbf16>
    %c0_6 = arith.constant 0 : index
    %c0_7 = arith.constant 0 : index
    %9 = vector.load %arg4[%c0_6, %c0_7] : memref<8x32xbf16, #tpu.memory_space<vmem>>, vector<8x32xbf16>
    tpu.vector_store %arg4[%c0_6, %c0_7], %8 {strides = array<i32>} : memref<8x32xbf16, #tpu.memory_space<vmem>>, vector<8x32xbf16>,
    return
  }
  func.func @transform_0(%arg0: i32) -> (i32, i32) {
    %c0_i32 = arith.constant 0 : i32
    %c0_i32_0 = arith.constant 0 : i32
    return %arg0, %c0_i32 : i32, i32
  }
  func.func @transform_1(%arg0: i32) -> (i32, i32) {
    %c0_i32 = arith.constant 0 : i32
    %c0_i32_0 = arith.constant 0 : i32
    %c0_i32_1 = arith.constant 0 : i32
    return %c0_i32, %c0_i32_0 : i32, i32
  }
  func.func @transform_2(%arg0: i32) -> (i32, i32) {
    %c0_i32 = arith.constant 0 : i32
    %c0_i32_0 = arith.constant 0 : i32
    %c0_i32_1 = arith.constant 0 : i32
    return %c0_i32, %c0_i32_0 : i32, i32
  }
  func.func @transform_3(%arg0: i32) -> (i32, i32) {
    %c0_i32 = arith.constant 0 : i32
    %c0_i32_0 = arith.constant 0 : i32
    return %arg0, %c0_i32 : i32, i32
  }
}

module attributes {stable_mosaic.version = 11 : i64} {
  func.func @_mm_dual_kernel(%arg0: i32, %arg1: memref<8x288xbf16, #tpu.memory_space<vmem>>, %arg2: memref<288x32xbf16, #tpu.memory_space<vmem>>, %arg3: memref<8x16xbf16, #tpu.memory_space<vmem>>, %arg4: memref<16x32xbf16, #tpu.memory_space<vmem>>, %arg5: memref<1x32xf32, #tpu.memory_space<vmem>>, %arg6: memref<8x32xbf16, #tpu.memory_space<vmem>>) attributes {dimension_semantics = [#tpu.dimension_semantics<parallel>], iteration_bounds = array<i64: 1>, scalar_prefetch = 0 : i64, scratch_operands = 0 : i64, tpu.core_type = #tpu.core_type<tc>, window_params = [{transform_indices = @transform_0, window_bounds = array<i64: 8, 288>}, {pipeline_mode = #tpu.pipeline_mode<synchronous>, transform_indices = @transform_1, window_bounds = array<i64: 288, 32>}, {transform_indices = @transform_2, window_bounds = array<i64: 8, 16>}, {pipeline_mode = #tpu.pipeline_mode<synchronous>, transform_indices = @transform_3, window_bounds = array<i64: 16, 32>}, {pipeline_mode = #tpu.pipeline_mode<synchronous>, transform_indices = @transform_4, window_bounds = array<i64: 1, 32>}, {transform_indices = @transform_5, window_bounds = array<i64: 8, 32>}]} {
    %c0 = arith.constant 0 : index
    %c0_0 = arith.constant 0 : index
    %0 = vector.load %arg1[%c0, %c0_0] : memref<8x288xbf16, #tpu.memory_space<vmem>>, vector<8x288xbf16>
    %c0_1 = arith.constant 0 : index
    %c0_2 = arith.constant 0 : index
    %1 = vector.load %arg2[%c0_1, %c0_2] : memref<288x32xbf16, #tpu.memory_space<vmem>>, vector<288x32xbf16>
    %cst = arith.constant dense<0.000000e+00> : vector<8x32xf32>
    %2 = tpu.matmul %0, %1, %cst {dimension_numbers = #tpu.dot_dimension_numbers<[1], [0], [0], [1], [0, 0, 1, 1], [], []>} : vector<8x288xbf16>, vector<288x32xbf16>, vector<8x32xf32> -> vector<8x32xf32>
    %c0_3 = arith.constant 0 : index
    %c0_4 = arith.constant 0 : index
    %3 = vector.load %arg3[%c0_3, %c0_4] : memref<8x16xbf16, #tpu.memory_space<vmem>>, vector<8x16xbf16>
    %c0_5 = arith.constant 0 : index
    %c0_6 = arith.constant 0 : index
    %4 = vector.load %arg4[%c0_5, %c0_6] : memref<16x32xbf16, #tpu.memory_space<vmem>>, vector<16x32xbf16>
    %cst_7 = arith.constant dense<0.000000e+00> : vector<8x32xf32>
    %5 = tpu.matmul %3, %4, %cst_7 {dimension_numbers = #tpu.dot_dimension_numbers<[1], [0], [0], [1], [0, 0, 1, 1], [], []>} : vector<8x16xbf16>, vector<16x32xbf16>, vector<8x32xf32> -> vector<8x32xf32>
    %6 = arith.addf %2, %5 : vector<8x32xf32>
    %c0_8 = arith.constant 0 : index
    %c0_9 = arith.constant 0 : index
    %7 = vector.load %arg5[%c0_8, %c0_9] : memref<1x32xf32, #tpu.memory_space<vmem>>, vector<1x32xf32>
    %8 = vector.broadcast %7 : vector<1x32xf32> to vector<8x32xf32>
    %9 = arith.addf %6, %8 : vector<8x32xf32>
    %cst_10 = arith.constant 0.000000e+00 : f32
    %10 = vector.broadcast %cst_10 : f32 to vector<8x32xf32>
    %11 = arith.maximumf %9, %10 : vector<8x32xf32>
    %12 = arith.truncf %11 : vector<8x32xf32> to vector<8x32xbf16>
    %c0_11 = arith.constant 0 : index
    %c0_12 = arith.constant 0 : index
    %13 = vector.load %arg6[%c0_11, %c0_12] : memref<8x32xbf16, #tpu.memory_space<vmem>>, vector<8x32xbf16>
    tpu.vector_store %arg6[%c0_11, %c0_12], %12 {strides = array<i32>} : memref<8x32xbf16, #tpu.memory_space<vmem>>, vector<8x32xbf16>,
    return
  }
  func.func @transform_0(%arg0: i32) -> (i32, i32) {
    %c0_i32 = arith.constant 0 : i32
    %c0_i32_0 = arith.constant 0 : i32
    return %arg0, %c0_i32 : i32, i32
  }
  func.func @transform_1(%arg0: i32) -> (i32, i32) {
    %c0_i32 = arith.constant 0 : i32
    %c0_i32_0 = arith.constant 0 : i32
    %c0_i32_1 = arith.constant 0 : i32
    return %c0_i32, %c0_i32_0 : i32, i32
  }
  func.func @transform_2(%arg0: i32) -> (i32, i32) {
    %c0_i32 = arith.constant 0 : i32
    %c0_i32_0 = arith.constant 0 : i32
    return %arg0, %c0_i32 : i32, i32
  }
  func.func @transform_3(%arg0: i32) -> (i32, i32) {
    %c0_i32 = arith.constant 0 : i32
    %c0_i32_0 = arith.constant 0 : i32
    %c0_i32_1 = arith.constant 0 : i32
    return %c0_i32, %c0_i32_0 : i32, i32
  }
  func.func @transform_4(%arg0: i32) -> (i32, i32) {
    %c0_i32 = arith.constant 0 : i32
    %c0_i32_0 = arith.constant 0 : i32
    %c0_i32_1 = arith.constant 0 : i32
    return %c0_i32, %c0_i32_0 : i32, i32
  }
  func.func @transform_5(%arg0: i32) -> (i32, i32) {
    %c0_i32 = arith.constant 0 : i32
    %c0_i32_0 = arith.constant 0 : i32
    return %arg0, %c0_i32 : i32, i32
  }
}

module attributes {stable_mosaic.version = 11 : i64} {
  func.func @_mm_bias_kernel(%arg0: i32, %arg1: memref<8x288xbf16, #tpu.memory_space<vmem>>, %arg2: memref<288x32xbf16, #tpu.memory_space<vmem>>, %arg3: memref<1x32xf32, #tpu.memory_space<vmem>>, %arg4: memref<8x32xbf16, #tpu.memory_space<vmem>>) attributes {dimension_semantics = [#tpu.dimension_semantics<parallel>], iteration_bounds = array<i64: 1>, scalar_prefetch = 0 : i64, scratch_operands = 0 : i64, tpu.core_type = #tpu.core_type<tc>, window_params = [{transform_indices = @transform_0, window_bounds = array<i64: 8, 288>}, {pipeline_mode = #tpu.pipeline_mode<synchronous>, transform_indices = @transform_1, window_bounds = array<i64: 288, 32>}, {pipeline_mode = #tpu.pipeline_mode<synchronous>, transform_indices = @transform_2, window_bounds = array<i64: 1, 32>}, {transform_indices = @transform_3, window_bounds = array<i64: 8, 32>}]} {
    %c0 = arith.constant 0 : index
    %c0_0 = arith.constant 0 : index
    %0 = vector.load %arg1[%c0, %c0_0] : memref<8x288xbf16, #tpu.memory_space<vmem>>, vector<8x288xbf16>
    %c0_1 = arith.constant 0 : index
    %c0_2 = arith.constant 0 : index
    %1 = vector.load %arg2[%c0_1, %c0_2] : memref<288x32xbf16, #tpu.memory_space<vmem>>, vector<288x32xbf16>
    %cst = arith.constant dense<0.000000e+00> : vector<8x32xf32>
    %2 = tpu.matmul %0, %1, %cst {dimension_numbers = #tpu.dot_dimension_numbers<[1], [0], [0], [1], [0, 0, 1, 1], [], []>} : vector<8x288xbf16>, vector<288x32xbf16>, vector<8x32xf32> -> vector<8x32xf32>
    %c0_3 = arith.constant 0 : index
    %c0_4 = arith.constant 0 : index
    %3 = vector.load %arg3[%c0_3, %c0_4] : memref<1x32xf32, #tpu.memory_space<vmem>>, vector<1x32xf32>
    %4 = vector.broadcast %3 : vector<1x32xf32> to vector<8x32xf32>
    %5 = arith.addf %2, %4 : vector<8x32xf32>
    %cst_5 = arith.constant 0.000000e+00 : f32
    %6 = vector.broadcast %cst_5 : f32 to vector<8x32xf32>
    %7 = arith.maximumf %5, %6 : vector<8x32xf32>
    %8 = arith.truncf %7 : vector<8x32xf32> to vector<8x32xbf16>
    %c0_6 = arith.constant 0 : index
    %c0_7 = arith.constant 0 : index
    %9 = vector.load %arg4[%c0_6, %c0_7] : memref<8x32xbf16, #tpu.memory_space<vmem>>, vector<8x32xbf16>
    tpu.vector_store %arg4[%c0_6, %c0_7], %8 {strides = array<i32>} : memref<8x32xbf16, #tpu.memory_space<vmem>>, vector<8x32xbf16>,
    return
  }
  func.func @transform_0(%arg0: i32) -> (i32, i32) {
    %c0_i32 = arith.constant 0 : i32
    %c0_i32_0 = arith.constant 0 : i32
    return %arg0, %c0_i32 : i32, i32
  }
  func.func @transform_1(%arg0: i32) -> (i32, i32) {
    %c0_i32 = arith.constant 0 : i32
    %c0_i32_0 = arith.constant 0 : i32
    %c0_i32_1 = arith.constant 0 : i32
    return %c0_i32, %c0_i32_0 : i32, i32
  }
  func.func @transform_2(%arg0: i32) -> (i32, i32) {
    %c0_i32 = arith.constant 0 : i32
    %c0_i32_0 = arith.constant 0 : i32
    %c0_i32_1 = arith.constant 0 : i32
    return %c0_i32, %c0_i32_0 : i32, i32
  }
  func.func @transform_3(%arg0: i32) -> (i32, i32) {
    %c0_i32 = arith.constant 0 : i32
    %c0_i32_0 = arith.constant 0 : i32
    return %arg0, %c0_i32 : i32, i32
  }
}

module attributes {stable_mosaic.version = 11 : i64} {
  func.func @_mm_bias_add_kernel(%arg0: i32, %arg1: memref<8x288xbf16, #tpu.memory_space<vmem>>, %arg2: memref<288x32xbf16, #tpu.memory_space<vmem>>, %arg3: memref<1x32xf32, #tpu.memory_space<vmem>>, %arg4: memref<8x32xbf16, #tpu.memory_space<vmem>>, %arg5: memref<8x32xbf16, #tpu.memory_space<vmem>>) attributes {dimension_semantics = [#tpu.dimension_semantics<parallel>], iteration_bounds = array<i64: 1>, scalar_prefetch = 0 : i64, scratch_operands = 0 : i64, tpu.core_type = #tpu.core_type<tc>, window_params = [{transform_indices = @transform_0, window_bounds = array<i64: 8, 288>}, {pipeline_mode = #tpu.pipeline_mode<synchronous>, transform_indices = @transform_1, window_bounds = array<i64: 288, 32>}, {pipeline_mode = #tpu.pipeline_mode<synchronous>, transform_indices = @transform_2, window_bounds = array<i64: 1, 32>}, {transform_indices = @transform_3, window_bounds = array<i64: 8, 32>}, {transform_indices = @transform_4, window_bounds = array<i64: 8, 32>}]} {
    %c0 = arith.constant 0 : index
    %c0_0 = arith.constant 0 : index
    %0 = vector.load %arg1[%c0, %c0_0] : memref<8x288xbf16, #tpu.memory_space<vmem>>, vector<8x288xbf16>
    %c0_1 = arith.constant 0 : index
    %c0_2 = arith.constant 0 : index
    %1 = vector.load %arg2[%c0_1, %c0_2] : memref<288x32xbf16, #tpu.memory_space<vmem>>, vector<288x32xbf16>
    %cst = arith.constant dense<0.000000e+00> : vector<8x32xf32>
    %2 = tpu.matmul %0, %1, %cst {dimension_numbers = #tpu.dot_dimension_numbers<[1], [0], [0], [1], [0, 0, 1, 1], [], []>} : vector<8x288xbf16>, vector<288x32xbf16>, vector<8x32xf32> -> vector<8x32xf32>
    %c0_3 = arith.constant 0 : index
    %c0_4 = arith.constant 0 : index
    %3 = vector.load %arg3[%c0_3, %c0_4] : memref<1x32xf32, #tpu.memory_space<vmem>>, vector<1x32xf32>
    %4 = vector.broadcast %3 : vector<1x32xf32> to vector<8x32xf32>
    %5 = arith.addf %2, %4 : vector<8x32xf32>
    %c0_5 = arith.constant 0 : index
    %c0_6 = arith.constant 0 : index
    %6 = vector.load %arg4[%c0_5, %c0_6] : memref<8x32xbf16, #tpu.memory_space<vmem>>, vector<8x32xbf16>
    %7 = arith.extf %6 : vector<8x32xbf16> to vector<8x32xf32>
    %8 = arith.addf %5, %7 : vector<8x32xf32>
    %cst_7 = arith.constant 0.000000e+00 : f32
    %9 = vector.broadcast %cst_7 : f32 to vector<8x32xf32>
    %10 = arith.maximumf %8, %9 : vector<8x32xf32>
    %11 = arith.truncf %10 : vector<8x32xf32> to vector<8x32xbf16>
    %c0_8 = arith.constant 0 : index
    %c0_9 = arith.constant 0 : index
    %12 = vector.load %arg5[%c0_8, %c0_9] : memref<8x32xbf16, #tpu.memory_space<vmem>>, vector<8x32xbf16>
    tpu.vector_store %arg5[%c0_8, %c0_9], %11 {strides = array<i32>} : memref<8x32xbf16, #tpu.memory_space<vmem>>, vector<8x32xbf16>,
    return
  }
  func.func @transform_0(%arg0: i32) -> (i32, i32) {
    %c0_i32 = arith.constant 0 : i32
    %c0_i32_0 = arith.constant 0 : i32
    return %arg0, %c0_i32 : i32, i32
  }
  func.func @transform_1(%arg0: i32) -> (i32, i32) {
    %c0_i32 = arith.constant 0 : i32
    %c0_i32_0 = arith.constant 0 : i32
    %c0_i32_1 = arith.constant 0 : i32
    return %c0_i32, %c0_i32_0 : i32, i32
  }
  func.func @transform_2(%arg0: i32) -> (i32, i32) {
    %c0_i32 = arith.constant 0 : i32
    %c0_i32_0 = arith.constant 0 : i32
    %c0_i32_1 = arith.constant 0 : i32
    return %c0_i32, %c0_i32_0 : i32, i32
  }
  func.func @transform_3(%arg0: i32) -> (i32, i32) {
    %c0_i32 = arith.constant 0 : i32
    %c0_i32_0 = arith.constant 0 : i32
    return %arg0, %c0_i32 : i32, i32
  }
  func.func @transform_4(%arg0: i32) -> (i32, i32) {
    %c0_i32 = arith.constant 0 : i32
    %c0_i32_0 = arith.constant 0 : i32
    return %arg0, %c0_i32 : i32, i32
  }
}

module attributes {stable_mosaic.version = 11 : i64} {
  func.func @_mm_bias_kernel(%arg0: i32, %arg1: memref<8x288xbf16, #tpu.memory_space<vmem>>, %arg2: memref<288x16xbf16, #tpu.memory_space<vmem>>, %arg3: memref<1x16xf32, #tpu.memory_space<vmem>>, %arg4: memref<8x16xbf16, #tpu.memory_space<vmem>>) attributes {dimension_semantics = [#tpu.dimension_semantics<parallel>], iteration_bounds = array<i64: 1>, scalar_prefetch = 0 : i64, scratch_operands = 0 : i64, tpu.core_type = #tpu.core_type<tc>, window_params = [{transform_indices = @transform_0, window_bounds = array<i64: 8, 288>}, {pipeline_mode = #tpu.pipeline_mode<synchronous>, transform_indices = @transform_1, window_bounds = array<i64: 288, 16>}, {pipeline_mode = #tpu.pipeline_mode<synchronous>, transform_indices = @transform_2, window_bounds = array<i64: 1, 16>}, {transform_indices = @transform_3, window_bounds = array<i64: 8, 16>}]} {
    %c0 = arith.constant 0 : index
    %c0_0 = arith.constant 0 : index
    %0 = vector.load %arg1[%c0, %c0_0] : memref<8x288xbf16, #tpu.memory_space<vmem>>, vector<8x288xbf16>
    %c0_1 = arith.constant 0 : index
    %c0_2 = arith.constant 0 : index
    %1 = vector.load %arg2[%c0_1, %c0_2] : memref<288x16xbf16, #tpu.memory_space<vmem>>, vector<288x16xbf16>
    %cst = arith.constant dense<0.000000e+00> : vector<8x16xf32>
    %2 = tpu.matmul %0, %1, %cst {dimension_numbers = #tpu.dot_dimension_numbers<[1], [0], [0], [1], [0, 0, 1, 1], [], []>} : vector<8x288xbf16>, vector<288x16xbf16>, vector<8x16xf32> -> vector<8x16xf32>
    %c0_3 = arith.constant 0 : index
    %c0_4 = arith.constant 0 : index
    %3 = vector.load %arg3[%c0_3, %c0_4] : memref<1x16xf32, #tpu.memory_space<vmem>>, vector<1x16xf32>
    %4 = vector.broadcast %3 : vector<1x16xf32> to vector<8x16xf32>
    %5 = arith.addf %2, %4 : vector<8x16xf32>
    %cst_5 = arith.constant 0.000000e+00 : f32
    %6 = vector.broadcast %cst_5 : f32 to vector<8x16xf32>
    %7 = arith.maximumf %5, %6 : vector<8x16xf32>
    %8 = arith.truncf %7 : vector<8x16xf32> to vector<8x16xbf16>
    %c0_6 = arith.constant 0 : index
    %c0_7 = arith.constant 0 : index
    %9 = vector.load %arg4[%c0_6, %c0_7] : memref<8x16xbf16, #tpu.memory_space<vmem>>, vector<8x16xbf16>
    tpu.vector_store %arg4[%c0_6, %c0_7], %8 {strides = array<i32>} : memref<8x16xbf16, #tpu.memory_space<vmem>>, vector<8x16xbf16>,
    return
  }
  func.func @transform_0(%arg0: i32) -> (i32, i32) {
    %c0_i32 = arith.constant 0 : i32
    %c0_i32_0 = arith.constant 0 : i32
    return %arg0, %c0_i32 : i32, i32
  }
  func.func @transform_1(%arg0: i32) -> (i32, i32) {
    %c0_i32 = arith.constant 0 : i32
    %c0_i32_0 = arith.constant 0 : i32
    %c0_i32_1 = arith.constant 0 : i32
    return %c0_i32, %c0_i32_0 : i32, i32
  }
  func.func @transform_2(%arg0: i32) -> (i32, i32) {
    %c0_i32 = arith.constant 0 : i32
    %c0_i32_0 = arith.constant 0 : i32
    %c0_i32_1 = arith.constant 0 : i32
    return %c0_i32, %c0_i32_0 : i32, i32
  }
  func.func @transform_3(%arg0: i32) -> (i32, i32) {
    %c0_i32 = arith.constant 0 : i32
    %c0_i32_0 = arith.constant 0 : i32
    return %arg0, %c0_i32 : i32, i32
  }
}

module attributes {stable_mosaic.version = 11 : i64} {
  func.func @_mm_bias_add_kernel(%arg0: i32, %arg1: memref<32x144xbf16, #tpu.memory_space<vmem>>, %arg2: memref<144x16xbf16, #tpu.memory_space<vmem>>, %arg3: memref<1x16xf32, #tpu.memory_space<vmem>>, %arg4: memref<32x16xbf16, #tpu.memory_space<vmem>>, %arg5: memref<32x16xbf16, #tpu.memory_space<vmem>>) attributes {dimension_semantics = [#tpu.dimension_semantics<parallel>], iteration_bounds = array<i64: 1>, scalar_prefetch = 0 : i64, scratch_operands = 0 : i64, tpu.core_type = #tpu.core_type<tc>, window_params = [{transform_indices = @transform_0, window_bounds = array<i64: 32, 144>}, {pipeline_mode = #tpu.pipeline_mode<synchronous>, transform_indices = @transform_1, window_bounds = array<i64: 144, 16>}, {pipeline_mode = #tpu.pipeline_mode<synchronous>, transform_indices = @transform_2, window_bounds = array<i64: 1, 16>}, {transform_indices = @transform_3, window_bounds = array<i64: 32, 16>}, {transform_indices = @transform_4, window_bounds = array<i64: 32, 16>}]} {
    %c0 = arith.constant 0 : index
    %c0_0 = arith.constant 0 : index
    %0 = vector.load %arg1[%c0, %c0_0] : memref<32x144xbf16, #tpu.memory_space<vmem>>, vector<32x144xbf16>
    %c0_1 = arith.constant 0 : index
    %c0_2 = arith.constant 0 : index
    %1 = vector.load %arg2[%c0_1, %c0_2] : memref<144x16xbf16, #tpu.memory_space<vmem>>, vector<144x16xbf16>
    %cst = arith.constant dense<0.000000e+00> : vector<32x16xf32>
    %2 = tpu.matmul %0, %1, %cst {dimension_numbers = #tpu.dot_dimension_numbers<[1], [0], [0], [1], [0, 0, 1, 1], [], []>} : vector<32x144xbf16>, vector<144x16xbf16>, vector<32x16xf32> -> vector<32x16xf32>
    %c0_3 = arith.constant 0 : index
    %c0_4 = arith.constant 0 : index
    %3 = vector.load %arg3[%c0_3, %c0_4] : memref<1x16xf32, #tpu.memory_space<vmem>>, vector<1x16xf32>
    %4 = vector.broadcast %3 : vector<1x16xf32> to vector<32x16xf32>
    %5 = arith.addf %2, %4 : vector<32x16xf32>
    %c0_5 = arith.constant 0 : index
    %c0_6 = arith.constant 0 : index
    %6 = vector.load %arg4[%c0_5, %c0_6] : memref<32x16xbf16, #tpu.memory_space<vmem>>, vector<32x16xbf16>
    %7 = arith.extf %6 : vector<32x16xbf16> to vector<32x16xf32>
    %8 = arith.addf %5, %7 : vector<32x16xf32>
    %cst_7 = arith.constant 0.000000e+00 : f32
    %9 = vector.broadcast %cst_7 : f32 to vector<32x16xf32>
    %10 = arith.maximumf %8, %9 : vector<32x16xf32>
    %11 = arith.truncf %10 : vector<32x16xf32> to vector<32x16xbf16>
    %c0_8 = arith.constant 0 : index
    %c0_9 = arith.constant 0 : index
    %12 = vector.load %arg5[%c0_8, %c0_9] : memref<32x16xbf16, #tpu.memory_space<vmem>>, vector<32x16xbf16>
    tpu.vector_store %arg5[%c0_8, %c0_9], %11 {strides = array<i32>} : memref<32x16xbf16, #tpu.memory_space<vmem>>, vector<32x16xbf16>,
    return
  }
  func.func @transform_0(%arg0: i32) -> (i32, i32) {
    %c0_i32 = arith.constant 0 : i32
    %c0_i32_0 = arith.constant 0 : i32
    return %arg0, %c0_i32 : i32, i32
  }
  func.func @transform_1(%arg0: i32) -> (i32, i32) {
    %c0_i32 = arith.constant 0 : i32
    %c0_i32_0 = arith.constant 0 : i32
    %c0_i32_1 = arith.constant 0 : i32
    return %c0_i32, %c0_i32_0 : i32, i32
  }
  func.func @transform_2(%arg0: i32) -> (i32, i32) {
    %c0_i32 = arith.constant 0 : i32
    %c0_i32_0 = arith.constant 0 : i32
    %c0_i32_1 = arith.constant 0 : i32
    return %c0_i32, %c0_i32_0 : i32, i32
  }
  func.func @transform_3(%arg0: i32) -> (i32, i32) {
    %c0_i32 = arith.constant 0 : i32
    %c0_i32_0 = arith.constant 0 : i32
    return %arg0, %c0_i32 : i32, i32
  }
  func.func @transform_4(%arg0: i32) -> (i32, i32) {
    %c0_i32 = arith.constant 0 : i32
    %c0_i32_0 = arith.constant 0 : i32
    return %arg0, %c0_i32 : i32, i32
  }
}

module attributes {stable_mosaic.version = 11 : i64} {
  func.func @_mm_dual_kernel(%arg0: i32, %arg1: memref<8x144xbf16, #tpu.memory_space<vmem>>, %arg2: memref<144x16xbf16, #tpu.memory_space<vmem>>, %arg3: memref<8x32xbf16, #tpu.memory_space<vmem>>, %arg4: memref<32x16xbf16, #tpu.memory_space<vmem>>, %arg5: memref<1x16xf32, #tpu.memory_space<vmem>>, %arg6: memref<8x16xbf16, #tpu.memory_space<vmem>>) attributes {dimension_semantics = [#tpu.dimension_semantics<parallel>], iteration_bounds = array<i64: 1>, scalar_prefetch = 0 : i64, scratch_operands = 0 : i64, tpu.core_type = #tpu.core_type<tc>, window_params = [{transform_indices = @transform_0, window_bounds = array<i64: 8, 144>}, {pipeline_mode = #tpu.pipeline_mode<synchronous>, transform_indices = @transform_1, window_bounds = array<i64: 144, 16>}, {transform_indices = @transform_2, window_bounds = array<i64: 8, 32>}, {pipeline_mode = #tpu.pipeline_mode<synchronous>, transform_indices = @transform_3, window_bounds = array<i64: 32, 16>}, {pipeline_mode = #tpu.pipeline_mode<synchronous>, transform_indices = @transform_4, window_bounds = array<i64: 1, 16>}, {transform_indices = @transform_5, window_bounds = array<i64: 8, 16>}]} {
    %c0 = arith.constant 0 : index
    %c0_0 = arith.constant 0 : index
    %0 = vector.load %arg1[%c0, %c0_0] : memref<8x144xbf16, #tpu.memory_space<vmem>>, vector<8x144xbf16>
    %c0_1 = arith.constant 0 : index
    %c0_2 = arith.constant 0 : index
    %1 = vector.load %arg2[%c0_1, %c0_2] : memref<144x16xbf16, #tpu.memory_space<vmem>>, vector<144x16xbf16>
    %cst = arith.constant dense<0.000000e+00> : vector<8x16xf32>
    %2 = tpu.matmul %0, %1, %cst {dimension_numbers = #tpu.dot_dimension_numbers<[1], [0], [0], [1], [0, 0, 1, 1], [], []>} : vector<8x144xbf16>, vector<144x16xbf16>, vector<8x16xf32> -> vector<8x16xf32>
    %c0_3 = arith.constant 0 : index
    %c0_4 = arith.constant 0 : index
    %3 = vector.load %arg3[%c0_3, %c0_4] : memref<8x32xbf16, #tpu.memory_space<vmem>>, vector<8x32xbf16>
    %c0_5 = arith.constant 0 : index
    %c0_6 = arith.constant 0 : index
    %4 = vector.load %arg4[%c0_5, %c0_6] : memref<32x16xbf16, #tpu.memory_space<vmem>>, vector<32x16xbf16>
    %cst_7 = arith.constant dense<0.000000e+00> : vector<8x16xf32>
    %5 = tpu.matmul %3, %4, %cst_7 {dimension_numbers = #tpu.dot_dimension_numbers<[1], [0], [0], [1], [0, 0, 1, 1], [], []>} : vector<8x32xbf16>, vector<32x16xbf16>, vector<8x16xf32> -> vector<8x16xf32>
    %6 = arith.addf %2, %5 : vector<8x16xf32>
    %c0_8 = arith.constant 0 : index
    %c0_9 = arith.constant 0 : index
    %7 = vector.load %arg5[%c0_8, %c0_9] : memref<1x16xf32, #tpu.memory_space<vmem>>, vector<1x16xf32>
    %8 = vector.broadcast %7 : vector<1x16xf32> to vector<8x16xf32>
    %9 = arith.addf %6, %8 : vector<8x16xf32>
    %cst_10 = arith.constant 0.000000e+00 : f32
    %10 = vector.broadcast %cst_10 : f32 to vector<8x16xf32>
    %11 = arith.maximumf %9, %10 : vector<8x16xf32>
    %12 = arith.truncf %11 : vector<8x16xf32> to vector<8x16xbf16>
    %c0_11 = arith.constant 0 : index
    %c0_12 = arith.constant 0 : index
    %13 = vector.load %arg6[%c0_11, %c0_12] : memref<8x16xbf16, #tpu.memory_space<vmem>>, vector<8x16xbf16>
    tpu.vector_store %arg6[%c0_11, %c0_12], %12 {strides = array<i32>} : memref<8x16xbf16, #tpu.memory_space<vmem>>, vector<8x16xbf16>,
    return
  }
  func.func @transform_0(%arg0: i32) -> (i32, i32) {
    %c0_i32 = arith.constant 0 : i32
    %c0_i32_0 = arith.constant 0 : i32
    return %arg0, %c0_i32 : i32, i32
  }
  func.func @transform_1(%arg0: i32) -> (i32, i32) {
    %c0_i32 = arith.constant 0 : i32
    %c0_i32_0 = arith.constant 0 : i32
    %c0_i32_1 = arith.constant 0 : i32
    return %c0_i32, %c0_i32_0 : i32, i32
  }
  func.func @transform_2(%arg0: i32) -> (i32, i32) {
    %c0_i32 = arith.constant 0 : i32
    %c0_i32_0 = arith.constant 0 : i32
    return %arg0, %c0_i32 : i32, i32
  }
  func.func @transform_3(%arg0: i32) -> (i32, i32) {
    %c0_i32 = arith.constant 0 : i32
    %c0_i32_0 = arith.constant 0 : i32
    %c0_i32_1 = arith.constant 0 : i32
    return %c0_i32, %c0_i32_0 : i32, i32
  }
  func.func @transform_4(%arg0: i32) -> (i32, i32) {
    %c0_i32 = arith.constant 0 : i32
    %c0_i32_0 = arith.constant 0 : i32
    %c0_i32_1 = arith.constant 0 : i32
    return %c0_i32, %c0_i32_0 : i32, i32
  }
  func.func @transform_5(%arg0: i32) -> (i32, i32) {
    %c0_i32 = arith.constant 0 : i32
    %c0_i32_0 = arith.constant 0 : i32
    return %arg0, %c0_i32 : i32, i32
  }
}

module attributes {stable_mosaic.version = 11 : i64} {
  func.func @_merge_up_kernel(%arg0: i32, %arg1: memref<4x2x64xbf16, #tpu.memory_space<vmem>>, %arg2: memref<4x64xbf16, #tpu.memory_space<vmem>>, %arg3: memref<4x2x64xbf16, #tpu.memory_space<vmem>>) attributes {dimension_semantics = [#tpu.dimension_semantics<parallel>], iteration_bounds = array<i64: 1>, scalar_prefetch = 0 : i64, scratch_operands = 0 : i64, tpu.core_type = #tpu.core_type<tc>, window_params = [{transform_indices = @transform_0, window_bounds = array<i64: 4, 2, 64>}, {transform_indices = @transform_1, window_bounds = array<i64: 4, 64>}, {transform_indices = @transform_2, window_bounds = array<i64: 4, 2, 64>}]} {
    %c0 = arith.constant 0 : index
    %c0_0 = arith.constant 0 : index
    %c0_1 = arith.constant 0 : index
    %0 = vector.load %arg1[%c0, %c0_0, %c0_1] : memref<4x2x64xbf16, #tpu.memory_space<vmem>>, vector<4x2x64xbf16>
    %1 = arith.extf %0 : vector<4x2x64xbf16> to vector<4x2x64xf32>
    %c0_2 = arith.constant 0 : index
    %c0_3 = arith.constant 0 : index
    %2 = vector.load %arg2[%c0_2, %c0_3] : memref<4x64xbf16, #tpu.memory_space<vmem>>, vector<4x64xbf16>
    %3 = arith.extf %2 : vector<4x64xbf16> to vector<4x64xf32>
    %4 = vector.shape_cast %3 : vector<4x64xf32> to vector<4x1x64xf32>
    %5 = vector.broadcast %4 : vector<4x1x64xf32> to vector<4x2x64xf32>
    %6 = arith.addf %1, %5 : vector<4x2x64xf32>
    %7 = arith.truncf %6 : vector<4x2x64xf32> to vector<4x2x64xbf16>
    %c0_4 = arith.constant 0 : index
    %c0_5 = arith.constant 0 : index
    %c0_6 = arith.constant 0 : index
    %8 = vector.load %arg3[%c0_4, %c0_5, %c0_6] : memref<4x2x64xbf16, #tpu.memory_space<vmem>>, vector<4x2x64xbf16>
    tpu.vector_store %arg3[%c0_4, %c0_5, %c0_6], %7 {strides = array<i32>} : memref<4x2x64xbf16, #tpu.memory_space<vmem>>, vector<4x2x64xbf16>,
    return
  }
  func.func @transform_0(%arg0: i32) -> (i32, i32, i32) {
    %c0_i32 = arith.constant 0 : i32
    %c0_i32_0 = arith.constant 0 : i32
    %c0_i32_1 = arith.constant 0 : i32
    return %arg0, %c0_i32, %c0_i32_0 : i32, i32, i32
  }
  func.func @transform_1(%arg0: i32) -> (i32, i32) {
    %c0_i32 = arith.constant 0 : i32
    %c0_i32_0 = arith.constant 0 : i32
    return %arg0, %c0_i32 : i32, i32
  }
  func.func @transform_2(%arg0: i32) -> (i32, i32, i32) {
    %c0_i32 = arith.constant 0 : i32
    %c0_i32_0 = arith.constant 0 : i32
    %c0_i32_1 = arith.constant 0 : i32
    return %arg0, %c0_i32, %c0_i32_0 : i32, i32, i32
  }
}

module attributes {stable_mosaic.version = 11 : i64} {
  func.func @_mm_bias_kernel(%arg0: i32, %arg1: memref<64x144xbf16, #tpu.memory_space<vmem>>, %arg2: memref<144x16xbf16, #tpu.memory_space<vmem>>, %arg3: memref<1x16xf32, #tpu.memory_space<vmem>>, %arg4: memref<64x16xbf16, #tpu.memory_space<vmem>>) attributes {dimension_semantics = [#tpu.dimension_semantics<parallel>], iteration_bounds = array<i64: 2>, scalar_prefetch = 0 : i64, scratch_operands = 0 : i64, tpu.core_type = #tpu.core_type<tc>, window_params = [{transform_indices = @transform_0, window_bounds = array<i64: 64, 144>}, {pipeline_mode = #tpu.pipeline_mode<synchronous>, transform_indices = @transform_1, window_bounds = array<i64: 144, 16>}, {pipeline_mode = #tpu.pipeline_mode<synchronous>, transform_indices = @transform_2, window_bounds = array<i64: 1, 16>}, {transform_indices = @transform_3, window_bounds = array<i64: 64, 16>}]} {
    %c0 = arith.constant 0 : index
    %c0_0 = arith.constant 0 : index
    %0 = vector.load %arg1[%c0, %c0_0] : memref<64x144xbf16, #tpu.memory_space<vmem>>, vector<64x144xbf16>
    %c0_1 = arith.constant 0 : index
    %c0_2 = arith.constant 0 : index
    %1 = vector.load %arg2[%c0_1, %c0_2] : memref<144x16xbf16, #tpu.memory_space<vmem>>, vector<144x16xbf16>
    %cst = arith.constant dense<0.000000e+00> : vector<64x16xf32>
    %2 = tpu.matmul %0, %1, %cst {dimension_numbers = #tpu.dot_dimension_numbers<[1], [0], [0], [1], [0, 0, 1, 1], [], []>} : vector<64x144xbf16>, vector<144x16xbf16>, vector<64x16xf32> -> vector<64x16xf32>
    %c0_3 = arith.constant 0 : index
    %c0_4 = arith.constant 0 : index
    %3 = vector.load %arg3[%c0_3, %c0_4] : memref<1x16xf32, #tpu.memory_space<vmem>>, vector<1x16xf32>
    %4 = vector.broadcast %3 : vector<1x16xf32> to vector<64x16xf32>
    %5 = arith.addf %2, %4 : vector<64x16xf32>
    %cst_5 = arith.constant 0.000000e+00 : f32
    %6 = vector.broadcast %cst_5 : f32 to vector<64x16xf32>
    %7 = arith.maximumf %5, %6 : vector<64x16xf32>
    %8 = arith.truncf %7 : vector<64x16xf32> to vector<64x16xbf16>
    %c0_6 = arith.constant 0 : index
    %c0_7 = arith.constant 0 : index
    %9 = vector.load %arg4[%c0_6, %c0_7] : memref<64x16xbf16, #tpu.memory_space<vmem>>, vector<64x16xbf16>
    tpu.vector_store %arg4[%c0_6, %c0_7], %8 {strides = array<i32>} : memref<64x16xbf16, #tpu.memory_space<vmem>>, vector<64x16xbf16>,
    return
  }
  func.func @transform_0(%arg0: i32) -> (i32, i32) {
    %c0_i32 = arith.constant 0 : i32
    %c0_i32_0 = arith.constant 0 : i32
    return %arg0, %c0_i32 : i32, i32
  }
  func.func @transform_1(%arg0: i32) -> (i32, i32) {
    %c0_i32 = arith.constant 0 : i32
    %c0_i32_0 = arith.constant 0 : i32
    %c0_i32_1 = arith.constant 0 : i32
    return %c0_i32, %c0_i32_0 : i32, i32
  }
  func.func @transform_2(%arg0: i32) -> (i32, i32) {
    %c0_i32 = arith.constant 0 : i32
    %c0_i32_0 = arith.constant 0 : i32
    %c0_i32_1 = arith.constant 0 : i32
    return %c0_i32, %c0_i32_0 : i32, i32
  }
  func.func @transform_3(%arg0: i32) -> (i32, i32) {
    %c0_i32 = arith.constant 0 : i32
    %c0_i32_0 = arith.constant 0 : i32
    return %arg0, %c0_i32 : i32, i32
  }
}

module attributes {stable_mosaic.version = 11 : i64} {
  func.func @_mm_bias_add_kernel(%arg0: i32, %arg1: memref<64x144xbf16, #tpu.memory_space<vmem>>, %arg2: memref<144x16xbf16, #tpu.memory_space<vmem>>, %arg3: memref<1x16xf32, #tpu.memory_space<vmem>>, %arg4: memref<64x16xbf16, #tpu.memory_space<vmem>>, %arg5: memref<64x16xbf16, #tpu.memory_space<vmem>>) attributes {dimension_semantics = [#tpu.dimension_semantics<parallel>], iteration_bounds = array<i64: 2>, scalar_prefetch = 0 : i64, scratch_operands = 0 : i64, tpu.core_type = #tpu.core_type<tc>, window_params = [{transform_indices = @transform_0, window_bounds = array<i64: 64, 144>}, {pipeline_mode = #tpu.pipeline_mode<synchronous>, transform_indices = @transform_1, window_bounds = array<i64: 144, 16>}, {pipeline_mode = #tpu.pipeline_mode<synchronous>, transform_indices = @transform_2, window_bounds = array<i64: 1, 16>}, {transform_indices = @transform_3, window_bounds = array<i64: 64, 16>}, {transform_indices = @transform_4, window_bounds = array<i64: 64, 16>}]} {
    %c0 = arith.constant 0 : index
    %c0_0 = arith.constant 0 : index
    %0 = vector.load %arg1[%c0, %c0_0] : memref<64x144xbf16, #tpu.memory_space<vmem>>, vector<64x144xbf16>
    %c0_1 = arith.constant 0 : index
    %c0_2 = arith.constant 0 : index
    %1 = vector.load %arg2[%c0_1, %c0_2] : memref<144x16xbf16, #tpu.memory_space<vmem>>, vector<144x16xbf16>
    %cst = arith.constant dense<0.000000e+00> : vector<64x16xf32>
    %2 = tpu.matmul %0, %1, %cst {dimension_numbers = #tpu.dot_dimension_numbers<[1], [0], [0], [1], [0, 0, 1, 1], [], []>} : vector<64x144xbf16>, vector<144x16xbf16>, vector<64x16xf32> -> vector<64x16xf32>
    %c0_3 = arith.constant 0 : index
    %c0_4 = arith.constant 0 : index
    %3 = vector.load %arg3[%c0_3, %c0_4] : memref<1x16xf32, #tpu.memory_space<vmem>>, vector<1x16xf32>
    %4 = vector.broadcast %3 : vector<1x16xf32> to vector<64x16xf32>
    %5 = arith.addf %2, %4 : vector<64x16xf32>
    %c0_5 = arith.constant 0 : index
    %c0_6 = arith.constant 0 : index
    %6 = vector.load %arg4[%c0_5, %c0_6] : memref<64x16xbf16, #tpu.memory_space<vmem>>, vector<64x16xbf16>
    %7 = arith.extf %6 : vector<64x16xbf16> to vector<64x16xf32>
    %8 = arith.addf %5, %7 : vector<64x16xf32>
    %cst_7 = arith.constant 0.000000e+00 : f32
    %9 = vector.broadcast %cst_7 : f32 to vector<64x16xf32>
    %10 = arith.maximumf %8, %9 : vector<64x16xf32>
    %11 = arith.truncf %10 : vector<64x16xf32> to vector<64x16xbf16>
    %c0_8 = arith.constant 0 : index
    %c0_9 = arith.constant 0 : index
    %12 = vector.load %arg5[%c0_8, %c0_9] : memref<64x16xbf16, #tpu.memory_space<vmem>>, vector<64x16xbf16>
    tpu.vector_store %arg5[%c0_8, %c0_9], %11 {strides = array<i32>} : memref<64x16xbf16, #tpu.memory_space<vmem>>, vector<64x16xbf16>,
    return
  }
  func.func @transform_0(%arg0: i32) -> (i32, i32) {
    %c0_i32 = arith.constant 0 : i32
    %c0_i32_0 = arith.constant 0 : i32
    return %arg0, %c0_i32 : i32, i32
  }
  func.func @transform_1(%arg0: i32) -> (i32, i32) {
    %c0_i32 = arith.constant 0 : i32
    %c0_i32_0 = arith.constant 0 : i32
    %c0_i32_1 = arith.constant 0 : i32
    return %c0_i32, %c0_i32_0 : i32, i32
  }
  func.func @transform_2(%arg0: i32) -> (i32, i32) {
    %c0_i32 = arith.constant 0 : i32
    %c0_i32_0 = arith.constant 0 : i32
    %c0_i32_1 = arith.constant 0 : i32
    return %c0_i32, %c0_i32_0 : i32, i32
  }
  func.func @transform_3(%arg0: i32) -> (i32, i32) {
    %c0_i32 = arith.constant 0 : i32
    %c0_i32_0 = arith.constant 0 : i32
    return %arg0, %c0_i32 : i32, i32
  }
  func.func @transform_4(%arg0: i32) -> (i32, i32) {
    %c0_i32 = arith.constant 0 : i32
    %c0_i32_0 = arith.constant 0 : i32
    return %arg0, %c0_i32 : i32, i32
  }
}

module attributes {stable_mosaic.version = 11 : i64} {
  func.func @_merge_up_kernel(%arg0: i32, %arg1: memref<8x2x128xbf16, #tpu.memory_space<vmem>>, %arg2: memref<8x128xbf16, #tpu.memory_space<vmem>>, %arg3: memref<8x2x128xbf16, #tpu.memory_space<vmem>>) attributes {dimension_semantics = [#tpu.dimension_semantics<parallel>], iteration_bounds = array<i64: 1>, scalar_prefetch = 0 : i64, scratch_operands = 0 : i64, tpu.core_type = #tpu.core_type<tc>, window_params = [{transform_indices = @transform_0, window_bounds = array<i64: 8, 2, 128>}, {transform_indices = @transform_1, window_bounds = array<i64: 8, 128>}, {transform_indices = @transform_2, window_bounds = array<i64: 8, 2, 128>}]} {
    %c0 = arith.constant 0 : index
    %c0_0 = arith.constant 0 : index
    %c0_1 = arith.constant 0 : index
    %0 = vector.load %arg1[%c0, %c0_0, %c0_1] : memref<8x2x128xbf16, #tpu.memory_space<vmem>>, vector<8x2x128xbf16>
    %1 = arith.extf %0 : vector<8x2x128xbf16> to vector<8x2x128xf32>
    %c0_2 = arith.constant 0 : index
    %c0_3 = arith.constant 0 : index
    %2 = vector.load %arg2[%c0_2, %c0_3] : memref<8x128xbf16, #tpu.memory_space<vmem>>, vector<8x128xbf16>
    %3 = arith.extf %2 : vector<8x128xbf16> to vector<8x128xf32>
    %4 = vector.shape_cast %3 : vector<8x128xf32> to vector<8x1x128xf32>
    %5 = vector.broadcast %4 : vector<8x1x128xf32> to vector<8x2x128xf32>
    %6 = arith.addf %1, %5 : vector<8x2x128xf32>
    %7 = arith.truncf %6 : vector<8x2x128xf32> to vector<8x2x128xbf16>
    %c0_4 = arith.constant 0 : index
    %c0_5 = arith.constant 0 : index
    %c0_6 = arith.constant 0 : index
    %8 = vector.load %arg3[%c0_4, %c0_5, %c0_6] : memref<8x2x128xbf16, #tpu.memory_space<vmem>>, vector<8x2x128xbf16>
    tpu.vector_store %arg3[%c0_4, %c0_5, %c0_6], %7 {strides = array<i32>} : memref<8x2x128xbf16, #tpu.memory_space<vmem>>, vector<8x2x128xbf16>,
    return
  }
  func.func @transform_0(%arg0: i32) -> (i32, i32, i32) {
    %c0_i32 = arith.constant 0 : i32
    %c0_i32_0 = arith.constant 0 : i32
    %c0_i32_1 = arith.constant 0 : i32
    return %arg0, %c0_i32, %c0_i32_0 : i32, i32, i32
  }
  func.func @transform_1(%arg0: i32) -> (i32, i32) {
    %c0_i32 = arith.constant 0 : i32
    %c0_i32_0 = arith.constant 0 : i32
    return %arg0, %c0_i32 : i32, i32
  }
  func.func @transform_2(%arg0: i32) -> (i32, i32, i32) {
    %c0_i32 = arith.constant 0 : i32
    %c0_i32_0 = arith.constant 0 : i32
    %c0_i32_1 = arith.constant 0 : i32
    return %arg0, %c0_i32, %c0_i32_0 : i32, i32, i32
  }
}

module attributes {stable_mosaic.version = 11 : i64} {
  func.func @_mm_dual_kernel(%arg0: i32, %arg1: memref<64x16xbf16, #tpu.memory_space<vmem>>, %arg2: memref<16x16xbf16, #tpu.memory_space<vmem>>, %arg3: memref<64x16xbf16, #tpu.memory_space<vmem>>, %arg4: memref<16x16xbf16, #tpu.memory_space<vmem>>, %arg5: memref<1x16xf32, #tpu.memory_space<vmem>>, %arg6: memref<64x16xbf16, #tpu.memory_space<vmem>>) attributes {dimension_semantics = [#tpu.dimension_semantics<parallel>], iteration_bounds = array<i64: 2>, scalar_prefetch = 0 : i64, scratch_operands = 0 : i64, tpu.core_type = #tpu.core_type<tc>, window_params = [{transform_indices = @transform_0, window_bounds = array<i64: 64, 16>}, {pipeline_mode = #tpu.pipeline_mode<synchronous>, transform_indices = @transform_1, window_bounds = array<i64: 16, 16>}, {transform_indices = @transform_2, window_bounds = array<i64: 64, 16>}, {pipeline_mode = #tpu.pipeline_mode<synchronous>, transform_indices = @transform_3, window_bounds = array<i64: 16, 16>}, {pipeline_mode = #tpu.pipeline_mode<synchronous>, transform_indices = @transform_4, window_bounds = array<i64: 1, 16>}, {transform_indices = @transform_5, window_bounds = array<i64: 64, 16>}]} {
    %c0 = arith.constant 0 : index
    %c0_0 = arith.constant 0 : index
    %0 = vector.load %arg1[%c0, %c0_0] : memref<64x16xbf16, #tpu.memory_space<vmem>>, vector<64x16xbf16>
    %c0_1 = arith.constant 0 : index
    %c0_2 = arith.constant 0 : index
    %1 = vector.load %arg2[%c0_1, %c0_2] : memref<16x16xbf16, #tpu.memory_space<vmem>>, vector<16x16xbf16>
    %cst = arith.constant dense<0.000000e+00> : vector<64x16xf32>
    %2 = tpu.matmul %0, %1, %cst {dimension_numbers = #tpu.dot_dimension_numbers<[1], [0], [0], [1], [0, 0, 1, 1], [], []>} : vector<64x16xbf16>, vector<16x16xbf16>, vector<64x16xf32> -> vector<64x16xf32>
    %c0_3 = arith.constant 0 : index
    %c0_4 = arith.constant 0 : index
    %3 = vector.load %arg3[%c0_3, %c0_4] : memref<64x16xbf16, #tpu.memory_space<vmem>>, vector<64x16xbf16>
    %c0_5 = arith.constant 0 : index
    %c0_6 = arith.constant 0 : index
    %4 = vector.load %arg4[%c0_5, %c0_6] : memref<16x16xbf16, #tpu.memory_space<vmem>>, vector<16x16xbf16>
    %cst_7 = arith.constant dense<0.000000e+00> : vector<64x16xf32>
    %5 = tpu.matmul %3, %4, %cst_7 {dimension_numbers = #tpu.dot_dimension_numbers<[1], [0], [0], [1], [0, 0, 1, 1], [], []>} : vector<64x16xbf16>, vector<16x16xbf16>, vector<64x16xf32> -> vector<64x16xf32>
    %6 = arith.addf %2, %5 : vector<64x16xf32>
    %c0_8 = arith.constant 0 : index
    %c0_9 = arith.constant 0 : index
    %7 = vector.load %arg5[%c0_8, %c0_9] : memref<1x16xf32, #tpu.memory_space<vmem>>, vector<1x16xf32>
    %8 = vector.broadcast %7 : vector<1x16xf32> to vector<64x16xf32>
    %9 = arith.addf %6, %8 : vector<64x16xf32>
    %cst_10 = arith.constant 0.000000e+00 : f32
    %10 = vector.broadcast %cst_10 : f32 to vector<64x16xf32>
    %11 = arith.maximumf %9, %10 : vector<64x16xf32>
    %12 = arith.truncf %11 : vector<64x16xf32> to vector<64x16xbf16>
    %c0_11 = arith.constant 0 : index
    %c0_12 = arith.constant 0 : index
    %13 = vector.load %arg6[%c0_11, %c0_12] : memref<64x16xbf16, #tpu.memory_space<vmem>>, vector<64x16xbf16>
    tpu.vector_store %arg6[%c0_11, %c0_12], %12 {strides = array<i32>} : memref<64x16xbf16, #tpu.memory_space<vmem>>, vector<64x16xbf16>,
    return
  }
  func.func @transform_0(%arg0: i32) -> (i32, i32) {
    %c0_i32 = arith.constant 0 : i32
    %c0_i32_0 = arith.constant 0 : i32
    return %arg0, %c0_i32 : i32, i32
  }
  func.func @transform_1(%arg0: i32) -> (i32, i32) {
    %c0_i32 = arith.constant 0 : i32
    %c0_i32_0 = arith.constant 0 : i32
    %c0_i32_1 = arith.constant 0 : i32
    return %c0_i32, %c0_i32_0 : i32, i32
  }
  func.func @transform_2(%arg0: i32) -> (i32, i32) {
    %c0_i32 = arith.constant 0 : i32
    %c0_i32_0 = arith.constant 0 : i32
    return %arg0, %c0_i32 : i32, i32
  }
  func.func @transform_3(%arg0: i32) -> (i32, i32) {
    %c0_i32 = arith.constant 0 : i32
    %c0_i32_0 = arith.constant 0 : i32
    %c0_i32_1 = arith.constant 0 : i32
    return %c0_i32, %c0_i32_0 : i32, i32
  }
  func.func @transform_4(%arg0: i32) -> (i32, i32) {
    %c0_i32 = arith.constant 0 : i32
    %c0_i32_0 = arith.constant 0 : i32
    %c0_i32_1 = arith.constant 0 : i32
    return %c0_i32, %c0_i32_0 : i32, i32
  }
  func.func @transform_5(%arg0: i32) -> (i32, i32) {
    %c0_i32 = arith.constant 0 : i32
    %c0_i32_0 = arith.constant 0 : i32
    return %arg0, %c0_i32 : i32, i32
  }
}

module attributes {stable_mosaic.version = 11 : i64} {
  func.func @_mm_heads_kernel(%arg0: i32, %arg1: memref<64x144xbf16, #tpu.memory_space<vmem>>, %arg2: memref<144x48xbf16, #tpu.memory_space<vmem>>, %arg3: memref<1x48xf32, #tpu.memory_space<vmem>>, %arg4: memref<48x9xbf16, #tpu.memory_space<vmem>>, %arg5: memref<1x9xf32, #tpu.memory_space<vmem>>, %arg6: memref<64x9xf32, #tpu.memory_space<vmem>>) attributes {dimension_semantics = [#tpu.dimension_semantics<parallel>], iteration_bounds = array<i64: 2>, scalar_prefetch = 0 : i64, scratch_operands = 0 : i64, tpu.core_type = #tpu.core_type<tc>, window_params = [{transform_indices = @transform_0, window_bounds = array<i64: 64, 144>}, {pipeline_mode = #tpu.pipeline_mode<synchronous>, transform_indices = @transform_1, window_bounds = array<i64: 144, 48>}, {pipeline_mode = #tpu.pipeline_mode<synchronous>, transform_indices = @transform_2, window_bounds = array<i64: 1, 48>}, {pipeline_mode = #tpu.pipeline_mode<synchronous>, transform_indices = @transform_3, window_bounds = array<i64: 48, 9>}, {pipeline_mode = #tpu.pipeline_mode<synchronous>, transform_indices = @transform_4, window_bounds = array<i64: 1, 9>}, {transform_indices = @transform_5, window_bounds = array<i64: 64, 9>}]} {
    %c0 = arith.constant 0 : index
    %c0_0 = arith.constant 0 : index
    %0 = vector.load %arg1[%c0, %c0_0] : memref<64x144xbf16, #tpu.memory_space<vmem>>, vector<64x144xbf16>
    %c0_1 = arith.constant 0 : index
    %c0_2 = arith.constant 0 : index
    %1 = vector.load %arg2[%c0_1, %c0_2] : memref<144x48xbf16, #tpu.memory_space<vmem>>, vector<144x48xbf16>
    %cst = arith.constant dense<0.000000e+00> : vector<64x48xf32>
    %2 = tpu.matmul %0, %1, %cst {dimension_numbers = #tpu.dot_dimension_numbers<[1], [0], [0], [1], [0, 0, 1, 1], [], []>} : vector<64x144xbf16>, vector<144x48xbf16>, vector<64x48xf32> -> vector<64x48xf32>
    %c0_3 = arith.constant 0 : index
    %c0_4 = arith.constant 0 : index
    %3 = vector.load %arg3[%c0_3, %c0_4] : memref<1x48xf32, #tpu.memory_space<vmem>>, vector<1x48xf32>
    %4 = vector.broadcast %3 : vector<1x48xf32> to vector<64x48xf32>
    %5 = arith.addf %2, %4 : vector<64x48xf32>
    %cst_5 = arith.constant 0.000000e+00 : f32
    %6 = vector.broadcast %cst_5 : f32 to vector<64x48xf32>
    %7 = arith.maximumf %5, %6 : vector<64x48xf32>
    %8 = arith.truncf %7 : vector<64x48xf32> to vector<64x48xbf16>
    %c0_6 = arith.constant 0 : index
    %c0_7 = arith.constant 0 : index
    %9 = vector.load %arg4[%c0_6, %c0_7] : memref<48x9xbf16, #tpu.memory_space<vmem>>, vector<48x9xbf16>
    %cst_8 = arith.constant dense<0.000000e+00> : vector<64x9xf32>
    %10 = tpu.matmul %8, %9, %cst_8 {dimension_numbers = #tpu.dot_dimension_numbers<[1], [0], [0], [1], [0, 0, 1, 1], [], []>} : vector<64x48xbf16>, vector<48x9xbf16>, vector<64x9xf32> -> vector<64x9xf32>
    %c0_9 = arith.constant 0 : index
    %c0_10 = arith.constant 0 : index
    %11 = vector.load %arg5[%c0_9, %c0_10] : memref<1x9xf32, #tpu.memory_space<vmem>>, vector<1x9xf32>
    %12 = vector.broadcast %11 : vector<1x9xf32> to vector<64x9xf32>
    %13 = arith.addf %10, %12 : vector<64x9xf32>
    %c0_11 = arith.constant 0 : index
    %c0_12 = arith.constant 0 : index
    %14 = vector.load %arg6[%c0_11, %c0_12] : memref<64x9xf32, #tpu.memory_space<vmem>>, vector<64x9xf32>
    tpu.vector_store %arg6[%c0_11, %c0_12], %13 {strides = array<i32>} : memref<64x9xf32, #tpu.memory_space<vmem>>, vector<64x9xf32>,
    return
  }
  func.func @transform_0(%arg0: i32) -> (i32, i32) {
    %c0_i32 = arith.constant 0 : i32
    %c0_i32_0 = arith.constant 0 : i32
    return %arg0, %c0_i32 : i32, i32
  }
  func.func @transform_1(%arg0: i32) -> (i32, i32) {
    %c0_i32 = arith.constant 0 : i32
    %c0_i32_0 = arith.constant 0 : i32
    %c0_i32_1 = arith.constant 0 : i32
    return %c0_i32, %c0_i32_0 : i32, i32
  }
  func.func @transform_2(%arg0: i32) -> (i32, i32) {
    %c0_i32 = arith.constant 0 : i32
    %c0_i32_0 = arith.constant 0 : i32
    %c0_i32_1 = arith.constant 0 : i32
    return %c0_i32, %c0_i32_0 : i32, i32
  }
  func.func @transform_3(%arg0: i32) -> (i32, i32) {
    %c0_i32 = arith.constant 0 : i32
    %c0_i32_0 = arith.constant 0 : i32
    %c0_i32_1 = arith.constant 0 : i32
    return %c0_i32, %c0_i32_0 : i32, i32
  }
  func.func @transform_4(%arg0: i32) -> (i32, i32) {
    %c0_i32 = arith.constant 0 : i32
    %c0_i32_0 = arith.constant 0 : i32
    %c0_i32_1 = arith.constant 0 : i32
    return %c0_i32, %c0_i32_0 : i32, i32
  }
  func.func @transform_5(%arg0: i32) -> (i32, i32) {
    %c0_i32 = arith.constant 0 : i32
    %c0_i32_0 = arith.constant 0 : i32
    return %arg0, %c0_i32 : i32, i32
  }
}

</mosaic_0001>

<bundles_post_ra>
// kernel: _lambda_.47
= control target key start
LH: loop header
LB: loop body
LE: loop exit
PB: predicated region body
PF: predicated region fallthrough
CT: control target
= control target key end

     0   :  { %s477_s12 = smov 0   ;;  %s533_s0 = inlined_call_operand.vmem [shape: bf16[128,72], index: 0, kind: input, shape index: {}]   ;;  %s534_s1 = inlined_call_operand.vmem [shape: bf16[72,16], index: 1, kind: input, shape index: {}]   ;;  %s535_s2 = inlined_call_operand.vmem [shape: f32[1,16], index: 2, kind: input, shape index: {}]   ;;  %s536_s3 = inlined_call_operand.vmem [shape: bf16[128,16], index: 3, kind: output, shape index: {}]  }
   0x1 LB: > { %s370_s13 = sadd.s32 4294967295, %s455_s12   ;;  %p374_p0 = scmp.ge.s32.totalorder %s455_s12, 1  ;;  %s455_s12 = sphi %s477_s12, %s13_s12  }
   0x2   : > { %p138_p1 = scmp.lt.s32.totalorder %s455_s12, 3 }
   0x4   : > { %p139_p2 = pnand %p374_p0, %p138_p1 }
   0x5   : > { %s375_s16 = sshll.u32 (!%p139_p2), %s370_s13, 3 }
   0x6   : > { %142 = sbr.rel (%p139_p2) target bundleno = 185 (0xb9), region = 32  ;;  %p163_p3 = scmp.lt.s32.totalorder (!%p139_p2), %s375_s16, 15 }
   0xb   : > { %v191_v0 = vld [vmem:[%s534_s1 + $0x20] sm:$0xf]  ;;  %vm256_vm0 = vcmask 1043456   ;;  %v424_v4 = vld [vmem:[%s534_s1 + $0x18] sm:$0xff]  ;;  %v423_v5 = vld [vmem:[%s534_s1 + $0x10] sm:$0xff]  ;;  %s538_s16 = smov (!%p163_p3, %s375_s16), 15 }
   0xc   : > { %v233_v1 = vunpack.c.l.b16 %v191_v0  ;;  %v422_v6 = vld [vmem:[%s534_s1 + $0x8] sm:$0xff]  ;;  %s376_s23 = sshll.u32 %s538_s16, 2  ;;  %v421_v7 = vld [vmem:[%s534_s1] sm:$0xff]  ;;  %vm243_vm1 = vcmask 588800   ;;  %vm305_vm2 = vcmask 125952  }
   0xd   : > { %s166_s28 = scalar_lea.vmem %s533_s0, %s376_s23  ;;  %v448_v12 = vld [vmem:[%s535_s2] ss:$0 sm:$0xff]  ;;  %s512_s6 = scalar_lea.vmem %s536_s3, %s376_s23 }
   0xe   : > { %v238_v2 = vpack.c.b16 %v233_v1, %v233_v1  ;;  %v417_v8 = vld [vmem:[%s166_s28] sm:$0xff]  ;;  %v418_v9 = vld [vmem:[%s166_s28 + $0x8] sm:$0xff]  ;;  %v419_v10 = vld [vmem:[%s166_s28 + $0x10] sm:$0xff] }
   0xf   : > { %v420_v11 = vld [vmem:[%s166_s28 + $0x18] sm:$0xff] }
  0x10   : > { %v258_v3 = vsel %vm256_vm0, %v238_v2, 0 }
  0x11   : > { %263 = vmatpush.bf16.msra.mxu0 %v258_v3  ;;  %425 = vmatpush.bf16.msra.mxu1 %v258_v3 }
  0x12   : > { %426 = vmatpush.bf16.msra.mxu2 %v258_v3  ;;  %427 = vmatpush.bf16.msra.mxu3 %v258_v3 }
  0x15   : > { %264 = vmatpush.bf16.msra.mxu0 %v424_v4  ;;  %428 = vmatpush.bf16.msra.mxu1 %v424_v4 }
  0x16   : > { %429 = vmatpush.bf16.msra.mxu2 %v424_v4  ;;  %430 = vmatpush.bf16.msra.mxu3 %v424_v4 }
  0x19   : > { %265 = vmatpush.bf16.msra.mxu0 %v423_v5  ;;  %431 = vmatpush.bf16.msra.mxu1 %v423_v5 }
  0x1a   : > { %432 = vmatpush.bf16.msra.mxu2 %v423_v5  ;;  %433 = vmatpush.bf16.msra.mxu3 %v423_v5 }
  0x1d   : > { %266 = vmatpush.bf16.msra.mxu0 %v422_v6  ;;  %434 = vmatpush.bf16.msra.mxu1 %v422_v6 }
  0x1e   : > { %435 = vmatpush.bf16.msra.mxu2 %v422_v6  ;;  %436 = vmatpush.bf16.msra.mxu3 %v422_v6 }
  0x21   : > { %267 = vmatpush.bf16.msra.mxu0 %v421_v7  ;;  %437 = vmatpush.bf16.msra.mxu1 %v421_v7 }
  0x22   : > { %438 = vmatpush.bf16.msra.mxu2 %v421_v7  ;;  %439 = vmatpush.bf16.msra.mxu3 %v421_v7 }
  0x24   : > { %411 = vmatmul.msk.bf16.vlgmr.msra.gmra.mxu0 %vm243_vm1, %v417_v8  ;;  %412 = vmatmul.msk.bf16.vlgmr.msra.gmra.mxu1 %vm243_vm1, %v418_v9 }
  0x25   : > { %413 = vmatmul.msk.bf16.vlgmr.msra.gmra.mxu2 %vm243_vm1, %v419_v10  ;;  %414 = vmatmul.msk.bf16.vlgmr.msra.gmra.mxu3 %vm243_vm1, %v420_v11 }
  0xa1   : > { %v269_v13 = vpop.f32.mrf.mxu0  ;;  %v274_v14 = vpop.f32.mrf.mxu1 }
  0xa2   : > { %v270_v15 = vadd.f32 %v448_v12, %v269_v13  ;;  %v275_v16 = vadd.f32 %v448_v12, %v274_v14 }
  0xa4   : > { %v289_v17 = vmax.f32 %v270_v15, 0.0  ;;  %v291_v18 = vmax.f32 %v275_v16, 0.0 }
  0xa6   : > { %v297_v19 = vpack.c.bf16 %v289_v17, %v289_v17  ;;  %v299_v20 = vpack.c.bf16 %v291_v18, %v291_v18 }
  0xa8   : > { %306 = vst.msk [vmem:[%s512_s6] sm:$0xf] %vm305_vm2, %v297_v19  ;;  %v279_v21 = vpop.f32.mrf.mxu2  ;;  %v284_v22 = vpop.f32.mrf.mxu3 }
  0xa9   : > { %308 = vst.msk [vmem:[%s512_s6 + $0x8] sm:$0xf] %vm305_vm2, %v299_v20  ;;  %v280_v23 = vadd.f32 %v448_v12, %v279_v21  ;;  %v285_v24 = vadd.f32 %v448_v12, %v284_v22  ;;  %v271_v25 = vpop.f32.mrf.mxu0  ;;  %v276_v26 = vpop.f32.mrf.mxu1 }
  0xaa   : > { %v272_v27 = vadd.f32 %v448_v12, %v271_v25  ;;  %v277_v28 = vadd.f32 %v448_v12, %v276_v26 }
  0xab   : > { %v293_v29 = vmax.f32 %v280_v23, 0.0  ;;  %v295_v30 = vmax.f32 %v285_v24, 0.0 }
  0xac   : > { %v290_v31 = vmax.f32 %v272_v27, 0.0  ;;  %v292_v32 = vmax.f32 %v277_v28, 0.0 }
  0xad   : > { %v301_v33 = vpack.c.bf16 %v293_v29, %v293_v29  ;;  %v303_v34 = vpack.c.bf16 %v295_v30, %v295_v30 }
  0xae   : > { %v298_v35 = vpack.c.bf16 %v290_v31, %v290_v31  ;;  %v300_v36 = vpack.c.bf16 %v292_v32, %v292_v32 }
  0xaf   : > { %310 = vst.msk [vmem:[%s512_s6 + $0x10] sm:$0xf] %vm305_vm2, %v301_v33 }
  0xb0   : > { %312 = vst.msk [vmem:[%s512_s6 + $0x18] sm:$0xf] %vm305_vm2, %v303_v34  ;;  %v281_v37 = vpop.f32.mrf.mxu2  ;;  %v286_v38 = vpop.f32.mrf.mxu3 }
  0xb1   : > { %307 = vst.msk [vmem:[%s512_s6 + $0x4] sm:$0xf] %vm305_vm2, %v298_v35  ;;  %v282_v39 = vadd.f32 %v448_v12, %v281_v37  ;;  %v287_v40 = vadd.f32 %v448_v12, %v286_v38 }
  0xb2   : > { %309 = vst.msk [vmem:[%s512_s6 + $0xc] sm:$0xf] %vm305_vm2, %v300_v36 }
  0xb3   : > { %v294_v41 = vmax.f32 %v282_v39, 0.0  ;;  %v296_v42 = vmax.f32 %v287_v40, 0.0 }
  0xb5   : > { %v302_v43 = vpack.c.bf16 %v294_v41, %v294_v41  ;;  %v304_v44 = vpack.c.bf16 %v296_v42, %v296_v42 }
  0xb7   : > { %311 = vst.msk [vmem:[%s512_s6 + $0x14] sm:$0xf] %vm305_vm2, %v302_v43 }
  0xb8   : > { %313 = vst.msk [vmem:[%s512_s6 + $0x1c] sm:$0xf] %vm305_vm2, %v304_v44 }
  0xb9 PF: > { %s13_s12 = sadd.s32 1, %s455_s12  }
  0xba   : > { %p10_p4 = scmp.ge.s32.totalorder %s13_s12, 4  }
  0xbc   :  { %12 = sbr.rel (!%p10_p4) target bundleno = 1 (0x1), region = 62 }

// kernel: _lambda_.46
= control target key start
LH: loop header
LB: loop body
LE: loop exit
PB: predicated region body
PF: predicated region fallthrough
CT: control target
= control target key end

     0   :  { %s1104_s12 = smov 0   ;;  %s1346_s0 = inlined_call_operand.vmem [shape: bf16[512,147], index: 0, kind: input, shape index: {}]   ;;  %s1347_s1 = inlined_call_operand.vmem [shape: bf16[147,8], index: 1, kind: input, shape index: {}]   ;;  %s1348_s2 = inlined_call_operand.vmem [shape: f32[1,8], index: 2, kind: input, shape index: {}]   ;;  %s1349_s3 = inlined_call_operand.vmem [shape: bf16[512,8], index: 3, kind: output, shape index: {}]  }
   0x1 LB: > { %s821_s13 = sadd.s32 4294967295, %s1081_s12   ;;  %p825_p0 = scmp.ge.s32.totalorder %s1081_s12, 1  ;;  %s1081_s12 = sphi %s1104_s12, %s13_s12  }
   0x2   : > { %p139_p1 = scmp.lt.s32.totalorder %s1081_s12, 3 }
   0x4   : > { %p140_p2 = pnand %p825_p0, %p139_p1 }
   0x5   : > { %s826_s18 = sshll.u32 (!%p140_p2), %s821_s13, 5 }
   0x6   : > { %143 = sbr.rel (%p140_p2) target bundleno = 304 (0x130), region = 32  ;;  %p165_p3 = scmp.lt.s32.totalorder (!%p140_p2), %s826_s18, 63 }
   0xb   : > { %v1053_v0 = vld [vmem:[%s1347_s1 + $0x38] sm:$0xff]  ;;  %v228_v1 = vld [vmem:[%s1347_s1 + $0x48] sm:$0x3]  ;;  %vm483_vm0 = vcmask 1040384   ;;  %vm484_vm1 = vcmask 1041408   ;;  %v1052_v3 = vld [vmem:[%s1347_s1 + $0x30] sm:$0xff] }
   0xc   : > { %v414_v2 = vunpack.c.l.b16 %v228_v1  ;;  %490 = vmatpush.bf16.msra.mxu0 %v1053_v0  ;;  %1055 = vmatpush.bf16.msra.mxu2 %v1053_v0  ;;  %v1083_v4 = vmov 65535   ;;  %s1351_s18 = smov (!%p165_p3, %s826_s18), 63  ;;  %v1051_v9 = vld [vmem:[%s1347_s1 + $0x28] sm:$0xff]  ;;  %v1054_v10 = vld [vmem:[%s1347_s1 + $0x40] sm:$0xff]  ;;  %vm434_vm2 = vcmask 154624   ;;  %v1049_v18 = vld [vmem:[%s1347_s1 + $0x18] sm:$0xff] }
   0xd   : > { %v485_v5 = vsel %vm483_vm0, 4294967295, %v1083_v4  ;;  %s1013_s23 = sshll.u32 %s1351_s18, 3  ;;  %v1050_v14 = vld [vmem:[%s1347_s1 + $0x20] sm:$0xff]  ;;  %v1048_v19 = vld [vmem:[%s1347_s1 + $0x10] sm:$0xff]  ;;  %v1047_v20 = vld [vmem:[%s1347_s1 + $0x8] sm:$0xff]  ;;  %s830_s15 = sshll.u32 %s1351_s18, 2 }
   0xe   : > { %v424_v6 = vpack.c.b16 %v414_v2, %v414_v2  ;;  %v486_v7 = vsel %vm484_vm1, %v485_v5, 0  ;;  %s1133_s28 = scalar_lea.vmem %s1346_s0, %s1013_s23  ;;  %v1046_v26 = vld [vmem:[%s1347_s1] sm:$0xff]  ;;  %s1240_s19 = scalar_lea.vmem %s1349_s3, %s830_s15  ;;  %vm732_vm3 = vcmask 60416  }
   0xf   : > { %v1014_v11 = vld [vmem:[%s1133_s28 + $0x4] sm:$0xf]  ;;  %v835_v12 = vld [vmem:[%s1133_s28 + $0x8] sm:$0xf0]  ;;  %v1032_v15 = vld [vmem:[%s1133_s28 + $0x94] sm:$0xf] }
  0x10   : > { %v488_v8 = vand.u32 %v486_v7, %v424_v6  ;;  %491 = vmatpush.bf16.msra.mxu0 %v1052_v3  ;;  %1056 = vmatpush.bf16.msra.mxu2 %v1052_v3  ;;  %v838_v13 = vor.u32 %v1014_v11, %v835_v12  ;;  %v907_v16 = vld [vmem:[%s1133_s28 + $0x98] sm:$0xf0]  ;;  %v1016_v21 = vld [vmem:[%s1133_s28 + $0x14] sm:$0xf]  ;;  %v1034_v23 = vld [vmem:[%s1133_s28 + $0xa4] sm:$0xf] }
  0x11   : > { %v910_v17 = vor.u32 %v1032_v15, %v907_v16  ;;  %v843_v22 = vld [vmem:[%s1133_s28 + $0x18] sm:$0xf0]  ;;  %v915_v24 = vld [vmem:[%s1133_s28 + $0xa8] sm:$0xf0]  ;;  %v833_v27 = vld [vmem:[%s1133_s28] sm:$0xf] }
  0x12   : > { %585 = vmatpush.bf16.msra.mxu1 %v488_v8  ;;  %1063 = vmatpush.bf16.msra.mxu3 %v488_v8  ;;  %v846_v25 = vor.u32 %v1016_v21, %v843_v22  ;;  %v1015_v28 = vld [vmem:[%s1133_s28 + $0x4] sm:$0xf0]  ;;  %v897_v29 = vld [vmem:[%s1133_s28 + $0x80] sm:$0xf]  ;;  %v918_v31 = vor.u32 %v1034_v23, %v915_v24  ;;  %v1018_v34 = vld [vmem:[%s1133_s28 + $0x24] sm:$0xf] }
  0x13   : > { %v1031_v30 = vld [vmem:[%s1133_s28 + $0x84] sm:$0xf0]  ;;  %v834_v32 = vor.u32 %v1015_v28, %v833_v27  ;;  %v851_v35 = vld [vmem:[%s1133_s28 + $0x28] sm:$0xf0]  ;;  %v1036_v36 = vld [vmem:[%s1133_s28 + $0xb4] sm:$0xf] }
  0x14   : > { %492 = vmatpush.bf16.msra.mxu0 %v1051_v9  ;;  %1057 = vmatpush.bf16.msra.mxu2 %v1051_v9  ;;  %v898_v33 = vor.u32 %v1031_v30, %v897_v29  ;;  %v923_v37 = vld [vmem:[%s1133_s28 + $0xb8] sm:$0xf0]  ;;  %v854_v38 = vor.u32 %v1018_v34, %v851_v35  ;;  %v841_v39 = vld [vmem:[%s1133_s28 + $0x10] sm:$0xf]  ;;  %v1017_v40 = vld [vmem:[%s1133_s28 + $0x14] sm:$0xf0] }
  0x15   : > { %v905_v41 = vld [vmem:[%s1133_s28 + $0x90] sm:$0xf]  ;;  %v1033_v42 = vld [vmem:[%s1133_s28 + $0x94] sm:$0xf0]  ;;  %v926_v43 = vor.u32 %v1036_v36, %v923_v37  ;;  %v842_v44 = vor.u32 %v1017_v40, %v841_v39  ;;  %v1020_v46 = vld [vmem:[%s1133_s28 + $0x34] sm:$0xf] }
  0x16   : > { %586 = vmatpush.bf16.msra.mxu1 %v1054_v10  ;;  %1064 = vmatpush.bf16.msra.mxu3 %v1054_v10  ;;  %v906_v45 = vor.u32 %v1033_v42, %v905_v41  ;;  %v859_v47 = vld [vmem:[%s1133_s28 + $0x38] sm:$0xf0]  ;;  %v1038_v48 = vld [vmem:[%s1133_s28 + $0xc4] sm:$0xf]  ;;  %v931_v49 = vld [vmem:[%s1133_s28 + $0xc8] sm:$0xf0] }
  0x17   : > { %v862_v50 = vor.u32 %v1020_v46, %v859_v47  ;;  %v849_v51 = vld [vmem:[%s1133_s28 + $0x20] sm:$0xf]  ;;  %v1019_v52 = vld [vmem:[%s1133_s28 + $0x24] sm:$0xf0]  ;;  %v934_v55 = vor.u32 %v1038_v48, %v931_v49  ;;  %v1022_v58 = vld [vmem:[%s1133_s28 + $0x44] sm:$0xf] }
  0x18   : > { %493 = vmatpush.bf16.msra.mxu0 %v1050_v14  ;;  %1058 = vmatpush.bf16.msra.mxu2 %v1050_v14  ;;  %v913_v53 = vld [vmem:[%s1133_s28 + $0xa0] sm:$0xf]  ;;  %v1035_v54 = vld [vmem:[%s1133_s28 + $0xa4] sm:$0xf0]  ;;  %v850_v56 = vor.u32 %v1019_v52, %v849_v51  ;;  %v867_v59 = vld [vmem:[%s1133_s28 + $0x48] sm:$0xf0] }
  0x19   : > { %995 = vmatmul.msk.bf16.vlgmr.msra.gmra.mxu1 %vm434_vm2, %v838_v13  ;;  %1004 = vmatmul.msk.bf16.vlgmr.msra.gmra.mxu3 %vm434_vm2, %v910_v17  ;;  %v914_v57 = vor.u32 %v1035_v54, %v913_v53  ;;  %v1040_v60 = vld [vmem:[%s1133_s28 + $0xd4] sm:$0xf]  ;;  %v939_v61 = vld [vmem:[%s1133_s28 + $0xd8] sm:$0xf0]  ;;  %v870_v62 = vor.u32 %v1022_v58, %v867_v59  ;;  %v857_v63 = vld [vmem:[%s1133_s28 + $0x30] sm:$0xf] }
  0x1a   : > { %v1021_v0 = vld [vmem:[%s1133_s28 + $0x34] sm:$0xf0]  ;;  %v921_v1 = vld [vmem:[%s1133_s28 + $0xb0] sm:$0xf]  ;;  %v942_v3 = vor.u32 %v1040_v60, %v939_v61  ;;  %v1024_v6 = vld [vmem:[%s1133_s28 + $0x54] sm:$0xf] }
  0x1b   : > { %v1037_v2 = vld [vmem:[%s1133_s28 + $0xb4] sm:$0xf0]  ;;  %v858_v4 = vor.u32 %v1021_v0, %v857_v63  ;;  %v875_v7 = vld [vmem:[%s1133_s28 + $0x58] sm:$0xf0]  ;;  %v1042_v8 = vld [vmem:[%s1133_s28 + $0xe4] sm:$0xf] }
  0x1c   : > { %494 = vmatpush.bf16.msra.mxu0 %v1049_v18  ;;  %1059 = vmatpush.bf16.msra.mxu2 %v1049_v18  ;;  %v922_v5 = vor.u32 %v1037_v2, %v921_v1  ;;  %v947_v9 = vld [vmem:[%s1133_s28 + $0xe8] sm:$0xf0]  ;;  %v878_v10 = vor.u32 %v1024_v6, %v875_v7  ;;  %v865_v11 = vld [vmem:[%s1133_s28 + $0x40] sm:$0xf]  ;;  %v1023_v12 = vld [vmem:[%s1133_s28 + $0x44] sm:$0xf0] }
  0x1d   : > { %v929_v13 = vld [vmem:[%s1133_s28 + $0xc0] sm:$0xf]  ;;  %v1039_v14 = vld [vmem:[%s1133_s28 + $0xc4] sm:$0xf0]  ;;  %v950_v15 = vor.u32 %v1042_v8, %v947_v9  ;;  %v866_v16 = vor.u32 %v1023_v12, %v865_v11  ;;  %v1026_v18 = vld [vmem:[%s1133_s28 + $0x64] sm:$0xf] }
  0x1e   : > { %v930_v17 = vor.u32 %v1039_v14, %v929_v13  ;;  %v955_v21 = vld [vmem:[%s1133_s28 + $0xf8] sm:$0xf0]  ;;  %v873_v23 = vld [vmem:[%s1133_s28 + $0x50] sm:$0xf]  ;;  %v1025_v24 = vld [vmem:[%s1133_s28 + $0x54] sm:$0xf0] }
  0x1f   : > { %v874_v28 = vor.u32 %v1025_v24, %v873_v23  ;;  %v1028_v30 = vld [vmem:[%s1133_s28 + $0x74] sm:$0xf]  ;;  %v1027_v34 = vld [vmem:[%s1133_s28 + $0x64] sm:$0xf0]  ;;  %v945_v35 = vld [vmem:[%s1133_s28 + $0xe0] sm:$0xf] }
  0x20   : > { %495 = vmatpush.bf16.msra.mxu0 %v1048_v19  ;;  %1060 = vmatpush.bf16.msra.mxu2 %v1048_v19  ;;  %v883_v19 = vld [vmem:[%s1133_s28 + $0x68] sm:$0xf0]  ;;  %v1043_v36 = vld [vmem:[%s1133_s28 + $0xe4] sm:$0xf0]  ;;  %v1030_v39 = vld [vmem:[%s1133_s28 + $0x84] sm:$0xf] }
  0x21   : > { %v886_v22 = vor.u32 %v1026_v18, %v883_v19  ;;  %v899_v40 = vld [vmem:[%s1133_s28 + $0x88] sm:$0xf0]  ;;  %v889_v42 = vld [vmem:[%s1133_s28 + $0x70] sm:$0xf]  ;;  %v1045_v46 = vld [vmem:[%s1133_s28 + $0xf4] sm:$0xf0] }
  0x22   : > { %v902_v41 = vor.u32 %v1030_v39, %v899_v40  ;;  %v1233_v51 = vld [vmem:[%s1348_s2] ss:$0 sm:$0xff] }
  0x24   : > { %496 = vmatpush.bf16.msra.mxu0 %v1047_v20  ;;  %1061 = vmatpush.bf16.msra.mxu2 %v1047_v20  ;;  %v1044_v20 = vld [vmem:[%s1133_s28 + $0xf4] sm:$0xf] }
  0x25   : > { %v958_v27 = vor.u32 %v1044_v20, %v955_v21 }
  0x28   : > { %497 = vmatpush.bf16.msra.mxu0 %v1046_v26  ;;  %1062 = vmatpush.bf16.msra.mxu2 %v1046_v26  ;;  %v1041_v26 = vld [vmem:[%s1133_s28 + $0xd4] sm:$0xf0] }
  0x29   : > { %996 = vmatmul.msk.bf16.gmra.mxu1 %vm434_vm2, %v846_v25  ;;  %1005 = vmatmul.msk.bf16.gmra.mxu3 %vm434_vm2, %v918_v31  ;;  %v937_v25 = vld [vmem:[%s1133_s28 + $0xd0] sm:$0xf]  ;;  %v891_v31 = vld [vmem:[%s1133_s28 + $0x78] sm:$0xf0] }
  0x2a   : > { %v938_v29 = vor.u32 %v1041_v26, %v937_v25 }
  0x2b   : > { %498 = vmatmul.bf16.vlgmr.msra.gmra.mxu0 %v834_v32  ;;  %538 = vmatmul.bf16.vlgmr.msra.gmra.mxu2 %v898_v33  ;;  %v894_v32 = vor.u32 %v1028_v30, %v891_v31  ;;  %v881_v33 = vld [vmem:[%s1133_s28 + $0x60] sm:$0xf] }
  0x2c   : > { %v882_v37 = vor.u32 %v1027_v34, %v881_v33 }
  0x39   : > { %997 = vmatmul.msk.bf16.gmra.mxu1 %vm434_vm2, %v854_v38  ;;  %1006 = vmatmul.msk.bf16.gmra.mxu3 %vm434_vm2, %v926_v43  ;;  %v946_v38 = vor.u32 %v1043_v36, %v945_v35  ;;  %v1029_v43 = vld [vmem:[%s1133_s28 + $0x74] sm:$0xf0] }
  0x3a   : > { %v890_v47 = vor.u32 %v1029_v43, %v889_v42 }
  0x3b   : > { %503 = vmatmul.bf16.gmra.mxu0 %v842_v44  ;;  %543 = vmatmul.bf16.gmra.mxu2 %v906_v45  ;;  %v953_v45 = vld [vmem:[%s1133_s28 + $0xf0] sm:$0xf] }
  0x3c   : > { %v954_v48 = vor.u32 %v1045_v46, %v953_v45 }
  0x49   : > { %998 = vmatmul.msk.bf16.gmra.mxu1 %vm434_vm2, %v862_v50  ;;  %1007 = vmatmul.msk.bf16.gmra.mxu3 %vm434_vm2, %v934_v55 }
  0x4b   : > { %508 = vmatmul.bf16.gmra.mxu0 %v850_v56  ;;  %548 = vmatmul.bf16.gmra.mxu2 %v914_v57 }
  0x59   : > { %999 = vmatmul.msk.bf16.gmra.mxu1 %vm434_vm2, %v870_v62  ;;  %1008 = vmatmul.msk.bf16.gmra.mxu3 %vm434_vm2, %v942_v3 }
  0x5b   : > { %513 = vmatmul.bf16.gmra.mxu0 %v858_v4  ;;  %553 = vmatmul.bf16.gmra.mxu2 %v922_v5 }
  0x69   : > { %1000 = vmatmul.msk.bf16.gmra.mxu1 %vm434_vm2, %v878_v10  ;;  %1009 = vmatmul.msk.bf16.gmra.mxu3 %vm434_vm2, %v950_v15 }
  0x6b   : > { %518 = vmatmul.bf16.gmra.mxu0 %v866_v16  ;;  %558 = vmatmul.bf16.gmra.mxu2 %v930_v17 }
  0x79   : > { %1001 = vmatmul.msk.bf16.gmra.mxu1 %vm434_vm2, %v886_v22  ;;  %1010 = vmatmul.msk.bf16.gmra.mxu3 %vm434_vm2, %v958_v27 }
  0x7b   : > { %523 = vmatmul.bf16.gmra.mxu0 %v874_v28  ;;  %563 = vmatmul.bf16.gmra.mxu2 %v938_v29 }
  0x89   : > { %1002 = vmatmul.msk.bf16.gmra.mxu1 %vm434_vm2, %v894_v32 }
  0x8b   : > { %528 = vmatmul.bf16.gmra.mxu0 %v882_v37  ;;  %568 = vmatmul.bf16.gmra.mxu2 %v946_v38 }
  0x96   : > { %v588_v44 = vpop.f32.mrf.mxu1 }
  0x99   : > { %1003 = vmatmul.msk.bf16.gmra.mxu1 %vm434_vm2, %v902_v41 }
  0x9b   : > { %533 = vmatmul.bf16.gmra.mxu0 %v890_v47  ;;  %573 = vmatmul.bf16.gmra.mxu2 %v954_v48 }
  0x9c   : > { %v633_v52 = vpop.f32.mrf.mxu3 }
  0x9e   : > { %v590_v49 = vpop.f32.mrf.mxu1 }
  0xa4   : > { %v635_v62 = vpop.f32.mrf.mxu3 }
  0xa6   : > { %v593_v50 = vpop.f32.mrf.mxu1 }
  0xa8   : > { %v499_v53 = vpop.f32.mrf.mxu0 }
  0xa9   : > { %v500_v54 = vadd.f32 %v1233_v51, %v499_v53 }
  0xab   : > { %v589_v55 = vadd.f32 %v588_v44, %v500_v54 }
  0xac   : > { %v638_v7 = vpop.f32.mrf.mxu3 }
  0xad   : > { %v668_v56 = vmax.f32 %v589_v55, 0.0 }
  0xae   : > { %v595_v57 = vpop.f32.mrf.mxu1  ;;  %v1242_v59 = vpop.f32.mrf.mxu2 }
  0xaf   : > { %v700_v58 = vpack.c.bf16 %v668_v56, %v668_v56 }
  0xb0   : > { %v501_v60 = vpop.f32.mrf.mxu0 }
  0xb1   : > { %733 = vst.msk [vmem:[%s1240_s19] sm:$0xf] %vm732_vm3, %v700_v58  ;;  %v502_v61 = vadd.f32 %v1233_v51, %v501_v60 }
  0xb3   : > { %v591_v63 = vadd.f32 %v590_v49, %v502_v61 }
  0xb4   : > { %v640_v20 = vpop.f32.mrf.mxu3 }
  0xb5   : > { %v669_v0 = vmax.f32 %v591_v63, 0.0 }
  0xb6   : > { %v598_v1 = vpop.f32.mrf.mxu1  ;;  %v1247_v3 = vpop.f32.mrf.mxu2 }
  0xb7   : > { %v701_v2 = vpack.c.bf16 %v669_v0, %v669_v0 }
  0xb8   : > { %v504_v4 = vpop.f32.mrf.mxu0 }
  0xb9   : > { %734 = vst.msk [vmem:[%s1240_s19 + $0x4] sm:$0xf] %vm732_vm3, %v701_v2  ;;  %v505_v5 = vadd.f32 %v1233_v51, %v504_v4 }
  0xbb   : > { %v594_v6 = vadd.f32 %v593_v50, %v505_v5 }
  0xbc   : > { %v643_v35 = vpop.f32.mrf.mxu3 }
  0xbd   : > { %v670_v8 = vmax.f32 %v594_v6, 0.0 }
  0xbe   : > { %v600_v9 = vpop.f32.mrf.mxu1  ;;  %v544_v11 = vpop.f32.mrf.mxu2 }
  0xbf   : > { %v702_v10 = vpack.c.bf16 %v670_v8, %v670_v8  ;;  %v545_v12 = vadd.f32 %v1233_v51, %v544_v11 }
  0xc0   : > { %v506_v13 = vpop.f32.mrf.mxu0 }
  0xc1   : > { %735 = vst.msk [vmem:[%s1240_s19 + $0x8] sm:$0xf] %vm732_vm3, %v702_v10  ;;  %v507_v14 = vadd.f32 %v1233_v51, %v506_v13  ;;  %v634_v15 = vadd.f32 %v633_v52, %v545_v12 }
  0xc3   : > { %v596_v16 = vadd.f32 %v595_v57, %v507_v14  ;;  %v686_v17 = vmax.f32 %v634_v15, 0.0 }
  0xc4   : > { %v645_v50 = vpop.f32.mrf.mxu3 }
  0xc5   : > { %v671_v18 = vmax.f32 %v596_v16, 0.0  ;;  %v718_v21 = vpack.c.bf16 %v686_v17, %v686_v17 }
  0xc6   : > { %v603_v19 = vpop.f32.mrf.mxu1  ;;  %v546_v23 = vpop.f32.mrf.mxu2 }
  0xc7   : > { %v703_v22 = vpack.c.bf16 %v671_v18, %v671_v18  ;;  %751 = vst.msk [vmem:[%s1240_s19 + $0x48] sm:$0xf] %vm732_vm3, %v718_v21  ;;  %v547_v24 = vadd.f32 %v1233_v51, %v546_v23 }
  0xc8   : > { %v509_v25 = vpop.f32.mrf.mxu0 }
  0xc9   : > { %736 = vst.msk [vmem:[%s1240_s19 + $0xc] sm:$0xf] %vm732_vm3, %v703_v22  ;;  %v510_v26 = vadd.f32 %v1233_v51, %v509_v25  ;;  %v636_v27 = vadd.f32 %v635_v62, %v547_v24 }
  0xcb   : > { %v599_v28 = vadd.f32 %v598_v1, %v510_v26  ;;  %v687_v29 = vmax.f32 %v636_v27, 0.0 }
  0xcc   : > { %v648_v2 = vpop.f32.mrf.mxu3 }
  0xcd   : > { %v672_v30 = vmax.f32 %v599_v28, 0.0  ;;  %v719_v32 = vpack.c.bf16 %v687_v29, %v687_v29 }
  0xce   : > { %v605_v31 = vpop.f32.mrf.mxu1  ;;  %v549_v34 = vpop.f32.mrf.mxu2 }
  0xcf   : > { %v704_v33 = vpack.c.bf16 %v672_v30, %v672_v30  ;;  %752 = vst.msk [vmem:[%s1240_s19 + $0x4c] sm:$0xf] %vm732_vm3, %v719_v32  ;;  %v550_v36 = vadd.f32 %v1233_v51, %v549_v34 }
  0xd0   : > { %v511_v37 = vpop.f32.mrf.mxu0 }
  0xd1   : > { %737 = vst.msk [vmem:[%s1240_s19 + $0x10] sm:$0xf] %vm732_vm3, %v704_v33  ;;  %v512_v38 = vadd.f32 %v1233_v51, %v511_v37  ;;  %v639_v39 = vadd.f32 %v638_v7, %v550_v36 }
  0xd3   : > { %v601_v40 = vadd.f32 %v600_v9, %v512_v38  ;;  %v688_v41 = vmax.f32 %v639_v39, 0.0 }
  0xd4   : > { %v650_v18 = vpop.f32.mrf.mxu3 }
  0xd5   : > { %v673_v42 = vmax.f32 %v601_v40, 0.0  ;;  %v720_v44 = vpack.c.bf16 %v688_v41, %v688_v41 }
  0xd6   : > { %v608_v43 = vpop.f32.mrf.mxu1  ;;  %v551_v46 = vpop.f32.mrf.mxu2 }
  0xd7   : > { %v705_v45 = vpack.c.bf16 %v673_v42, %v673_v42  ;;  %753 = vst.msk [vmem:[%s1240_s19 + $0x50] sm:$0xf] %vm732_vm3, %v720_v44  ;;  %v552_v47 = vadd.f32 %v1233_v51, %v551_v46 }
  0xd8   : > { %v514_v48 = vpop.f32.mrf.mxu0 }
  0xd9   : > { %738 = vst.msk [vmem:[%s1240_s19 + $0x14] sm:$0xf] %vm732_vm3, %v705_v45  ;;  %v515_v49 = vadd.f32 %v1233_v51, %v514_v48  ;;  %v641_v52 = vadd.f32 %v640_v20, %v552_v47 }
  0xdb   : > { %v604_v53 = vadd.f32 %v603_v19, %v515_v49  ;;  %v689_v54 = vmax.f32 %v641_v52, 0.0 }
  0xdc   : > { %v653_v33 = vpop.f32.mrf.mxu3 }
  0xdd   : > { %v674_v55 = vmax.f32 %v604_v53, 0.0  ;;  %v721_v57 = vpack.c.bf16 %v689_v54, %v689_v54 }
  0xde   : > { %v610_v56 = vpop.f32.mrf.mxu1  ;;  %v554_v60 = vpop.f32.mrf.mxu2 }
  0xdf   : > { %v706_v58 = vpack.c.bf16 %v674_v55, %v674_v55  ;;  %754 = vst.msk [vmem:[%s1240_s19 + $0x54] sm:$0xf] %vm732_vm3, %v721_v57  ;;  %v555_v61 = vadd.f32 %v1233_v51, %v554_v60 }
  0xe0   : > { %v516_v62 = vpop.f32.mrf.mxu0 }
  0xe1   : > { %739 = vst.msk [vmem:[%s1240_s19 + $0x18] sm:$0xf] %vm732_vm3, %v706_v58  ;;  %v517_v63 = vadd.f32 %v1233_v51, %v516_v62  ;;  %v644_v0 = vadd.f32 %v643_v35, %v555_v61 }
  0xe3   : > { %v606_v1 = vadd.f32 %v605_v31, %v517_v63  ;;  %v690_v4 = vmax.f32 %v644_v0, 0.0 }
  0xe4   : > { %v655_v48 = vpop.f32.mrf.mxu3 }
  0xe5   : > { %v675_v5 = vmax.f32 %v606_v1, 0.0  ;;  %v722_v7 = vpack.c.bf16 %v690_v4, %v690_v4 }
  0xe6   : > { %v613_v6 = vpop.f32.mrf.mxu1  ;;  %v556_v9 = vpop.f32.mrf.mxu2 }
  0xe7   : > { %v707_v8 = vpack.c.bf16 %v675_v5, %v675_v5  ;;  %755 = vst.msk [vmem:[%s1240_s19 + $0x58] sm:$0xf] %vm732_vm3, %v722_v7  ;;  %v557_v10 = vadd.f32 %v1233_v51, %v556_v9 }
  0xe8   : > { %v519_v11 = vpop.f32.mrf.mxu0 }
  0xe9   : > { %740 = vst.msk [vmem:[%s1240_s19 + $0x1c] sm:$0xf] %vm732_vm3, %v707_v8  ;;  %v520_v12 = vadd.f32 %v1233_v51, %v519_v11  ;;  %v646_v13 = vadd.f32 %v645_v50, %v557_v10 }
  0xeb   : > { %v609_v14 = vadd.f32 %v608_v43, %v520_v12  ;;  %v691_v15 = vmax.f32 %v646_v13, 0.0  ;;  %v540_v13 = vadd.f32 %v1233_v51, %v1242_v59 }
  0xec   : > { %v658_v0 = vpop.f32.mrf.mxu3 }
  0xed   : > { %v676_v16 = vmax.f32 %v609_v14, 0.0  ;;  %v723_v19 = vpack.c.bf16 %v691_v15, %v691_v15 }
  0xee   : > { %v615_v17 = vpop.f32.mrf.mxu1  ;;  %v559_v21 = vpop.f32.mrf.mxu2 }
  0xef   : > { %v708_v20 = vpack.c.bf16 %v676_v16, %v676_v16  ;;  %756 = vst.msk [vmem:[%s1240_s19 + $0x5c] sm:$0xf] %vm732_vm3, %v723_v19  ;;  %v560_v22 = vadd.f32 %v1233_v51, %v559_v21 }
  0xf0   : > { %v521_v23 = vpop.f32.mrf.mxu0 }
  0xf1   : > { %741 = vst.msk [vmem:[%s1240_s19 + $0x20] sm:$0xf] %vm732_vm3, %v708_v20  ;;  %v522_v24 = vadd.f32 %v1233_v51, %v521_v23  ;;  %v649_v25 = vadd.f32 %v648_v2, %v560_v22 }
  0xf3   : > { %v611_v26 = vadd.f32 %v610_v56, %v522_v24  ;;  %v692_v27 = vmax.f32 %v649_v25, 0.0 }
  0xf4   : > { %v660_v16 = vpop.f32.mrf.mxu3 }
  0xf5   : > { %v677_v28 = vmax.f32 %v611_v26, 0.0  ;;  %v724_v30 = vpack.c.bf16 %v692_v27, %v692_v27 }
  0xf6   : > { %v618_v29 = vpop.f32.mrf.mxu1  ;;  %v561_v32 = vpop.f32.mrf.mxu2 }
  0xf7   : > { %v709_v31 = vpack.c.bf16 %v677_v28, %v677_v28  ;;  %757 = vst.msk [vmem:[%s1240_s19 + $0x60] sm:$0xf] %vm732_vm3, %v724_v30  ;;  %v562_v34 = vadd.f32 %v1233_v51, %v561_v32  ;;  %v542_v28 = vadd.f32 %v1233_v51, %v1247_v3 }
  0xf8   : > { %v524_v35 = vpop.f32.mrf.mxu0 }
  0xf9   : > { %742 = vst.msk [vmem:[%s1240_s19 + $0x24] sm:$0xf] %vm732_vm3, %v709_v31  ;;  %v525_v36 = vadd.f32 %v1233_v51, %v524_v35  ;;  %v651_v37 = vadd.f32 %v650_v18, %v562_v34 }
  0xfb   : > { %v614_v38 = vadd.f32 %v613_v6, %v525_v36  ;;  %v693_v39 = vmax.f32 %v651_v37, 0.0 }
  0xfc   : > { %v663_v35 = vpop.f32.mrf.mxu3 }
  0xfd   : > { %v678_v40 = vmax.f32 %v614_v38, 0.0  ;;  %v725_v42 = vpack.c.bf16 %v693_v39, %v693_v39 }
  0xfe   : > { %v620_v41 = vpop.f32.mrf.mxu1  ;;  %v564_v44 = vpop.f32.mrf.mxu2 }
  0xff   : > { %v710_v43 = vpack.c.bf16 %v678_v40, %v678_v40  ;;  %758 = vst.msk [vmem:[%s1240_s19 + $0x64] sm:$0xf] %vm732_vm3, %v725_v42  ;;  %v565_v45 = vadd.f32 %v1233_v51, %v564_v44 }
 0x100   : > { %v526_v46 = vpop.f32.mrf.mxu0 }
 0x101   : > { %743 = vst.msk [vmem:[%s1240_s19 + $0x28] sm:$0xf] %vm732_vm3, %v710_v43  ;;  %v527_v47 = vadd.f32 %v1233_v51, %v526_v46  ;;  %v654_v49 = vadd.f32 %v653_v33, %v565_v45 }
 0x103   : > { %v616_v50 = vadd.f32 %v615_v17, %v527_v47  ;;  %v694_v52 = vmax.f32 %v654_v49, 0.0 }
 0x104   : > { %v665_v49 = vpop.f32.mrf.mxu3 }
 0x105   : > { %v679_v53 = vmax.f32 %v616_v50, 0.0  ;;  %v726_v55 = vpack.c.bf16 %v694_v52, %v694_v52 }
 0x106   : > { %v623_v54 = vpop.f32.mrf.mxu1  ;;  %v566_v57 = vpop.f32.mrf.mxu2 }
 0x107   : > { %v711_v56 = vpack.c.bf16 %v679_v53, %v679_v53  ;;  %759 = vst.msk [vmem:[%s1240_s19 + $0x68] sm:$0xf] %vm732_vm3, %v726_v55  ;;  %v567_v58 = vadd.f32 %v1233_v51, %v566_v57 }
 0x108   : > { %v529_v60 = vpop.f32.mrf.mxu0 }
 0x109   : > { %744 = vst.msk [vmem:[%s1240_s19 + $0x2c] sm:$0xf] %vm732_vm3, %v711_v56  ;;  %v530_v61 = vadd.f32 %v1233_v51, %v529_v60  ;;  %v656_v62 = vadd.f32 %v655_v48, %v567_v58 }
 0x10b   : > { %v619_v63 = vadd.f32 %v618_v29, %v530_v61  ;;  %v695_v1 = vmax.f32 %v656_v62, 0.0 }
 0x10d   : > { %v680_v2 = vmax.f32 %v619_v63, 0.0  ;;  %v727_v5 = vpack.c.bf16 %v695_v1, %v695_v1 }
 0x10e   : > { %v625_v4 = vpop.f32.mrf.mxu1  ;;  %v569_v7 = vpop.f32.mrf.mxu2 }
 0x10f   : > { %v712_v6 = vpack.c.bf16 %v680_v2, %v680_v2  ;;  %760 = vst.msk [vmem:[%s1240_s19 + $0x6c] sm:$0xf] %vm732_vm3, %v727_v5  ;;  %v570_v8 = vadd.f32 %v1233_v51, %v569_v7 }
 0x110   : > { %v531_v9 = vpop.f32.mrf.mxu0 }
 0x111   : > { %745 = vst.msk [vmem:[%s1240_s19 + $0x30] sm:$0xf] %vm732_vm3, %v712_v6  ;;  %v532_v10 = vadd.f32 %v1233_v51, %v531_v9  ;;  %v659_v11 = vadd.f32 %v658_v0, %v570_v8 }
 0x113   : > { %v621_v12 = vadd.f32 %v620_v41, %v532_v10  ;;  %v696_v14 = vmax.f32 %v659_v11, 0.0 }
 0x115   : > { %v681_v15 = vmax.f32 %v621_v12, 0.0  ;;  %v728_v18 = vpack.c.bf16 %v696_v14, %v696_v14 }
 0x116   : > { %v628_v17 = vpop.f32.mrf.mxu1  ;;  %v571_v21 = vpop.f32.mrf.mxu2 }
 0x117   : > { %v629_v19 = vadd.f32 %v628_v17, %v540_v13  ;;  %v713_v20 = vpack.c.bf16 %v681_v15, %v681_v15  ;;  %761 = vst.msk [vmem:[%s1240_s19 + $0x70] sm:$0xf] %vm732_vm3, %v728_v18  ;;  %v572_v23 = vadd.f32 %v1233_v51, %v571_v21 }
 0x118   : > { %v534_v24 = vpop.f32.mrf.mxu0 }
 0x119   : > { %v684_v22 = vmax.f32 %v629_v19, 0.0  ;;  %746 = vst.msk [vmem:[%s1240_s19 + $0x34] sm:$0xf] %vm732_vm3, %v713_v20  ;;  %v535_v59 = vadd.f32 %v1233_v51, %v534_v24  ;;  %v661_v26 = vadd.f32 %v660_v16, %v572_v23 }
 0x11b   : > { %v716_v25 = vpack.c.bf16 %v684_v22, %v684_v22  ;;  %v624_v27 = vadd.f32 %v623_v54, %v535_v59  ;;  %v697_v29 = vmax.f32 %v661_v26, 0.0 }
 0x11d   : > { %749 = vst.msk [vmem:[%s1240_s19 + $0x40] sm:$0xf] %vm732_vm3, %v716_v25  ;;  %v682_v30 = vmax.f32 %v624_v27, 0.0  ;;  %v729_v32 = vpack.c.bf16 %v697_v29, %v697_v29 }
 0x11e   : > { %v630_v31 = vpop.f32.mrf.mxu1  ;;  %v574_v36 = vpop.f32.mrf.mxu2 }
 0x11f   : > { %v631_v33 = vadd.f32 %v630_v31, %v542_v28  ;;  %v714_v34 = vpack.c.bf16 %v682_v30, %v682_v30  ;;  %762 = vst.msk [vmem:[%s1240_s19 + $0x74] sm:$0xf] %vm732_vm3, %v729_v32  ;;  %v575_v38 = vadd.f32 %v1233_v51, %v574_v36 }
 0x120   : > { %v536_v39 = vpop.f32.mrf.mxu0 }
 0x121   : > { %v685_v37 = vmax.f32 %v631_v33, 0.0  ;;  %747 = vst.msk [vmem:[%s1240_s19 + $0x38] sm:$0xf] %vm732_vm3, %v714_v34  ;;  %v537_v3 = vadd.f32 %v1233_v51, %v536_v39  ;;  %v664_v41 = vadd.f32 %v663_v35, %v575_v38 }
 0x123   : > { %v717_v40 = vpack.c.bf16 %v685_v37, %v685_v37  ;;  %v626_v42 = vadd.f32 %v625_v4, %v537_v3  ;;  %v698_v43 = vmax.f32 %v664_v41, 0.0 }
 0x125   : > { %750 = vst.msk [vmem:[%s1240_s19 + $0x44] sm:$0xf] %vm732_vm3, %v717_v40  ;;  %v683_v44 = vmax.f32 %v626_v42, 0.0  ;;  %v730_v45 = vpack.c.bf16 %v698_v43, %v698_v43 }
 0x126   : > { %v576_v47 = vpop.f32.mrf.mxu2 }
 0x127   : > { %v715_v46 = vpack.c.bf16 %v683_v44, %v683_v44  ;;  %763 = vst.msk [vmem:[%s1240_s19 + $0x78] sm:$0xf] %vm732_vm3, %v730_v45  ;;  %v577_v48 = vadd.f32 %v1233_v51, %v576_v47 }
 0x129   : > { %748 = vst.msk [vmem:[%s1240_s19 + $0x3c] sm:$0xf] %vm732_vm3, %v715_v46  ;;  %v666_v50 = vadd.f32 %v665_v49, %v577_v48 }
 0x12b   : > { %v699_v52 = vmax.f32 %v666_v50, 0.0 }
 0x12d   : > { %v731_v53 = vpack.c.bf16 %v699_v52, %v699_v52 }
 0x12f   : > { %764 = vst.msk [vmem:[%s1240_s19 + $0x7c] sm:$0xf] %vm732_vm3, %v731_v53 }
 0x130 PF: > { %s13_s12 = sadd.s32 1, %s1081_s12  }
 0x131   : > { %p10_p4 = scmp.ge.s32.totalorder %s13_s12, 4  }
 0x133   :  { %12 = sbr.rel (!%p10_p4) target bundleno = 1 (0x1), region = 62 }

// kernel: _lambda_.48
= control target key start
LH: loop header
LB: loop body
LE: loop exit
PB: predicated region body
PF: predicated region fallthrough
CT: control target
= control target key end

     0   :  { %s804_s18 = smov 0   ;;  %s925_s0 = inlined_call_operand.vmem [shape: bf16[128,144], index: 0, kind: input, shape index: {}]   ;;  %s926_s1 = inlined_call_operand.vmem [shape: bf16[144,16], index: 1, kind: input, shape index: {}]   ;;  %s927_s2 = inlined_call_operand.vmem [shape: bf16[128,8], index: 2, kind: input, shape index: {}]   ;;  %s928_s3 = inlined_call_operand.vmem [shape: bf16[8,16], index: 3, kind: input, shape index: {}]   ;;  %s929_s4 = inlined_call_operand.vmem [shape: f32[1,16], index: 4, kind: input, shape index: {}]   ;;  %s930_s5 = inlined_call_operand.vmem [shape: bf16[128,16], index: 5, kind: output, shape index: {}]  }
   0x1 LB: > { %s621_s19 = sadd.s32 4294967295, %s772_s18   ;;  %p625_p0 = scmp.ge.s32.totalorder %s772_s18, 1  ;;  %s772_s18 = sphi %s804_s18, %s15_s18  }
   0x2   : > { %p200_p1 = scmp.lt.s32.totalorder %s772_s18, 3 }
   0x4   : > { %p201_p2 = pnand %p625_p0, %p200_p1 }
   0x5   : > { %s626_s24 = sshll.u32 (!%p201_p2), %s621_s19, 3 }
   0x6   : > { %204 = sbr.rel (%p201_p2) target bundleno = 226 (0xe2), region = 40  ;;  %p235_p3 = scmp.lt.s32.totalorder (!%p201_p2), %s626_s24, 15 }
   0xb   : > { %v743_v0 = vld [vmem:[%s926_s1 + $0x38] sm:$0xff]  ;;  %v744_v1 = vld [vmem:[%s926_s1 + $0x40] sm:$0xff]  ;;  %vm322_vm0 = vcmask 1043456   ;;  %v742_v3 = vld [vmem:[%s926_s1 + $0x30] sm:$0xff]  ;;  %s932_s24 = smov (!%p235_p3, %s626_s24), 15  ;;  %vm309_vm1 = vcmask 64512  }
   0xc   : > { %v288_v2 = vld [vmem:[%s928_s3] sm:$0xf]  ;;  %458 = vmatpush.bf16.msra.mxu1 %v743_v0  ;;  %749 = vmatpush.bf16.msra.mxu3 %v743_v0  ;;  %s727_s29 = sshll.u32 %s932_s24, 3  ;;  %s630_s30 = sshll.u32 %s932_s24, 2  ;;  %v741_v5 = vld [vmem:[%s926_s1 + $0x28] sm:$0xff]  ;;  %vm445_vm2 = vcmask 130048  }
   0xd   : > { %v324_v4 = vsel %vm322_vm0, %v288_v2, 0  ;;  %494 = vmatpush.bf16.msra.mxu2 %v744_v1  ;;  %s834_s10 = scalar_lea.vmem %s925_s0, %s727_s29  ;;  %s841_s13 = scalar_lea.vmem %s927_s2, %s630_s30  ;;  %v740_v10 = vld [vmem:[%s926_s1 + $0x20] sm:$0xff]  ;;  %v739_v11 = vld [vmem:[%s926_s1 + $0x18] sm:$0xff]  ;;  %v738_v12 = vld [vmem:[%s926_s1 + $0x10] sm:$0xff]  ;;  %vm544_vm3 = vcmask 125952  }
   0xe   : > { %333 = vmatpush.bf16.msra.mxu0 %v324_v4  ;;  %v728_v6 = vld [vmem:[%s834_s10 + $0x4] sm:$0xf]  ;;  %v657_v7 = vld [vmem:[%s834_s10 + $0x8] sm:$0xf0]  ;;  %v730_v13 = vld [vmem:[%s834_s10 + $0x14] sm:$0xf]  ;;  %s897_s6 = scalar_lea.vmem %s930_s5, %s630_s30 }
   0xf   : > { %v745_v8 = vld [vmem:[%s841_s13] sm:$0xff]  ;;  %v660_v9 = vor.u32 %v728_v6, %v657_v7  ;;  %v665_v14 = vld [vmem:[%s834_s10 + $0x18] sm:$0xf0]  ;;  %v746_v15 = vld [vmem:[%s841_s13 + $0x8] sm:$0xff] }
  0x10   : > { %459 = vmatpush.bf16.msra.mxu1 %v742_v3  ;;  %750 = vmatpush.bf16.msra.mxu3 %v742_v3  ;;  %v737_v16 = vld [vmem:[%s926_s1 + $0x8] sm:$0xff]  ;;  %v668_v17 = vor.u32 %v730_v13, %v665_v14  ;;  %v736_v18 = vld [vmem:[%s926_s1] sm:$0xff]  ;;  %v663_v21 = vld [vmem:[%s834_s10 + $0x10] sm:$0xf] }
  0x11   : > { %649 = vmatmul.msk.bf16.vlgmr.msra.gmra.mxu0 %vm309_vm1, %v745_v8  ;;  %721 = vmatmul.msk.bf16.vlgmr.msra.gmra.mxu2 %vm445_vm2, %v660_v9  ;;  %v655_v19 = vld [vmem:[%s834_s10] sm:$0xf]  ;;  %v729_v20 = vld [vmem:[%s834_s10 + $0x4] sm:$0xf0]  ;;  %v731_v22 = vld [vmem:[%s834_s10 + $0x14] sm:$0xf0] }
  0x12   : > { %v656_v23 = vor.u32 %v729_v20, %v655_v19  ;;  %v664_v24 = vor.u32 %v731_v22, %v663_v21  ;;  %v732_v25 = vld [vmem:[%s834_s10 + $0x24] sm:$0xf]  ;;  %v673_v26 = vld [vmem:[%s834_s10 + $0x28] sm:$0xf0]  ;;  %v747_v27 = vld [vmem:[%s841_s13 + $0x10] sm:$0xff] }
  0x13   : > { %v676_v28 = vor.u32 %v732_v25, %v673_v26  ;;  %v671_v29 = vld [vmem:[%s834_s10 + $0x20] sm:$0xf]  ;;  %v733_v30 = vld [vmem:[%s834_s10 + $0x24] sm:$0xf0]  ;;  %v734_v32 = vld [vmem:[%s834_s10 + $0x34] sm:$0xf] }
  0x14   : > { %460 = vmatpush.bf16.msra.mxu1 %v741_v5  ;;  %751 = vmatpush.bf16.msra.mxu3 %v741_v5  ;;  %v672_v31 = vor.u32 %v733_v30, %v671_v29  ;;  %v681_v33 = vld [vmem:[%s834_s10 + $0x38] sm:$0xf0]  ;;  %v679_v36 = vld [vmem:[%s834_s10 + $0x30] sm:$0xf]  ;;  %v735_v37 = vld [vmem:[%s834_s10 + $0x34] sm:$0xf0] }
  0x15   : > { %v748_v34 = vld [vmem:[%s841_s13 + $0x18] sm:$0xff]  ;;  %v684_v35 = vor.u32 %v734_v32, %v681_v33  ;;  %v680_v38 = vor.u32 %v735_v37, %v679_v36  ;;  %v889_v47 = vld [vmem:[%s929_s4] ss:$0 sm:$0xff] }
  0x18   : > { %461 = vmatpush.bf16.msra.mxu1 %v740_v10  ;;  %752 = vmatpush.bf16.msra.mxu3 %v740_v10 }
  0x1c   : > { %462 = vmatpush.bf16.msra.mxu1 %v739_v11  ;;  %753 = vmatpush.bf16.msra.mxu3 %v739_v11 }
  0x20   : > { %463 = vmatpush.bf16.msra.mxu1 %v738_v12  ;;  %754 = vmatpush.bf16.msra.mxu3 %v738_v12 }
  0x21   : > { %650 = vmatmul.msk.bf16.gmra.mxu0 %vm309_vm1, %v746_v15  ;;  %722 = vmatmul.msk.bf16.gmra.mxu2 %vm445_vm2, %v668_v17 }
  0x24   : > { %464 = vmatpush.bf16.msra.mxu1 %v737_v16  ;;  %755 = vmatpush.bf16.msra.mxu3 %v737_v16 }
  0x28   : > { %465 = vmatpush.bf16.msra.mxu1 %v736_v18  ;;  %756 = vmatpush.bf16.msra.mxu3 %v736_v18 }
  0x2b   : > { %466 = vmatmul.bf16.vlgmr.msra.gmra.mxu1 %v656_v23  ;;  %471 = vmatmul.bf16.vlgmr.msra.gmra.mxu3 %v664_v24 }
  0x31   : > { %651 = vmatmul.msk.bf16.gmra.mxu0 %vm309_vm1, %v747_v27  ;;  %723 = vmatmul.msk.bf16.gmra.mxu2 %vm445_vm2, %v676_v28 }
  0x3b   : > { %476 = vmatmul.bf16.gmra.mxu3 %v672_v31 }
  0x41   : > { %652 = vmatmul.msk.bf16.gmra.mxu0 %vm309_vm1, %v748_v34  ;;  %724 = vmatmul.msk.bf16.gmra.mxu2 %vm445_vm2, %v684_v35 }
  0x4b   : > { %481 = vmatmul.bf16.gmra.mxu3 %v680_v38 }
  0x8e   : > { %v335_v39 = vpop.f32.mrf.mxu0 }
  0x94   : > { %v496_v40 = vpop.f32.mrf.mxu2 }
  0x96   : > { %v337_v41 = vpop.f32.mrf.mxu0 }
  0x9c   : > { %v498_v42 = vpop.f32.mrf.mxu2 }
  0x9e   : > { %v340_v43 = vpop.f32.mrf.mxu0 }
  0xa4   : > { %v501_v45 = vpop.f32.mrf.mxu2 }
  0xa6   : > { %v342_v50 = vpop.f32.mrf.mxu0 }
  0xa8   : > { %v467_v44 = vpop.f32.mrf.mxu1 }
  0xa9   : > { %v468_v46 = vadd.f32 %v467_v44, %v335_v39 }
  0xab   : > { %v497_v48 = vadd.f32 %v496_v40, %v468_v46 }
  0xac   : > { %v503_v55 = vpop.f32.mrf.mxu2 }
  0xad   : > { %v520_v49 = vadd.f32 %v889_v47, %v497_v48 }
  0xae   : > { %v472_v51 = vpop.f32.mrf.mxu3  ;;  %v345_v3 = vpop.f32.mrf.mxu0 }
  0xaf   : > { %v528_v52 = vmax.f32 %v520_v49, 0.0  ;;  %v473_v53 = vadd.f32 %v472_v51, %v340_v43 }
  0xb0   : > { %v469_v54 = vpop.f32.mrf.mxu1 }
  0xb1   : > { %v536_v56 = vpack.c.bf16 %v528_v52, %v528_v52  ;;  %v502_v57 = vadd.f32 %v501_v45, %v473_v53  ;;  %v470_v58 = vadd.f32 %v469_v54, %v337_v41 }
  0xb3   : > { %545 = vst.msk [vmem:[%s897_s6] sm:$0xf] %vm544_vm3, %v536_v56  ;;  %v522_v59 = vadd.f32 %v889_v47, %v502_v57  ;;  %v499_v60 = vadd.f32 %v498_v42, %v470_v58 }
  0xb4   : > { %v506_v6 = vpop.f32.mrf.mxu2 }
  0xb5   : > { %v530_v61 = vmax.f32 %v522_v59, 0.0  ;;  %v521_v62 = vadd.f32 %v889_v47, %v499_v60 }
  0xb6   : > { %v474_v63 = vpop.f32.mrf.mxu3  ;;  %v347_v13 = vpop.f32.mrf.mxu0 }
  0xb7   : > { %v538_v0 = vpack.c.bf16 %v530_v61, %v530_v61  ;;  %v529_v1 = vmax.f32 %v521_v62, 0.0  ;;  %v475_v2 = vadd.f32 %v474_v63, %v342_v50 }
  0xb9   : > { %547 = vst.msk [vmem:[%s897_s6 + $0x8] sm:$0xf] %vm544_vm3, %v538_v0  ;;  %v537_v4 = vpack.c.bf16 %v529_v1, %v529_v1  ;;  %v504_v5 = vadd.f32 %v503_v55, %v475_v2 }
  0xbb   : > { %546 = vst.msk [vmem:[%s897_s6 + $0x4] sm:$0xf] %vm544_vm3, %v537_v4  ;;  %v523_v7 = vadd.f32 %v889_v47, %v504_v5 }
  0xbc   : > { %v508_v15 = vpop.f32.mrf.mxu2 }
  0xbd   : > { %v531_v8 = vmax.f32 %v523_v7, 0.0 }
  0xbe   : > { %v477_v9 = vpop.f32.mrf.mxu3  ;;  %v350_v22 = vpop.f32.mrf.mxu0 }
  0xbf   : > { %v539_v10 = vpack.c.bf16 %v531_v8, %v531_v8  ;;  %v478_v11 = vadd.f32 %v477_v9, %v345_v3 }
  0xc1   : > { %548 = vst.msk [vmem:[%s897_s6 + $0xc] sm:$0xf] %vm544_vm3, %v539_v10  ;;  %v507_v12 = vadd.f32 %v506_v6, %v478_v11 }
  0xc3   : > { %v524_v14 = vadd.f32 %v889_v47, %v507_v12 }
  0xc4   : > { %v511_v24 = vpop.f32.mrf.mxu2 }
  0xc5   : > { %v532_v16 = vmax.f32 %v524_v14, 0.0 }
  0xc6   : > { %v479_v17 = vpop.f32.mrf.mxu3  ;;  %v352_v31 = vpop.f32.mrf.mxu0 }
  0xc7   : > { %v540_v18 = vpack.c.bf16 %v532_v16, %v532_v16  ;;  %v480_v19 = vadd.f32 %v479_v17, %v347_v13 }
  0xc9   : > { %549 = vst.msk [vmem:[%s897_s6 + $0x10] sm:$0xf] %vm544_vm3, %v540_v18  ;;  %v509_v20 = vadd.f32 %v508_v15, %v480_v19 }
  0xcb   : > { %v525_v21 = vadd.f32 %v889_v47, %v509_v20 }
  0xcc   : > { %v513_v35 = vpop.f32.mrf.mxu2 }
  0xcd   : > { %v533_v23 = vmax.f32 %v525_v21, 0.0 }
  0xce   : > { %v482_v25 = vpop.f32.mrf.mxu3 }
  0xcf   : > { %v541_v26 = vpack.c.bf16 %v533_v23, %v533_v23  ;;  %v483_v27 = vadd.f32 %v482_v25, %v350_v22 }
  0xd1   : > { %550 = vst.msk [vmem:[%s897_s6 + $0x14] sm:$0xf] %vm544_vm3, %v541_v26  ;;  %v512_v28 = vadd.f32 %v511_v24, %v483_v27 }
  0xd3   : > { %v526_v29 = vadd.f32 %v889_v47, %v512_v28 }
  0xd5   : > { %v534_v30 = vmax.f32 %v526_v29, 0.0 }
  0xd6   : > { %v484_v32 = vpop.f32.mrf.mxu3 }
  0xd7   : > { %v542_v33 = vpack.c.bf16 %v534_v30, %v534_v30  ;;  %v485_v34 = vadd.f32 %v484_v32, %v352_v31 }
  0xd9   : > { %551 = vst.msk [vmem:[%s897_s6 + $0x18] sm:$0xf] %vm544_vm3, %v542_v33  ;;  %v514_v36 = vadd.f32 %v513_v35, %v485_v34 }
  0xdb   : > { %v527_v37 = vadd.f32 %v889_v47, %v514_v36 }
  0xdd   : > { %v535_v38 = vmax.f32 %v527_v37, 0.0 }
  0xdf   : > { %v543_v39 = vpack.c.bf16 %v535_v38, %v535_v38 }
  0xe1   : > { %552 = vst.msk [vmem:[%s897_s6 + $0x1c] sm:$0xf] %vm544_vm3, %v543_v39 }
  0xe2 PF: > { %s15_s18 = sadd.s32 1, %s772_s18  }
  0xe3   : > { %p12_p4 = scmp.ge.s32.totalorder %s15_s18, 4  }
  0xe5   :  { %14 = sbr.rel (!%p12_p4) target bundleno = 1 (0x1), region = 73 }

// kernel: _lambda_.51
= control target key start
LH: loop header
LB: loop body
LE: loop exit
PB: predicated region body
PF: predicated region fallthrough
CT: control target
= control target key end

     0   :  { %vm113_vm0 = vcmask 130048   ;;  %vm166_vm1 = vcmask 125952   ;;  %s343_s1 = inlined_call_operand.vmem [shape: bf16[144,16], index: 1, kind: input, shape index: {}]   ;;  %s344_s0 = inlined_call_operand.vmem [shape: bf16[32,144], index: 0, kind: input, shape index: {}]   ;;  %s345_s2 = inlined_call_operand.vmem [shape: f32[1,16], index: 2, kind: input, shape index: {}]   ;;  %s346_s3 = inlined_call_operand.vmem [shape: bf16[32,16], index: 3, kind: output, shape index: {}]  }
   0x1   :  { %v240_v0 = vld [vmem:[%s343_s1 + $0x38] sm:$0xff]  ;;  %v241_v1 = vld [vmem:[%s343_s1 + $0x40] sm:$0xff]  ;;  %v239_v3 = vld [vmem:[%s343_s1 + $0x30] sm:$0xff] }
   0x2   :  { %v229_v2 = vld [vmem:[%s344_s0 + $0x4] sm:$0xf]  ;;  %120 = vmatpush.bf16.msra.mxu0 %v240_v0  ;;  %242 = vmatpush.bf16.msra.mxu2 %v240_v0  ;;  %v179_v4 = vld [vmem:[%s344_s0 + $0x8] sm:$0xf0]  ;;  %v236_v8 = vld [vmem:[%s343_s1 + $0x18] sm:$0xff] }
   0x3   :  { %146 = vmatpush.bf16.msra.mxu1 %v241_v1  ;;  %v182_v5 = vor.u32 %v229_v2, %v179_v4  ;;  %v238_v6 = vld [vmem:[%s343_s1 + $0x28] sm:$0xff]  ;;  %v237_v7 = vld [vmem:[%s343_s1 + $0x20] sm:$0xff]  ;;  %v231_v9 = vld [vmem:[%s344_s0 + $0x14] sm:$0xf] }
   0x4   :  { %v187_v10 = vld [vmem:[%s344_s0 + $0x18] sm:$0xf0]  ;;  %v235_v11 = vld [vmem:[%s343_s1 + $0x10] sm:$0xff]  ;;  %v234_v13 = vld [vmem:[%s343_s1 + $0x8] sm:$0xff] }
   0x5   :  { %v190_v12 = vor.u32 %v231_v9, %v187_v10  ;;  %v233_v14 = vld [vmem:[%s343_s1] sm:$0xff]  ;;  %v230_v16 = vld [vmem:[%s344_s0 + $0x4] sm:$0xf0]  ;;  %v185_v17 = vld [vmem:[%s344_s0 + $0x10] sm:$0xf] }
   0x6   :  { %121 = vmatpush.bf16.msra.mxu0 %v239_v3  ;;  %243 = vmatpush.bf16.msra.mxu2 %v239_v3  ;;  %v177_v15 = vld [vmem:[%s344_s0] sm:$0xf]  ;;  %v232_v18 = vld [vmem:[%s344_s0 + $0x14] sm:$0xf0] }
   0x7   :  { %227 = vmatmul.msk.bf16.vlgmr.msra.gmra.mxu1 %vm113_vm0, %v182_v5  ;;  %v178_v19 = vor.u32 %v230_v16, %v177_v15  ;;  %v186_v20 = vor.u32 %v232_v18, %v185_v17  ;;  %v250_v23 = vld [vmem:[%s345_s2] ss:$0 sm:$0xff] }
   0xa   :  { %122 = vmatpush.bf16.msra.mxu0 %v238_v6  ;;  %244 = vmatpush.bf16.msra.mxu2 %v238_v6 }
   0xe   :  { %123 = vmatpush.bf16.msra.mxu0 %v237_v7  ;;  %245 = vmatpush.bf16.msra.mxu2 %v237_v7 }
  0x12   :  { %124 = vmatpush.bf16.msra.mxu0 %v236_v8  ;;  %246 = vmatpush.bf16.msra.mxu2 %v236_v8 }
  0x16   :  { %125 = vmatpush.bf16.msra.mxu0 %v235_v11  ;;  %247 = vmatpush.bf16.msra.mxu2 %v235_v11 }
  0x17   :  { %228 = vmatmul.msk.bf16.gmra.mxu1 %vm113_vm0, %v190_v12 }
  0x1a   :  { %126 = vmatpush.bf16.msra.mxu0 %v234_v13  ;;  %248 = vmatpush.bf16.msra.mxu2 %v234_v13 }
  0x1e   :  { %127 = vmatpush.bf16.msra.mxu0 %v233_v14  ;;  %249 = vmatpush.bf16.msra.mxu2 %v233_v14 }
  0x21   :  { %128 = vmatmul.bf16.vlgmr.msra.gmra.mxu0 %v178_v19  ;;  %133 = vmatmul.bf16.vlgmr.msra.gmra.mxu2 %v186_v20 }
  0x84   :  { %v148_v21 = vpop.f32.mrf.mxu1 }
  0x8c   :  { %v150_v22 = vpop.f32.mrf.mxu1 }
  0x94   :  { %v153_v28 = vpop.f32.mrf.mxu1 }
  0x9c   :  { %v155_v42 = vpop.f32.mrf.mxu1 }
  0x9e   :  { %v129_v24 = vpop.f32.mrf.mxu0 }
  0x9f   :  { %v130_v25 = vadd.f32 %v250_v23, %v129_v24 }
  0xa1   :  { %v149_v26 = vadd.f32 %v148_v21, %v130_v25 }
  0xa3   :  { %v158_v27 = vmax.f32 %v149_v26, 0.0 }
  0xa4   :  { %v134_v29 = vpop.f32.mrf.mxu2 }
  0xa5   :  { %v162_v30 = vpack.c.bf16 %v158_v27, %v158_v27  ;;  %v135_v31 = vadd.f32 %v250_v23, %v134_v29 }
  0xa6   :  { %v131_v32 = vpop.f32.mrf.mxu0 }
  0xa7   :  { %167 = vst.msk [vmem:[%s346_s3] sm:$0xf] %vm166_vm1, %v162_v30  ;;  %v154_v33 = vadd.f32 %v153_v28, %v135_v31  ;;  %v132_v34 = vadd.f32 %v250_v23, %v131_v32 }
  0xa9   :  { %v160_v35 = vmax.f32 %v154_v33, 0.0  ;;  %v151_v36 = vadd.f32 %v150_v22, %v132_v34 }
  0xab   :  { %v164_v37 = vpack.c.bf16 %v160_v35, %v160_v35  ;;  %v159_v38 = vmax.f32 %v151_v36, 0.0 }
  0xac   :  { %v136_v39 = vpop.f32.mrf.mxu2 }
  0xad   :  { %169 = vst.msk [vmem:[%s346_s3 + $0x8] sm:$0xf] %vm166_vm1, %v164_v37  ;;  %v163_v40 = vpack.c.bf16 %v159_v38, %v159_v38  ;;  %v137_v41 = vadd.f32 %v250_v23, %v136_v39 }
  0xaf   :  { %168 = vst.msk [vmem:[%s346_s3 + $0x4] sm:$0xf] %vm166_vm1, %v163_v40  ;;  %v156_v43 = vadd.f32 %v155_v42, %v137_v41 }
  0xb1   :  { %v161_v44 = vmax.f32 %v156_v43, 0.0 }
  0xb3   :  { %v165_v45 = vpack.c.bf16 %v161_v44, %v161_v44 }
  0xb5   :  { %170 = vst.msk [vmem:[%s346_s3 + $0xc] sm:$0xf] %vm166_vm1, %v165_v45 }

// kernel: _lambda_.52
= control target key start
LH: loop header
LB: loop body
LE: loop exit
PB: predicated region body
PF: predicated region fallthrough
CT: control target
= control target key end

     0   :  { %vm65_vm0 = vcmask 130048   ;;  %vm223_vm1 = vcmask 125952   ;;  %s438_s1 = inlined_call_operand.vmem [shape: bf16[144,16], index: 1, kind: input, shape index: {}]   ;;  %s439_s0 = inlined_call_operand.vmem [shape: bf16[32,144], index: 0, kind: input, shape index: {}]   ;;  %s440_s3 = inlined_call_operand.vmem [shape: bf16[16,16], index: 3, kind: input, shape index: {}]   ;;  %s441_s2 = inlined_call_operand.vmem [shape: bf16[32,16], index: 2, kind: input, shape index: {}]   ;;  %s442_s4 = inlined_call_operand.vmem [shape: f32[1,16], index: 4, kind: input, shape index: {}]   ;;  %s443_s5 = inlined_call_operand.vmem [shape: bf16[32,16], index: 5, kind: output, shape index: {}]  }
   0x1   :  { %v311_v0 = vld [vmem:[%s438_s1 + $0x38] sm:$0xff]  ;;  %v312_v1 = vld [vmem:[%s438_s1 + $0x40] sm:$0xff]  ;;  %v250_v3 = vld [vmem:[%s439_s0 + $0x8] sm:$0xf0] }
   0x2   :  { %v300_v2 = vld [vmem:[%s439_s0 + $0x4] sm:$0xf]  ;;  %169 = vmatpush.bf16.msra.mxu1 %v311_v0  ;;  %316 = vmatpush.bf16.msra.mxu3 %v311_v0  ;;  %v310_v4 = vld [vmem:[%s438_s1 + $0x30] sm:$0xff]  ;;  %v309_v8 = vld [vmem:[%s438_s1 + $0x28] sm:$0xff] }
   0x3   :  { %v315_v5 = vld [vmem:[%s440_s3] sm:$0xff]  ;;  %195 = vmatpush.bf16.msra.mxu2 %v312_v1  ;;  %v253_v6 = vor.u32 %v300_v2, %v250_v3  ;;  %v307_v10 = vld [vmem:[%s438_s1 + $0x18] sm:$0xff]  ;;  %v302_v11 = vld [vmem:[%s439_s0 + $0x14] sm:$0xf] }
   0x4   :  { %v313_v7 = vld [vmem:[%s441_s2] sm:$0xff]  ;;  %79 = vmatpush.bf16.msra.mxu0 %v315_v5  ;;  %v258_v12 = vld [vmem:[%s439_s0 + $0x18] sm:$0xf0]  ;;  %v306_v13 = vld [vmem:[%s438_s1 + $0x10] sm:$0xff] }
   0x5   :  { %v308_v9 = vld [vmem:[%s438_s1 + $0x20] sm:$0xff]  ;;  %v261_v14 = vor.u32 %v302_v11, %v258_v12  ;;  %v314_v15 = vld [vmem:[%s441_s2 + $0x8] sm:$0xff]  ;;  %v256_v20 = vld [vmem:[%s439_s0 + $0x10] sm:$0xf] }
   0x6   :  { %170 = vmatpush.bf16.msra.mxu1 %v310_v4  ;;  %317 = vmatpush.bf16.msra.mxu3 %v310_v4  ;;  %v305_v16 = vld [vmem:[%s438_s1 + $0x8] sm:$0xff]  ;;  %v304_v17 = vld [vmem:[%s438_s1] sm:$0xff]  ;;  %v303_v21 = vld [vmem:[%s439_s0 + $0x14] sm:$0xf0] }
   0x7   :  { %298 = vmatmul.msk.bf16.vlgmr.msra.gmra.mxu2 %vm65_vm0, %v253_v6  ;;  %244 = vmatmul.msk.bf16.vlgmr.msra.gmra.mxu0 %vm65_vm0, %v313_v7  ;;  %v248_v18 = vld [vmem:[%s439_s0] sm:$0xf]  ;;  %v301_v19 = vld [vmem:[%s439_s0 + $0x4] sm:$0xf0]  ;;  %v257_v23 = vor.u32 %v303_v21, %v256_v20 }
   0x8   :  { %v249_v22 = vor.u32 %v301_v19, %v248_v18  ;;  %v324_v30 = vld [vmem:[%s442_s4] ss:$0 sm:$0xff] }
   0xa   :  { %171 = vmatpush.bf16.msra.mxu1 %v309_v8  ;;  %318 = vmatpush.bf16.msra.mxu3 %v309_v8 }
   0xe   :  { %172 = vmatpush.bf16.msra.mxu1 %v308_v9  ;;  %319 = vmatpush.bf16.msra.mxu3 %v308_v9 }
  0x12   :  { %173 = vmatpush.bf16.msra.mxu1 %v307_v10  ;;  %320 = vmatpush.bf16.msra.mxu3 %v307_v10 }
  0x16   :  { %174 = vmatpush.bf16.msra.mxu1 %v306_v13  ;;  %321 = vmatpush.bf16.msra.mxu3 %v306_v13 }
  0x17   :  { %299 = vmatmul.msk.bf16.gmra.mxu2 %vm65_vm0, %v261_v14  ;;  %245 = vmatmul.msk.bf16.gmra.mxu0 %vm65_vm0, %v314_v15 }
  0x1a   :  { %175 = vmatpush.bf16.msra.mxu1 %v305_v16  ;;  %322 = vmatpush.bf16.msra.mxu3 %v305_v16 }
  0x1e   :  { %176 = vmatpush.bf16.msra.mxu1 %v304_v17  ;;  %323 = vmatpush.bf16.msra.mxu3 %v304_v17 }
  0x21   :  { %177 = vmatmul.bf16.vlgmr.msra.gmra.mxu1 %v249_v22  ;;  %182 = vmatmul.bf16.vlgmr.msra.gmra.mxu3 %v257_v23 }
  0x84   :  { %v81_v24 = vpop.f32.mrf.mxu0 }
  0x8a   :  { %v197_v25 = vpop.f32.mrf.mxu2 }
  0x8c   :  { %v83_v26 = vpop.f32.mrf.mxu0 }
  0x92   :  { %v199_v27 = vpop.f32.mrf.mxu2 }
  0x94   :  { %v86_v32 = vpop.f32.mrf.mxu0 }
  0x9a   :  { %v202_v34 = vpop.f32.mrf.mxu2 }
  0x9c   :  { %v88_v46 = vpop.f32.mrf.mxu0 }
  0x9e   :  { %v178_v28 = vpop.f32.mrf.mxu1 }
  0x9f   :  { %v179_v29 = vadd.f32 %v178_v28, %v81_v24 }
  0xa1   :  { %v198_v31 = vadd.f32 %v197_v25, %v179_v29 }
  0xa2   :  { %v204_v51 = vpop.f32.mrf.mxu2 }
  0xa3   :  { %v211_v33 = vadd.f32 %v324_v30, %v198_v31 }
  0xa4   :  { %v183_v35 = vpop.f32.mrf.mxu3 }
  0xa5   :  { %v215_v36 = vmax.f32 %v211_v33, 0.0  ;;  %v184_v37 = vadd.f32 %v183_v35, %v86_v32 }
  0xa6   :  { %v180_v38 = vpop.f32.mrf.mxu1 }
  0xa7   :  { %v219_v39 = vpack.c.bf16 %v215_v36, %v215_v36  ;;  %v203_v40 = vadd.f32 %v202_v34, %v184_v37  ;;  %v181_v41 = vadd.f32 %v180_v38, %v83_v26 }
  0xa9   :  { %224 = vst.msk [vmem:[%s443_s5] sm:$0xf] %vm223_vm1, %v219_v39  ;;  %v213_v42 = vadd.f32 %v324_v30, %v203_v40  ;;  %v200_v43 = vadd.f32 %v199_v27, %v181_v41 }
  0xab   :  { %v217_v44 = vmax.f32 %v213_v42, 0.0  ;;  %v212_v45 = vadd.f32 %v324_v30, %v200_v43 }
  0xac   :  { %v185_v47 = vpop.f32.mrf.mxu3 }
  0xad   :  { %v221_v48 = vpack.c.bf16 %v217_v44, %v217_v44  ;;  %v216_v49 = vmax.f32 %v212_v45, 0.0  ;;  %v186_v50 = vadd.f32 %v185_v47, %v88_v46 }
  0xaf   :  { %226 = vst.msk [vmem:[%s443_s5 + $0x8] sm:$0xf] %vm223_vm1, %v221_v48  ;;  %v220_v52 = vpack.c.bf16 %v216_v49, %v216_v49  ;;  %v205_v53 = vadd.f32 %v204_v51, %v186_v50 }
  0xb1   :  { %225 = vst.msk [vmem:[%s443_s5 + $0x4] sm:$0xf] %vm223_vm1, %v220_v52  ;;  %v214_v54 = vadd.f32 %v324_v30, %v205_v53 }
  0xb3   :  { %v218_v55 = vmax.f32 %v214_v54, 0.0 }
  0xb5   :  { %v222_v56 = vpack.c.bf16 %v218_v55, %v218_v55 }
  0xb7   :  { %227 = vst.msk [vmem:[%s443_s5 + $0xc] sm:$0xf] %vm223_vm1, %v222_v56 }

// kernel: _lambda_.55
= control target key start
LH: loop header
LB: loop body
LE: loop exit
PB: predicated region body
PF: predicated region fallthrough
CT: control target
= control target key end

     0   :  { %vm98_vm0 = vcmask 130048   ;;  %vm130_vm1 = vcmask 257024   ;;  %s239_s1 = inlined_call_operand.vmem [shape: bf16[144,32], index: 1, kind: input, shape index: {}]   ;;  %s240_s0 = inlined_call_operand.vmem [shape: bf16[8,144], index: 0, kind: input, shape index: {}]   ;;  %s241_s2 = inlined_call_operand.vmem [shape: f32[1,32], index: 2, kind: input, shape index: {}]   ;;  %s242_s3 = inlined_call_operand.vmem [shape: bf16[8,32], index: 3, kind: output, shape index: {}]  }
   0x1   :  { %v180_v0 = vld [vmem:[%s239_s1 + $0x38] sm:$0xff]  ;;  %v179_v1 = vld [vmem:[%s239_s1 + $0x30] sm:$0xff]  ;;  %v181_v2 = vld [vmem:[%s239_s1 + $0x40] sm:$0xff] }
   0x2   :  { %102 = vmatpush.bf16.msra.mxu0 %v180_v0  ;;  %v15_v3 = vld [vmem:[%s240_s0] sm:$0xff]  ;;  %122 = vmatpush.bf16.msra.mxu1 %v181_v2  ;;  %v178_v6 = vld [vmem:[%s239_s1 + $0x28] sm:$0xff]  ;;  %v176_v8 = vld [vmem:[%s239_s1 + $0x18] sm:$0xff] }
   0x3   :  { %v40_v4 = vunpack.c.h.b16 %v15_v3  ;;  %v177_v7 = vld [vmem:[%s239_s1 + $0x20] sm:$0xff]  ;;  %v175_v9 = vld [vmem:[%s239_s1 + $0x10] sm:$0xff]  ;;  %v174_v10 = vld [vmem:[%s239_s1 + $0x8] sm:$0xff]  ;;  %v39_v11 = vunpack.c.l.b16 %v15_v3 }
   0x4   :  { %v173_v12 = vld [vmem:[%s239_s1] sm:$0xff] }
   0x5   :  { %v42_v5 = vpack.c.b16 %v40_v4, %v40_v4  ;;  %v41_v13 = vpack.c.b16 %v39_v11, %v39_v11  ;;  %v182_v16 = vld [vmem:[%s241_s2] ss:$0 sm:$0xff] }
   0x6   :  { %103 = vmatpush.bf16.msra.mxu0 %v179_v1 }
   0x7   :  { %172 = vmatmul.msk.bf16.vlgmr.msra.gmra.mxu1 %vm98_vm0, %v42_v5 }
   0xa   :  { %104 = vmatpush.bf16.msra.mxu0 %v178_v6 }
   0xe   :  { %105 = vmatpush.bf16.msra.mxu0 %v177_v7 }
  0x12   :  { %106 = vmatpush.bf16.msra.mxu0 %v176_v8 }
  0x16   :  { %107 = vmatpush.bf16.msra.mxu0 %v175_v9 }
  0x1a   :  { %108 = vmatpush.bf16.msra.mxu0 %v174_v10 }
  0x1e   :  { %109 = vmatpush.bf16.msra.mxu0 %v173_v12 }
  0x21   :  { %110 = vmatmul.bf16.vlgmr.msra.gmra.mxu0 %v41_v13 }
  0x84   :  { %v124_v14 = vpop.f32.mrf.mxu1 }
  0x8c   :  { %v126_v15 = vpop.f32.mrf.mxu1 }
  0x9e   :  { %v111_v17 = vpop.f32.mrf.mxu0 }
  0x9f   :  { %v112_v18 = vadd.f32 %v182_v16, %v111_v17 }
  0xa1   :  { %v125_v19 = vadd.f32 %v124_v14, %v112_v18 }
  0xa3   :  { %v128_v20 = vmax.f32 %v125_v19, 0.0 }
  0xa5   :  { %v129_v21 = vpack.c.bf16 %v128_v20, %v128_v20 }
  0xa6   :  { %v113_v22 = vpop.f32.mrf.mxu0 }
  0xa7   :  { %131 = vst.msk [vmem:[%s242_s3] sm:$0xf] %vm130_vm1, %v129_v21 }

// kernel: _lambda_.56
= control target key start
LH: loop header
LB: loop body
LE: loop exit
PB: predicated region body
PF: predicated region fallthrough
CT: control target
= control target key end

     0   :  { %vm68_vm0 = vcmask 130048   ;;  %vm203_vm1 = vcmask 261120   ;;  %vm253_vm2 = vcmask 257024   ;;  %s459_s1 = inlined_call_operand.vmem [shape: bf16[288,32], index: 1, kind: input, shape index: {}]   ;;  %s460_s3 = inlined_call_operand.vmem [shape: bf16[16,32], index: 3, kind: input, shape index: {}]   ;;  %s461_s0 = inlined_call_operand.vmem [shape: bf16[8,288], index: 0, kind: input, shape index: {}]   ;;  %s462_s2 = inlined_call_operand.vmem [shape: bf16[8,16], index: 2, kind: input, shape index: {}]   ;;  %s463_s4 = inlined_call_operand.vmem [shape: f32[1,32], index: 4, kind: input, shape index: {}]   ;;  %s464_s5 = inlined_call_operand.vmem [shape: bf16[8,32], index: 5, kind: output, shape index: {}]  }
   0x1   :  { %v344_v0 = vld [vmem:[%s459_s1 + $0x38] sm:$0xff]  ;;  %v343_v2 = vld [vmem:[%s459_s1 + $0x30] sm:$0xff]  ;;  %v354_v4 = vld [vmem:[%s459_s1 + $0x88] sm:$0xff] }
   0x2   :  { %v352_v1 = vld [vmem:[%s459_s1 + $0x78] sm:$0xff]  ;;  %207 = vmatpush.bf16.msra.mxu1 %v344_v0  ;;  %v351_v3 = vld [vmem:[%s459_s1 + $0x70] sm:$0xff]  ;;  %v355_v5 = vld [vmem:[%s460_s3] sm:$0xff]  ;;  %239 = vmatpush.bf16.msra.mxu3 %v354_v4 }
   0x3   :  { %220 = vmatpush.bf16.msra.mxu2 %v352_v1  ;;  %v353_v6 = vld [vmem:[%s459_s1 + $0x80] sm:$0xff]  ;;  %v22_v7 = vld [vmem:[%s461_s0 + $0x8] sm:$0xf]  ;;  %79 = vmatpush.bf16.msra.mxu0 %v355_v5  ;;  %v340_v15 = vld [vmem:[%s459_s1 + $0x18] sm:$0xff] }
   0x4   :  { %v342_v8 = vld [vmem:[%s459_s1 + $0x28] sm:$0xff]  ;;  %v89_v10 = vunpack.c.l.b16 %v22_v7  ;;  %v59_v12 = vld [vmem:[%s462_s2] sm:$0xf]  ;;  %v348_v16 = vld [vmem:[%s459_s1 + $0x58] sm:$0xff] }
   0x5   :  { %v350_v9 = vld [vmem:[%s459_s1 + $0x68] sm:$0xff]  ;;  %v341_v13 = vld [vmem:[%s459_s1 + $0x20] sm:$0xff]  ;;  %v339_v17 = vld [vmem:[%s459_s1 + $0x10] sm:$0xff] }
   0x6   :  { %208 = vmatpush.bf16.msra.mxu1 %v343_v2  ;;  %v92_v11 = vpack.c.b16 %v89_v10, %v89_v10  ;;  %240 = vmatpush.bf16.msra.mxu3 %v353_v6  ;;  %v349_v14 = vld [vmem:[%s459_s1 + $0x60] sm:$0xff]  ;;  %v347_v18 = vld [vmem:[%s459_s1 + $0x50] sm:$0xff]  ;;  %v338_v19 = vld [vmem:[%s459_s1 + $0x8] sm:$0xff] }
   0x7   :  { %221 = vmatpush.bf16.msra.mxu2 %v351_v3  ;;  %263 = vmatmul.msk.bf16.vlgmr.msra.gmra.mxu0 %vm68_vm0, %v59_v12  ;;  %v346_v20 = vld [vmem:[%s459_s1 + $0x48] sm:$0xff]  ;;  %v21_v21 = vld [vmem:[%s461_s0] sm:$0xff] }
   0x8   :  { %v87_v22 = vunpack.c.l.b16 %v21_v21  ;;  %v88_v23 = vunpack.c.h.b16 %v21_v21  ;;  %v337_v24 = vld [vmem:[%s459_s1] sm:$0xff] }
   0x9   :  { %336 = vmatmul.msk.bf16.vlgmr.msra.gmra.mxu3 %vm203_vm1, %v92_v11  ;;  %v345_v25 = vld [vmem:[%s459_s1 + $0x40] sm:$0xff] }
   0xa   :  { %209 = vmatpush.bf16.msra.mxu1 %v342_v8  ;;  %v90_v26 = vpack.c.b16 %v87_v22, %v87_v22  ;;  %v91_v27 = vpack.c.b16 %v88_v23, %v88_v23  ;;  %v356_v36 = vld [vmem:[%s463_s4] ss:$0 sm:$0xff] }
   0xb   :  { %222 = vmatpush.bf16.msra.mxu2 %v350_v9 }
   0xe   :  { %210 = vmatpush.bf16.msra.mxu1 %v341_v13 }
   0xf   :  { %223 = vmatpush.bf16.msra.mxu2 %v349_v14 }
  0x12   :  { %211 = vmatpush.bf16.msra.mxu1 %v340_v15 }
  0x13   :  { %224 = vmatpush.bf16.msra.mxu2 %v348_v16 }
  0x16   :  { %212 = vmatpush.bf16.msra.mxu1 %v339_v17 }
  0x17   :  { %225 = vmatpush.bf16.msra.mxu2 %v347_v18 }
  0x1a   :  { %213 = vmatpush.bf16.msra.mxu1 %v338_v19 }
  0x1b   :  { %226 = vmatpush.bf16.msra.mxu2 %v346_v20 }
  0x1e   :  { %214 = vmatpush.bf16.msra.mxu1 %v337_v24 }
  0x1f   :  { %227 = vmatpush.bf16.msra.mxu2 %v345_v25 }
  0x21   :  { %215 = vmatmul.bf16.vlgmr.msra.gmra.mxu1 %v90_v26 }
  0x22   :  { %228 = vmatmul.bf16.vlgmr.msra.gmra.mxu2 %v91_v27 }
  0x84   :  { %v81_v28 = vpop.f32.mrf.mxu0 }
  0x8c   :  { %v242_v29 = vpop.f32.mrf.mxu3  ;;  %v83_v30 = vpop.f32.mrf.mxu0 }
  0x94   :  { %v244_v31 = vpop.f32.mrf.mxu3 }
  0x9e   :  { %v216_v32 = vpop.f32.mrf.mxu1 }
  0x9f   :  { %v217_v33 = vadd.f32 %v216_v32, %v81_v28 }
  0xa5   :  { %v229_v34 = vpop.f32.mrf.mxu2 }
  0xa6   :  { %v230_v35 = vadd.f32 %v229_v34, %v217_v33  ;;  %v218_v37 = vpop.f32.mrf.mxu1 }
  0xa8   :  { %v243_v38 = vadd.f32 %v242_v29, %v230_v35 }
  0xaa   :  { %v250_v39 = vadd.f32 %v356_v36, %v243_v38 }
  0xac   :  { %v251_v40 = vmax.f32 %v250_v39, 0.0 }
  0xad   :  { %v231_v41 = vpop.f32.mrf.mxu2 }
  0xae   :  { %v252_v42 = vpack.c.bf16 %v251_v40, %v251_v40 }
  0xb0   :  { %254 = vst.msk [vmem:[%s464_s5] sm:$0xf] %vm253_vm2, %v252_v42 }

// kernel: _lambda_.61
= control target key start
LH: loop header
LB: loop body
LE: loop exit
PB: predicated region body
PF: predicated region fallthrough
CT: control target
= control target key end

     0   :  { %vm175_vm0 = vcmask 261120   ;;  %vm220_vm1 = vcmask 125952   ;;  %s404_s1 = inlined_call_operand.vmem [shape: bf16[288,16], index: 1, kind: input, shape index: {}]   ;;  %s405_s0 = inlined_call_operand.vmem [shape: bf16[8,288], index: 0, kind: input, shape index: {}]   ;;  %s406_s2 = inlined_call_operand.vmem [shape: f32[1,16], index: 2, kind: input, shape index: {}]   ;;  %s407_s3 = inlined_call_operand.vmem [shape: bf16[8,16], index: 3, kind: output, shape index: {}]  }
   0x1   :  { %v306_v0 = vld [vmem:[%s404_s1 + $0x38] sm:$0xff]  ;;  %v305_v2 = vld [vmem:[%s404_s1 + $0x30] sm:$0xff]  ;;  %v316_v4 = vld [vmem:[%s404_s1 + $0x88] sm:$0xff] }
   0x2   :  { %v314_v1 = vld [vmem:[%s404_s1 + $0x78] sm:$0xff]  ;;  %179 = vmatpush.bf16.msra.mxu0 %v306_v0  ;;  %v313_v3 = vld [vmem:[%s404_s1 + $0x70] sm:$0xff]  ;;  %211 = vmatpush.bf16.msra.mxu2 %v316_v4  ;;  %v315_v5 = vld [vmem:[%s404_s1 + $0x80] sm:$0xff] }
   0x3   :  { %192 = vmatpush.bf16.msra.mxu1 %v314_v1  ;;  %v16_v6 = vld [vmem:[%s405_s0 + $0x8] sm:$0xf]  ;;  %v303_v11 = vld [vmem:[%s404_s1 + $0x20] sm:$0xff]  ;;  %v302_v13 = vld [vmem:[%s404_s1 + $0x18] sm:$0xff] }
   0x4   :  { %v61_v7 = vunpack.c.l.b16 %v16_v6  ;;  %v304_v8 = vld [vmem:[%s404_s1 + $0x28] sm:$0xff]  ;;  %v311_v12 = vld [vmem:[%s404_s1 + $0x60] sm:$0xff]  ;;  %v310_v14 = vld [vmem:[%s404_s1 + $0x58] sm:$0xff] }
   0x5   :  { %v312_v9 = vld [vmem:[%s404_s1 + $0x68] sm:$0xff]  ;;  %v301_v15 = vld [vmem:[%s404_s1 + $0x10] sm:$0xff]  ;;  %v15_v19 = vld [vmem:[%s405_s0] sm:$0xff] }
   0x6   :  { %180 = vmatpush.bf16.msra.mxu0 %v305_v2  ;;  %v64_v10 = vpack.c.b16 %v61_v7, %v61_v7  ;;  %212 = vmatpush.bf16.msra.mxu2 %v315_v5  ;;  %v309_v16 = vld [vmem:[%s404_s1 + $0x50] sm:$0xff]  ;;  %v300_v17 = vld [vmem:[%s404_s1 + $0x8] sm:$0xff]  ;;  %v59_v20 = vunpack.c.l.b16 %v15_v19  ;;  %v60_v21 = vunpack.c.h.b16 %v15_v19  ;;  %v299_v22 = vld [vmem:[%s404_s1] sm:$0xff] }
   0x7   :  { %193 = vmatpush.bf16.msra.mxu1 %v313_v3  ;;  %v308_v18 = vld [vmem:[%s404_s1 + $0x48] sm:$0xff]  ;;  %v307_v23 = vld [vmem:[%s404_s1 + $0x40] sm:$0xff] }
   0x8   :  { %v62_v24 = vpack.c.b16 %v59_v20, %v59_v20  ;;  %v63_v25 = vpack.c.b16 %v60_v21, %v60_v21  ;;  %v317_v28 = vld [vmem:[%s406_s2] ss:$0 sm:$0xff] }
   0x9   :  { %298 = vmatmul.msk.bf16.vlgmr.msra.gmra.mxu2 %vm175_vm0, %v64_v10 }
   0xa   :  { %181 = vmatpush.bf16.msra.mxu0 %v304_v8 }
   0xb   :  { %194 = vmatpush.bf16.msra.mxu1 %v312_v9 }
   0xe   :  { %182 = vmatpush.bf16.msra.mxu0 %v303_v11 }
   0xf   :  { %195 = vmatpush.bf16.msra.mxu1 %v311_v12 }
  0x12   :  { %183 = vmatpush.bf16.msra.mxu0 %v302_v13 }
  0x13   :  { %196 = vmatpush.bf16.msra.mxu1 %v310_v14 }
  0x16   :  { %184 = vmatpush.bf16.msra.mxu0 %v301_v15 }
  0x17   :  { %197 = vmatpush.bf16.msra.mxu1 %v309_v16 }
  0x1a   :  { %185 = vmatpush.bf16.msra.mxu0 %v300_v17 }
  0x1b   :  { %198 = vmatpush.bf16.msra.mxu1 %v308_v18 }
  0x1e   :  { %186 = vmatpush.bf16.msra.mxu0 %v299_v22 }
  0x1f   :  { %199 = vmatpush.bf16.msra.mxu1 %v307_v23 }
  0x21   :  { %187 = vmatmul.bf16.vlgmr.msra.gmra.mxu0 %v62_v24 }
  0x22   :  { %200 = vmatmul.bf16.vlgmr.msra.gmra.mxu1 %v63_v25 }
  0x8c   :  { %v214_v26 = vpop.f32.mrf.mxu2 }
  0x94   :  { %v216_v27 = vpop.f32.mrf.mxu2 }
  0x9e   :  { %v188_v29 = vpop.f32.mrf.mxu0 }
  0x9f   :  { %v201_v30 = vpop.f32.mrf.mxu1  ;;  %v189_v31 = vadd.f32 %v317_v28, %v188_v29 }
  0xa1   :  { %v202_v32 = vadd.f32 %v201_v30, %v189_v31 }
  0xa3   :  { %v215_v33 = vadd.f32 %v214_v26, %v202_v32 }
  0xa5   :  { %v218_v34 = vmax.f32 %v215_v33, 0.0 }
  0xa6   :  { %v190_v35 = vpop.f32.mrf.mxu0 }
  0xa7   :  { %v203_v36 = vpop.f32.mrf.mxu1  ;;  %v219_v37 = vpack.c.bf16 %v218_v34, %v218_v34 }
  0xa9   :  { %221 = vst.msk [vmem:[%s407_s3] sm:$0xf] %vm220_vm1, %v219_v37 }

// kernel: _lambda_.58
= control target key start
LH: loop header
LB: loop body
LE: loop exit
PB: predicated region body
PF: predicated region fallthrough
CT: control target
= control target key end

     0   :  { %vm178_vm0 = vcmask 261120   ;;  %vm226_vm1 = vcmask 257024   ;;  %s418_s1 = inlined_call_operand.vmem [shape: bf16[288,32], index: 1, kind: input, shape index: {}]   ;;  %s419_s0 = inlined_call_operand.vmem [shape: bf16[8,288], index: 0, kind: input, shape index: {}]   ;;  %s420_s2 = inlined_call_operand.vmem [shape: f32[1,32], index: 2, kind: input, shape index: {}]   ;;  %s421_s3 = inlined_call_operand.vmem [shape: bf16[8,32], index: 3, kind: input, shape index: {}]   ;;  %s422_s4 = inlined_call_operand.vmem [shape: bf16[8,32], index: 4, kind: output, shape index: {}]  }
   0x1   :  { %v312_v0 = vld [vmem:[%s418_s1 + $0x38] sm:$0xff]  ;;  %v311_v2 = vld [vmem:[%s418_s1 + $0x30] sm:$0xff]  ;;  %v322_v4 = vld [vmem:[%s418_s1 + $0x88] sm:$0xff] }
   0x2   :  { %v320_v1 = vld [vmem:[%s418_s1 + $0x78] sm:$0xff]  ;;  %182 = vmatpush.bf16.msra.mxu0 %v312_v0  ;;  %v319_v3 = vld [vmem:[%s418_s1 + $0x70] sm:$0xff]  ;;  %214 = vmatpush.bf16.msra.mxu2 %v322_v4  ;;  %v321_v5 = vld [vmem:[%s418_s1 + $0x80] sm:$0xff] }
   0x3   :  { %195 = vmatpush.bf16.msra.mxu1 %v320_v1  ;;  %v19_v6 = vld [vmem:[%s419_s0 + $0x8] sm:$0xf]  ;;  %v309_v11 = vld [vmem:[%s418_s1 + $0x20] sm:$0xff]  ;;  %v308_v13 = vld [vmem:[%s418_s1 + $0x18] sm:$0xff] }
   0x4   :  { %v64_v7 = vunpack.c.l.b16 %v19_v6  ;;  %v310_v8 = vld [vmem:[%s418_s1 + $0x28] sm:$0xff]  ;;  %v317_v12 = vld [vmem:[%s418_s1 + $0x60] sm:$0xff]  ;;  %v316_v14 = vld [vmem:[%s418_s1 + $0x58] sm:$0xff] }
   0x5   :  { %v318_v9 = vld [vmem:[%s418_s1 + $0x68] sm:$0xff]  ;;  %v307_v15 = vld [vmem:[%s418_s1 + $0x10] sm:$0xff]  ;;  %v18_v19 = vld [vmem:[%s419_s0] sm:$0xff] }
   0x6   :  { %183 = vmatpush.bf16.msra.mxu0 %v311_v2  ;;  %v67_v10 = vpack.c.b16 %v64_v7, %v64_v7  ;;  %215 = vmatpush.bf16.msra.mxu2 %v321_v5  ;;  %v315_v16 = vld [vmem:[%s418_s1 + $0x50] sm:$0xff]  ;;  %v306_v17 = vld [vmem:[%s418_s1 + $0x8] sm:$0xff]  ;;  %v62_v20 = vunpack.c.l.b16 %v18_v19  ;;  %v63_v21 = vunpack.c.h.b16 %v18_v19  ;;  %v305_v22 = vld [vmem:[%s418_s1] sm:$0xff] }
   0x7   :  { %196 = vmatpush.bf16.msra.mxu1 %v319_v3  ;;  %v314_v18 = vld [vmem:[%s418_s1 + $0x48] sm:$0xff]  ;;  %v313_v23 = vld [vmem:[%s418_s1 + $0x40] sm:$0xff] }
   0x8   :  { %v65_v24 = vpack.c.b16 %v62_v20, %v62_v20  ;;  %v66_v25 = vpack.c.b16 %v63_v21, %v63_v21  ;;  %v323_v28 = vld [vmem:[%s420_s2] ss:$0 sm:$0xff] }
   0x9   :  { %304 = vmatmul.msk.bf16.vlgmr.msra.gmra.mxu2 %vm178_vm0, %v67_v10  ;;  %v221_v31 = vld [vmem:[%s421_s3] sm:$0xf] }
   0xa   :  { %184 = vmatpush.bf16.msra.mxu0 %v310_v8  ;;  %v222_v34 = vunpack.c.l.bf16 %v221_v31 }
   0xb   :  { %197 = vmatpush.bf16.msra.mxu1 %v318_v9 }
   0xe   :  { %185 = vmatpush.bf16.msra.mxu0 %v309_v11 }
   0xf   :  { %198 = vmatpush.bf16.msra.mxu1 %v317_v12 }
  0x12   :  { %186 = vmatpush.bf16.msra.mxu0 %v308_v13 }
  0x13   :  { %199 = vmatpush.bf16.msra.mxu1 %v316_v14 }
  0x16   :  { %187 = vmatpush.bf16.msra.mxu0 %v307_v15 }
  0x17   :  { %200 = vmatpush.bf16.msra.mxu1 %v315_v16 }
  0x1a   :  { %188 = vmatpush.bf16.msra.mxu0 %v306_v17 }
  0x1b   :  { %201 = vmatpush.bf16.msra.mxu1 %v314_v18 }
  0x1e   :  { %189 = vmatpush.bf16.msra.mxu0 %v305_v22 }
  0x1f   :  { %202 = vmatpush.bf16.msra.mxu1 %v313_v23 }
  0x21   :  { %190 = vmatmul.bf16.vlgmr.msra.gmra.mxu0 %v65_v24 }
  0x22   :  { %203 = vmatmul.bf16.vlgmr.msra.gmra.mxu1 %v66_v25 }
  0x8c   :  { %v217_v26 = vpop.f32.mrf.mxu2 }
  0x94   :  { %v219_v27 = vpop.f32.mrf.mxu2 }
  0x9e   :  { %v191_v29 = vpop.f32.mrf.mxu0 }
  0x9f   :  { %v204_v30 = vpop.f32.mrf.mxu1  ;;  %v192_v32 = vadd.f32 %v323_v28, %v191_v29 }
  0xa1   :  { %v205_v33 = vadd.f32 %v204_v30, %v192_v32 }
  0xa3   :  { %v218_v35 = vadd.f32 %v217_v26, %v205_v33 }
  0xa5   :  { %v223_v36 = vadd.f32 %v222_v34, %v218_v35 }
  0xa6   :  { %v193_v37 = vpop.f32.mrf.mxu0 }
  0xa7   :  { %v206_v38 = vpop.f32.mrf.mxu1  ;;  %v224_v39 = vmax.f32 %v223_v36, 0.0 }
  0xa9   :  { %v225_v40 = vpack.c.bf16 %v224_v39, %v224_v39 }
  0xab   :  { %227 = vst.msk [vmem:[%s422_s4] sm:$0xf] %vm226_vm1, %v225_v40 }

// kernel: _lambda_.57
= control target key start
LH: loop header
LB: loop body
LE: loop exit
PB: predicated region body
PF: predicated region fallthrough
CT: control target
= control target key end

     0   :  { %vm175_vm0 = vcmask 261120   ;;  %vm220_vm1 = vcmask 257024   ;;  %s404_s1 = inlined_call_operand.vmem [shape: bf16[288,32], index: 1, kind: input, shape index: {}]   ;;  %s405_s0 = inlined_call_operand.vmem [shape: bf16[8,288], index: 0, kind: input, shape index: {}]   ;;  %s406_s2 = inlined_call_operand.vmem [shape: f32[1,32], index: 2, kind: input, shape index: {}]   ;;  %s407_s3 = inlined_call_operand.vmem [shape: bf16[8,32], index: 3, kind: output, shape index: {}]  }
   0x1   :  { %v306_v0 = vld [vmem:[%s404_s1 + $0x38] sm:$0xff]  ;;  %v305_v2 = vld [vmem:[%s404_s1 + $0x30] sm:$0xff]  ;;  %v316_v4 = vld [vmem:[%s404_s1 + $0x88] sm:$0xff] }
   0x2   :  { %v314_v1 = vld [vmem:[%s404_s1 + $0x78] sm:$0xff]  ;;  %179 = vmatpush.bf16.msra.mxu0 %v306_v0  ;;  %v313_v3 = vld [vmem:[%s404_s1 + $0x70] sm:$0xff]  ;;  %211 = vmatpush.bf16.msra.mxu2 %v316_v4  ;;  %v315_v5 = vld [vmem:[%s404_s1 + $0x80] sm:$0xff] }
   0x3   :  { %192 = vmatpush.bf16.msra.mxu1 %v314_v1  ;;  %v16_v6 = vld [vmem:[%s405_s0 + $0x8] sm:$0xf]  ;;  %v303_v11 = vld [vmem:[%s404_s1 + $0x20] sm:$0xff]  ;;  %v302_v13 = vld [vmem:[%s404_s1 + $0x18] sm:$0xff] }
   0x4   :  { %v61_v7 = vunpack.c.l.b16 %v16_v6  ;;  %v304_v8 = vld [vmem:[%s404_s1 + $0x28] sm:$0xff]  ;;  %v311_v12 = vld [vmem:[%s404_s1 + $0x60] sm:$0xff]  ;;  %v310_v14 = vld [vmem:[%s404_s1 + $0x58] sm:$0xff] }
   0x5   :  { %v312_v9 = vld [vmem:[%s404_s1 + $0x68] sm:$0xff]  ;;  %v301_v15 = vld [vmem:[%s404_s1 + $0x10] sm:$0xff]  ;;  %v15_v19 = vld [vmem:[%s405_s0] sm:$0xff] }
   0x6   :  { %180 = vmatpush.bf16.msra.mxu0 %v305_v2  ;;  %v64_v10 = vpack.c.b16 %v61_v7, %v61_v7  ;;  %212 = vmatpush.bf16.msra.mxu2 %v315_v5  ;;  %v309_v16 = vld [vmem:[%s404_s1 + $0x50] sm:$0xff]  ;;  %v300_v17 = vld [vmem:[%s404_s1 + $0x8] sm:$0xff]  ;;  %v59_v20 = vunpack.c.l.b16 %v15_v19  ;;  %v60_v21 = vunpack.c.h.b16 %v15_v19  ;;  %v299_v22 = vld [vmem:[%s404_s1] sm:$0xff] }
   0x7   :  { %193 = vmatpush.bf16.msra.mxu1 %v313_v3  ;;  %v308_v18 = vld [vmem:[%s404_s1 + $0x48] sm:$0xff]  ;;  %v307_v23 = vld [vmem:[%s404_s1 + $0x40] sm:$0xff] }
   0x8   :  { %v62_v24 = vpack.c.b16 %v59_v20, %v59_v20  ;;  %v63_v25 = vpack.c.b16 %v60_v21, %v60_v21  ;;  %v317_v28 = vld [vmem:[%s406_s2] ss:$0 sm:$0xff] }
   0x9   :  { %298 = vmatmul.msk.bf16.vlgmr.msra.gmra.mxu2 %vm175_vm0, %v64_v10 }
   0xa   :  { %181 = vmatpush.bf16.msra.mxu0 %v304_v8 }
   0xb   :  { %194 = vmatpush.bf16.msra.mxu1 %v312_v9 }
   0xe   :  { %182 = vmatpush.bf16.msra.mxu0 %v303_v11 }
   0xf   :  { %195 = vmatpush.bf16.msra.mxu1 %v311_v12 }
  0x12   :  { %183 = vmatpush.bf16.msra.mxu0 %v302_v13 }
  0x13   :  { %196 = vmatpush.bf16.msra.mxu1 %v310_v14 }
  0x16   :  { %184 = vmatpush.bf16.msra.mxu0 %v301_v15 }
  0x17   :  { %197 = vmatpush.bf16.msra.mxu1 %v309_v16 }
  0x1a   :  { %185 = vmatpush.bf16.msra.mxu0 %v300_v17 }
  0x1b   :  { %198 = vmatpush.bf16.msra.mxu1 %v308_v18 }
  0x1e   :  { %186 = vmatpush.bf16.msra.mxu0 %v299_v22 }
  0x1f   :  { %199 = vmatpush.bf16.msra.mxu1 %v307_v23 }
  0x21   :  { %187 = vmatmul.bf16.vlgmr.msra.gmra.mxu0 %v62_v24 }
  0x22   :  { %200 = vmatmul.bf16.vlgmr.msra.gmra.mxu1 %v63_v25 }
  0x8c   :  { %v214_v26 = vpop.f32.mrf.mxu2 }
  0x94   :  { %v216_v27 = vpop.f32.mrf.mxu2 }
  0x9e   :  { %v188_v29 = vpop.f32.mrf.mxu0 }
  0x9f   :  { %v201_v30 = vpop.f32.mrf.mxu1  ;;  %v189_v31 = vadd.f32 %v317_v28, %v188_v29 }
  0xa1   :  { %v202_v32 = vadd.f32 %v201_v30, %v189_v31 }
  0xa3   :  { %v215_v33 = vadd.f32 %v214_v26, %v202_v32 }
  0xa5   :  { %v218_v34 = vmax.f32 %v215_v33, 0.0 }
  0xa6   :  { %v190_v35 = vpop.f32.mrf.mxu0 }
  0xa7   :  { %v203_v36 = vpop.f32.mrf.mxu1  ;;  %v219_v37 = vpack.c.bf16 %v218_v34, %v218_v34 }
  0xa9   :  { %221 = vst.msk [vmem:[%s407_s3] sm:$0xf] %vm220_vm1, %v219_v37 }

// kernel: _lambda_.54
= control target key start
LH: loop header
LB: loop body
LE: loop exit
PB: predicated region body
PF: predicated region fallthrough
CT: control target
= control target key end

     0   :  { %vm116_vm0 = vcmask 130048   ;;  %vm181_vm1 = vcmask 125952   ;;  %s378_s1 = inlined_call_operand.vmem [shape: bf16[144,16], index: 1, kind: input, shape index: {}]   ;;  %s379_s0 = inlined_call_operand.vmem [shape: bf16[32,144], index: 0, kind: input, shape index: {}]   ;;  %s380_s2 = inlined_call_operand.vmem [shape: f32[1,16], index: 2, kind: input, shape index: {}]   ;;  %s381_s3 = inlined_call_operand.vmem [shape: bf16[32,16], index: 3, kind: input, shape index: {}]   ;;  %s382_s4 = inlined_call_operand.vmem [shape: bf16[32,16], index: 4, kind: output, shape index: {}]  }
   0x1   :  { %v255_v0 = vld [vmem:[%s378_s1 + $0x38] sm:$0xff]  ;;  %v256_v1 = vld [vmem:[%s378_s1 + $0x40] sm:$0xff]  ;;  %v254_v3 = vld [vmem:[%s378_s1 + $0x30] sm:$0xff] }
   0x2   :  { %v244_v2 = vld [vmem:[%s379_s0 + $0x4] sm:$0xf]  ;;  %123 = vmatpush.bf16.msra.mxu0 %v255_v0  ;;  %266 = vmatpush.bf16.msra.mxu2 %v255_v0  ;;  %v194_v4 = vld [vmem:[%s379_s0 + $0x8] sm:$0xf0]  ;;  %v251_v8 = vld [vmem:[%s378_s1 + $0x18] sm:$0xff] }
   0x3   :  { %149 = vmatpush.bf16.msra.mxu1 %v256_v1  ;;  %v197_v5 = vor.u32 %v244_v2, %v194_v4  ;;  %v253_v6 = vld [vmem:[%s378_s1 + $0x28] sm:$0xff]  ;;  %v252_v7 = vld [vmem:[%s378_s1 + $0x20] sm:$0xff]  ;;  %v246_v9 = vld [vmem:[%s379_s0 + $0x14] sm:$0xf] }
   0x4   :  { %v202_v10 = vld [vmem:[%s379_s0 + $0x18] sm:$0xf0]  ;;  %v250_v11 = vld [vmem:[%s378_s1 + $0x10] sm:$0xff]  ;;  %v249_v13 = vld [vmem:[%s378_s1 + $0x8] sm:$0xff] }
   0x5   :  { %v205_v12 = vor.u32 %v246_v9, %v202_v10  ;;  %v248_v14 = vld [vmem:[%s378_s1] sm:$0xff]  ;;  %v245_v16 = vld [vmem:[%s379_s0 + $0x4] sm:$0xf0]  ;;  %v200_v17 = vld [vmem:[%s379_s0 + $0x10] sm:$0xf] }
   0x6   :  { %124 = vmatpush.bf16.msra.mxu0 %v254_v3  ;;  %267 = vmatpush.bf16.msra.mxu2 %v254_v3  ;;  %v192_v15 = vld [vmem:[%s379_s0] sm:$0xf]  ;;  %v247_v18 = vld [vmem:[%s379_s0 + $0x14] sm:$0xf0]  ;;  %v265_v29 = vld [vmem:[%s381_s3 + $0x8] sm:$0xff]  }
   0x7   :  { %242 = vmatmul.msk.bf16.vlgmr.msra.gmra.mxu1 %vm116_vm0, %v197_v5  ;;  %v193_v19 = vor.u32 %v245_v16, %v192_v15  ;;  %v201_v20 = vor.u32 %v247_v18, %v200_v17  ;;  %v274_v23 = vld [vmem:[%s380_s2] ss:$0 sm:$0xff]  ;;  %v263_v35 = vunpack.c.l.bf16 %v265_v29  ;;  %v264_v49 = vunpack.c.h.bf16 %v265_v29 }
   0x8   :  { %v258_v24 = vld [vmem:[%s381_s3] sm:$0xff]  }
   0x9   :  { %v259_v27 = vunpack.c.l.bf16 %v258_v24  ;;  %v260_v40 = vunpack.c.h.bf16 %v258_v24 }
   0xa   :  { %125 = vmatpush.bf16.msra.mxu0 %v253_v6  ;;  %268 = vmatpush.bf16.msra.mxu2 %v253_v6 }
   0xe   :  { %126 = vmatpush.bf16.msra.mxu0 %v252_v7  ;;  %269 = vmatpush.bf16.msra.mxu2 %v252_v7 }
  0x12   :  { %127 = vmatpush.bf16.msra.mxu0 %v251_v8  ;;  %270 = vmatpush.bf16.msra.mxu2 %v251_v8 }
  0x16   :  { %128 = vmatpush.bf16.msra.mxu0 %v250_v11  ;;  %271 = vmatpush.bf16.msra.mxu2 %v250_v11 }
  0x17   :  { %243 = vmatmul.msk.bf16.gmra.mxu1 %vm116_vm0, %v205_v12 }
  0x1a   :  { %129 = vmatpush.bf16.msra.mxu0 %v249_v13  ;;  %272 = vmatpush.bf16.msra.mxu2 %v249_v13 }
  0x1e   :  { %130 = vmatpush.bf16.msra.mxu0 %v248_v14  ;;  %273 = vmatpush.bf16.msra.mxu2 %v248_v14 }
  0x21   :  { %131 = vmatmul.bf16.vlgmr.msra.gmra.mxu0 %v193_v19  ;;  %136 = vmatmul.bf16.vlgmr.msra.gmra.mxu2 %v201_v20 }
  0x84   :  { %v151_v21 = vpop.f32.mrf.mxu1 }
  0x8c   :  { %v153_v22 = vpop.f32.mrf.mxu1 }
  0x94   :  { %v156_v31 = vpop.f32.mrf.mxu1 }
  0x9c   :  { %v158_v50 = vpop.f32.mrf.mxu1 }
  0x9e   :  { %v132_v25 = vpop.f32.mrf.mxu0 }
  0x9f   :  { %v133_v26 = vadd.f32 %v274_v23, %v132_v25 }
  0xa1   :  { %v152_v28 = vadd.f32 %v151_v21, %v133_v26 }
  0xa3   :  { %v169_v30 = vadd.f32 %v259_v27, %v152_v28 }
  0xa4   :  { %v137_v32 = vpop.f32.mrf.mxu2 }
  0xa5   :  { %v173_v33 = vmax.f32 %v169_v30, 0.0  ;;  %v138_v34 = vadd.f32 %v274_v23, %v137_v32 }
  0xa6   :  { %v134_v36 = vpop.f32.mrf.mxu0 }
  0xa7   :  { %v177_v37 = vpack.c.bf16 %v173_v33, %v173_v33  ;;  %v157_v38 = vadd.f32 %v156_v31, %v138_v34  ;;  %v135_v39 = vadd.f32 %v274_v23, %v134_v36 }
  0xa9   :  { %182 = vst.msk [vmem:[%s382_s4] sm:$0xf] %vm181_vm1, %v177_v37  ;;  %v171_v41 = vadd.f32 %v263_v35, %v157_v38  ;;  %v154_v42 = vadd.f32 %v153_v22, %v135_v39 }
  0xab   :  { %v175_v43 = vmax.f32 %v171_v41, 0.0  ;;  %v170_v44 = vadd.f32 %v260_v40, %v154_v42 }
  0xac   :  { %v139_v45 = vpop.f32.mrf.mxu2 }
  0xad   :  { %v179_v46 = vpack.c.bf16 %v175_v43, %v175_v43  ;;  %v174_v47 = vmax.f32 %v170_v44, 0.0  ;;  %v140_v48 = vadd.f32 %v274_v23, %v139_v45 }
  0xaf   :  { %184 = vst.msk [vmem:[%s382_s4 + $0x8] sm:$0xf] %vm181_vm1, %v179_v46  ;;  %v178_v51 = vpack.c.bf16 %v174_v47, %v174_v47  ;;  %v159_v52 = vadd.f32 %v158_v50, %v140_v48 }
  0xb1   :  { %183 = vst.msk [vmem:[%s382_s4 + $0x4] sm:$0xf] %vm181_vm1, %v178_v51  ;;  %v172_v53 = vadd.f32 %v264_v49, %v159_v52 }
  0xb3   :  { %v176_v54 = vmax.f32 %v172_v53, 0.0 }
  0xb5   :  { %v180_v55 = vpack.c.bf16 %v176_v54, %v176_v54 }
  0xb7   :  { %185 = vst.msk [vmem:[%s382_s4 + $0xc] sm:$0xf] %vm181_vm1, %v180_v55 }

// kernel: _lambda_.63
= control target key start
LH: loop header
LB: loop body
LE: loop exit
PB: predicated region body
PF: predicated region fallthrough
CT: control target
= control target key end

     0   :  { %vm23_vm0 = vcmask 1040384   ;;  %vm25_vm1 = vcmask 1041409   ;;  %vm28_vm2 = vcmask 1042434   ;;  %vm31_vm3 = vcmask 1043459   ;;  %s101_s0 = inlined_call_operand.vmem [shape: bf16[4,2,64], index: 0, kind: input, shape index: {}]   ;;  %s102_s1 = inlined_call_operand.vmem [shape: bf16[4,64], index: 1, kind: input, shape index: {}]   ;;  %s103_s2 = inlined_call_operand.vmem [shape: bf16[4,2,64], index: 2, kind: output, shape index: {}]  }
   0x1   :  { %v11_v0 = vld [vmem:[%s101_s0] sm:$0x1]  ;;  %v12_v3 = vld [vmem:[%s101_s0 + $0x1] sm:$0x1]  ;;  %v13_v4 = vld [vmem:[%s101_s0 + $0x2] sm:$0x1] }
   0x2   :  { %v19_v1 = vld [vmem:[%s102_s1] sm:$0x3]  ;;  %v14_v5 = vld [vmem:[%s101_s0 + $0x3] sm:$0x1]  ;;  %v15_v7 = vunpack.c.l.bf16 %v11_v0  ;;  %v16_v8 = vunpack.c.l.bf16 %v12_v3  ;;  %v17_v9 = vunpack.c.l.bf16 %v13_v4  ;;  %vm50_vm4 = vcmask 516096  }
   0x3   :  { %v20_v2 = vunpack.c.l.bf16 %v19_v1  ;;  %v18_v10 = vunpack.c.l.bf16 %v14_v5 }
   0x5   :  { %v22_v6 = vrot.slane %v20_v2, 3 }
   0x7   :  { %v24_v11 = vsel %vm23_vm0, %v20_v2, %v22_v6  ;;  %v26_v12 = vsel %vm25_vm1, %v20_v2, %v22_v6  ;;  %v29_v13 = vsel %vm28_vm2, %v20_v2, %v22_v6  ;;  %v32_v14 = vsel %vm31_vm3, %v20_v2, %v22_v6 }
   0x8   :  { %v34_v15 = vperm.slane %v24_v11, 0  ;;  %v27_v16 = vrot.slane %v26_v12, 1  ;;  %v30_v17 = vrot.slane %v29_v13, 2  ;;  %v33_v18 = vrot.slane %v32_v14, 3 }
   0xa   :  { %v42_v19 = vadd.f32 %v34_v15, %v15_v7  ;;  %v35_v20 = vperm.slane %v27_v16, 0  ;;  %v36_v21 = vperm.slane %v30_v17, 0  ;;  %v37_v22 = vperm.slane %v33_v18, 0 }
   0xc   :  { %v46_v23 = vpack.c.bf16 %v42_v19, %v42_v19  ;;  %v43_v24 = vadd.f32 %v35_v20, %v16_v8  ;;  %v44_v25 = vadd.f32 %v36_v21, %v17_v9  ;;  %v45_v26 = vadd.f32 %v37_v22, %v18_v10 }
   0xe   :  { %51 = vst.msk [vmem:[%s103_s2] sm:$0x1] %vm50_vm4, %v46_v23  ;;  %v47_v27 = vpack.c.bf16 %v43_v24, %v43_v24  ;;  %v48_v28 = vpack.c.bf16 %v44_v25, %v44_v25  ;;  %v49_v29 = vpack.c.bf16 %v45_v26, %v45_v26 }
  0x10   :  { %52 = vst.msk [vmem:[%s103_s2 + $0x1] sm:$0x1] %vm50_vm4, %v47_v27 }
  0x11   :  { %53 = vst.msk [vmem:[%s103_s2 + $0x2] sm:$0x1] %vm50_vm4, %v48_v28 }
  0x12   :  { %54 = vst.msk [vmem:[%s103_s2 + $0x3] sm:$0x1] %vm50_vm4, %v49_v29 }

// kernel: _lambda_.62
= control target key start
LH: loop header
LB: loop body
LE: loop exit
PB: predicated region body
PF: predicated region fallthrough
CT: control target
= control target key end

     0   :  { %vm134_vm0 = vcmask 130048   ;;  %vm57_vm1 = vcmask 261120   ;;  %vm171_vm2 = vcmask 125952   ;;  %s310_s1 = inlined_call_operand.vmem [shape: bf16[144,16], index: 1, kind: input, shape index: {}]   ;;  %s311_s3 = inlined_call_operand.vmem [shape: bf16[32,16], index: 3, kind: input, shape index: {}]   ;;  %s312_s0 = inlined_call_operand.vmem [shape: bf16[8,144], index: 0, kind: input, shape index: {}]   ;;  %s313_s2 = inlined_call_operand.vmem [shape: bf16[8,32], index: 2, kind: input, shape index: {}]   ;;  %s314_s4 = inlined_call_operand.vmem [shape: f32[1,16], index: 4, kind: input, shape index: {}]   ;;  %s315_s5 = inlined_call_operand.vmem [shape: bf16[8,16], index: 5, kind: output, shape index: {}]  }
   0x1   :  { %v230_v0 = vld [vmem:[%s310_s1 + $0x38] sm:$0xff]  ;;  %v233_v1 = vld [vmem:[%s311_s3 + $0x8] sm:$0xff]  ;;  %v229_v2 = vld [vmem:[%s310_s1 + $0x30] sm:$0xff] }
   0x2   :  { %138 = vmatpush.bf16.msra.mxu1 %v230_v0  ;;  %v231_v3 = vld [vmem:[%s310_s1 + $0x40] sm:$0xff]  ;;  %67 = vmatpush.bf16.msra.mxu0 %v233_v1  ;;  %v228_v8 = vld [vmem:[%s310_s1 + $0x28] sm:$0xff]  ;;  %v226_v11 = vld [vmem:[%s310_s1 + $0x18] sm:$0xff] }
   0x3   :  { %v21_v4 = vld [vmem:[%s312_s0] sm:$0xff]  ;;  %158 = vmatpush.bf16.msra.mxu2 %v231_v3  ;;  %v225_v12 = vld [vmem:[%s310_s1 + $0x10] sm:$0xff]  ;;  %v224_v13 = vld [vmem:[%s310_s1 + $0x8] sm:$0xff] }
   0x4   :  { %v76_v5 = vunpack.c.h.b16 %v21_v4  ;;  %v232_v6 = vld [vmem:[%s311_s3] sm:$0xff]  ;;  %v75_v14 = vunpack.c.l.b16 %v21_v4 }
   0x5   :  { %v40_v9 = vld [vmem:[%s313_s2] sm:$0xf] }
   0x6   :  { %v78_v7 = vpack.c.b16 %v76_v5, %v76_v5  ;;  %139 = vmatpush.bf16.msra.mxu1 %v229_v2  ;;  %68 = vmatpush.bf16.msra.mxu0 %v232_v6  ;;  %v227_v10 = vld [vmem:[%s310_s1 + $0x20] sm:$0xff]  ;;  %v77_v16 = vpack.c.b16 %v75_v14, %v75_v14 }
   0x7   :  { %v223_v15 = vld [vmem:[%s310_s1] sm:$0xff] }
   0x8   :  { %222 = vmatmul.msk.bf16.vlgmr.msra.gmra.mxu2 %vm134_vm0, %v78_v7  ;;  %v234_v23 = vld [vmem:[%s314_s4] ss:$0 sm:$0xff] }
   0x9   :  { %185 = vmatmul.msk.bf16.vlgmr.msra.gmra.mxu0 %vm57_vm1, %v40_v9 }
   0xa   :  { %140 = vmatpush.bf16.msra.mxu1 %v228_v8 }
   0xe   :  { %141 = vmatpush.bf16.msra.mxu1 %v227_v10 }
  0x12   :  { %142 = vmatpush.bf16.msra.mxu1 %v226_v11 }
  0x16   :  { %143 = vmatpush.bf16.msra.mxu1 %v225_v12 }
  0x1a   :  { %144 = vmatpush.bf16.msra.mxu1 %v224_v13 }
  0x1e   :  { %145 = vmatpush.bf16.msra.mxu1 %v223_v15 }
  0x21   :  { %146 = vmatmul.bf16.vlgmr.msra.gmra.mxu1 %v77_v16 }
  0x86   :  { %v70_v17 = vpop.f32.mrf.mxu0 }
  0x8b   :  { %v160_v18 = vpop.f32.mrf.mxu2 }
  0x8e   :  { %v72_v19 = vpop.f32.mrf.mxu0 }
  0x93   :  { %v162_v20 = vpop.f32.mrf.mxu2 }
  0x9e   :  { %v147_v21 = vpop.f32.mrf.mxu1 }
  0x9f   :  { %v148_v22 = vadd.f32 %v147_v21, %v70_v17 }
  0xa1   :  { %v161_v24 = vadd.f32 %v160_v18, %v148_v22 }
  0xa3   :  { %v168_v25 = vadd.f32 %v234_v23, %v161_v24 }
  0xa5   :  { %v169_v26 = vmax.f32 %v168_v25, 0.0 }
  0xa6   :  { %v149_v27 = vpop.f32.mrf.mxu1 }
  0xa7   :  { %v170_v28 = vpack.c.bf16 %v169_v26, %v169_v26 }
  0xa9   :  { %172 = vst.msk [vmem:[%s315_s5] sm:$0xf] %vm171_vm2, %v170_v28 }

// kernel: _lambda_.49
= control target key start
LH: loop header
LB: loop body
LE: loop exit
PB: predicated region body
PF: predicated region fallthrough
CT: control target
= control target key end

     0   :  { %s598_s12 = smov 0   ;;  %s689_s0 = inlined_call_operand.vmem [shape: bf16[128,144], index: 0, kind: input, shape index: {}]   ;;  %s690_s1 = inlined_call_operand.vmem [shape: bf16[144,16], index: 1, kind: input, shape index: {}]   ;;  %s691_s2 = inlined_call_operand.vmem [shape: f32[1,16], index: 2, kind: input, shape index: {}]   ;;  %s692_s3 = inlined_call_operand.vmem [shape: bf16[128,16], index: 3, kind: output, shape index: {}]  }
   0x1 LB: > { %s450_s13 = sadd.s32 4294967295, %s576_s12   ;;  %p454_p0 = scmp.ge.s32.totalorder %s576_s12, 1  ;;  %s576_s12 = sphi %s598_s12, %s13_s12  }
   0x2   : > { %p139_p1 = scmp.lt.s32.totalorder %s576_s12, 3 }
   0x4   : > { %p140_p2 = pnand %p454_p0, %p139_p1 }
   0x5   : > { %s455_s18 = sshll.u32 (!%p140_p2), %s450_s13, 3 }
   0x6   : > { %143 = sbr.rel (%p140_p2) target bundleno = 208 (0xd0), region = 32  ;;  %p165_p3 = scmp.lt.s32.totalorder (!%p140_p2), %s455_s18, 15 }
   0xb   : > { %v550_v0 = vld [vmem:[%s690_s1 + $0x38] sm:$0xff]  ;;  %v551_v1 = vld [vmem:[%s690_s1 + $0x40] sm:$0xff]  ;;  %v549_v2 = vld [vmem:[%s690_s1 + $0x30] sm:$0xff]  ;;  %s694_s18 = smov (!%p165_p3, %s455_s18), 15  ;;  %vm298_vm0 = vcmask 130048   ;;  %vm385_vm1 = vcmask 125952  }
   0xc   : > { %311 = vmatpush.bf16.msra.mxu0 %v550_v0  ;;  %552 = vmatpush.bf16.msra.mxu2 %v550_v0  ;;  %s534_s21 = sshll.u32 %s694_s18, 3  ;;  %v548_v3 = vld [vmem:[%s690_s1 + $0x28] sm:$0xff]  ;;  %v547_v8 = vld [vmem:[%s690_s1 + $0x20] sm:$0xff]  ;;  %v546_v11 = vld [vmem:[%s690_s1 + $0x18] sm:$0xff]  ;;  %s459_s13 = sshll.u32 %s694_s18, 2 }
   0xd   : > { %560 = vmatpush.bf16.msra.mxu3 %v551_v1  ;;  %347 = vmatpush.bf16.msra.mxu1 %v551_v1  ;;  %s624_s26 = scalar_lea.vmem %s689_s0, %s534_s21  ;;  %v545_v12 = vld [vmem:[%s690_s1 + $0x10] sm:$0xff]  ;;  %v544_v15 = vld [vmem:[%s690_s1 + $0x8] sm:$0xff]  ;;  %v543_v17 = vld [vmem:[%s690_s1] sm:$0xff]  ;;  %s668_s16 = scalar_lea.vmem %s692_s3, %s459_s13 }
   0xe   : > { %v537_v4 = vld [vmem:[%s624_s26 + $0x14] sm:$0xf]  ;;  %v472_v5 = vld [vmem:[%s624_s26 + $0x18] sm:$0xf0]  ;;  %v535_v7 = vld [vmem:[%s624_s26 + $0x4] sm:$0xf] }
   0xf   : > { %v475_v6 = vor.u32 %v537_v4, %v472_v5  ;;  %v464_v9 = vld [vmem:[%s624_s26 + $0x8] sm:$0xf0]  ;;  %v539_v13 = vld [vmem:[%s624_s26 + $0x24] sm:$0xf]  ;;  %v462_v18 = vld [vmem:[%s624_s26] sm:$0xf] }
  0x10   : > { %312 = vmatpush.bf16.msra.mxu0 %v549_v2  ;;  %553 = vmatpush.bf16.msra.mxu2 %v549_v2  ;;  %v467_v10 = vor.u32 %v535_v7, %v464_v9  ;;  %v480_v14 = vld [vmem:[%s624_s26 + $0x28] sm:$0xf0]  ;;  %v536_v19 = vld [vmem:[%s624_s26 + $0x4] sm:$0xf0]  ;;  %v478_v20 = vld [vmem:[%s624_s26 + $0x20] sm:$0xf] }
  0x11   : > { %529 = vmatmul.msk.bf16.vlgmr.msra.gmra.mxu3 %vm298_vm0, %v475_v6  ;;  %v483_v16 = vor.u32 %v539_v13, %v480_v14  ;;  %v540_v21 = vld [vmem:[%s624_s26 + $0x24] sm:$0xf0]  ;;  %v463_v22 = vor.u32 %v536_v19, %v462_v18  ;;  %v541_v24 = vld [vmem:[%s624_s26 + $0x34] sm:$0xf]  ;;  %v488_v25 = vld [vmem:[%s624_s26 + $0x38] sm:$0xf0] }
  0x12   : > { %528 = vmatmul.msk.bf16.vlgmr.msra.gmra.mxu1 %vm298_vm0, %v467_v10  ;;  %v479_v23 = vor.u32 %v540_v21, %v478_v20  ;;  %v491_v26 = vor.u32 %v541_v24, %v488_v25  ;;  %v470_v27 = vld [vmem:[%s624_s26 + $0x10] sm:$0xf]  ;;  %v538_v28 = vld [vmem:[%s624_s26 + $0x14] sm:$0xf0]  ;;  %v569_v35 = vld [vmem:[%s691_s2] ss:$0 sm:$0xff] }
  0x13   : > { %v486_v29 = vld [vmem:[%s624_s26 + $0x30] sm:$0xf]  ;;  %v542_v30 = vld [vmem:[%s624_s26 + $0x34] sm:$0xf0]  ;;  %v471_v31 = vor.u32 %v538_v28, %v470_v27 }
  0x14   : > { %313 = vmatpush.bf16.msra.mxu0 %v548_v3  ;;  %554 = vmatpush.bf16.msra.mxu2 %v548_v3  ;;  %v487_v32 = vor.u32 %v542_v30, %v486_v29 }
  0x18   : > { %314 = vmatpush.bf16.msra.mxu0 %v547_v8  ;;  %555 = vmatpush.bf16.msra.mxu2 %v547_v8 }
  0x1c   : > { %315 = vmatpush.bf16.msra.mxu0 %v546_v11  ;;  %556 = vmatpush.bf16.msra.mxu2 %v546_v11 }
  0x20   : > { %316 = vmatpush.bf16.msra.mxu0 %v545_v12  ;;  %557 = vmatpush.bf16.msra.mxu2 %v545_v12 }
  0x21   : > { %530 = vmatmul.msk.bf16.gmra.mxu3 %vm298_vm0, %v483_v16 }
  0x24   : > { %317 = vmatpush.bf16.msra.mxu0 %v544_v15  ;;  %558 = vmatpush.bf16.msra.mxu2 %v544_v15 }
  0x28   : > { %318 = vmatpush.bf16.msra.mxu0 %v543_v17  ;;  %559 = vmatpush.bf16.msra.mxu2 %v543_v17 }
  0x2b   : > { %319 = vmatmul.bf16.vlgmr.msra.gmra.mxu0 %v463_v22  ;;  %329 = vmatmul.bf16.vlgmr.msra.gmra.mxu2 %v479_v23 }
  0x31   : > { %531 = vmatmul.msk.bf16.gmra.mxu3 %vm298_vm0, %v491_v26 }
  0x3b   : > { %324 = vmatmul.bf16.gmra.mxu0 %v471_v31  ;;  %334 = vmatmul.bf16.gmra.mxu2 %v487_v32 }
  0x8f   : > { %v349_v36 = vpop.f32.mrf.mxu1 }
  0x94   : > { %v354_v33 = vpop.f32.mrf.mxu3 }
  0x97   : > { %v351_v46 = vpop.f32.mrf.mxu1 }
  0x9c   : > { %v356_v34 = vpop.f32.mrf.mxu3 }
  0xa4   : > { %v359_v39 = vpop.f32.mrf.mxu3 }
  0xa8   : > { %v320_v37 = vpop.f32.mrf.mxu0 }
  0xa9   : > { %v321_v38 = vadd.f32 %v569_v35, %v320_v37 }
  0xab   : > { %v350_v40 = vadd.f32 %v349_v36, %v321_v38 }
  0xac   : > { %v361_v51 = vpop.f32.mrf.mxu3 }
  0xad   : > { %v369_v41 = vmax.f32 %v350_v40, 0.0 }
  0xae   : > { %v330_v42 = vpop.f32.mrf.mxu2 }
  0xaf   : > { %v377_v43 = vpack.c.bf16 %v369_v41, %v369_v41  ;;  %v331_v44 = vadd.f32 %v569_v35, %v330_v42 }
  0xb0   : > { %v322_v45 = vpop.f32.mrf.mxu0 }
  0xb1   : > { %386 = vst.msk [vmem:[%s668_s16] sm:$0xf] %vm385_vm1, %v377_v43  ;;  %v360_v47 = vadd.f32 %v359_v39, %v331_v44  ;;  %v323_v48 = vadd.f32 %v569_v35, %v322_v45 }
  0xb3   : > { %v373_v49 = vmax.f32 %v360_v47, 0.0  ;;  %v352_v50 = vadd.f32 %v351_v46, %v323_v48 }
  0xb4   : > { %v364_v0 = vpop.f32.mrf.mxu3 }
  0xb5   : > { %v381_v52 = vpack.c.bf16 %v373_v49, %v373_v49  ;;  %v370_v53 = vmax.f32 %v352_v50, 0.0 }
  0xb6   : > { %v332_v54 = vpop.f32.mrf.mxu2 }
  0xb7   : > { %390 = vst.msk [vmem:[%s668_s16 + $0x10] sm:$0xf] %vm385_vm1, %v381_v52  ;;  %v378_v55 = vpack.c.bf16 %v370_v53, %v370_v53  ;;  %v333_v56 = vadd.f32 %v569_v35, %v332_v54 }
  0xb8   : > { %v325_v57 = vpop.f32.mrf.mxu0 }
  0xb9   : > { %387 = vst.msk [vmem:[%s668_s16 + $0x4] sm:$0xf] %vm385_vm1, %v378_v55  ;;  %v362_v58 = vadd.f32 %v361_v51, %v333_v56  ;;  %v326_v59 = vadd.f32 %v569_v35, %v325_v57 }
  0xbb   : > { %v374_v60 = vmax.f32 %v362_v58, 0.0  ;;  %v355_v61 = vadd.f32 %v354_v33, %v326_v59 }
  0xbc   : > { %v366_v14 = vpop.f32.mrf.mxu3 }
  0xbd   : > { %v382_v62 = vpack.c.bf16 %v374_v60, %v374_v60  ;;  %v371_v63 = vmax.f32 %v355_v61, 0.0 }
  0xbe   : > { %v335_v1 = vpop.f32.mrf.mxu2 }
  0xbf   : > { %391 = vst.msk [vmem:[%s668_s16 + $0x14] sm:$0xf] %vm385_vm1, %v382_v62  ;;  %v379_v2 = vpack.c.bf16 %v371_v63, %v371_v63  ;;  %v336_v3 = vadd.f32 %v569_v35, %v335_v1 }
  0xc0   : > { %v327_v4 = vpop.f32.mrf.mxu0 }
  0xc1   : > { %388 = vst.msk [vmem:[%s668_s16 + $0x8] sm:$0xf] %vm385_vm1, %v379_v2  ;;  %v365_v5 = vadd.f32 %v364_v0, %v336_v3  ;;  %v328_v6 = vadd.f32 %v569_v35, %v327_v4 }
  0xc3   : > { %v375_v7 = vmax.f32 %v365_v5, 0.0  ;;  %v357_v8 = vadd.f32 %v356_v34, %v328_v6 }
  0xc5   : > { %v383_v9 = vpack.c.bf16 %v375_v7, %v375_v7  ;;  %v372_v10 = vmax.f32 %v357_v8, 0.0 }
  0xc6   : > { %v337_v11 = vpop.f32.mrf.mxu2 }
  0xc7   : > { %392 = vst.msk [vmem:[%s668_s16 + $0x18] sm:$0xf] %vm385_vm1, %v383_v9  ;;  %v380_v12 = vpack.c.bf16 %v372_v10, %v372_v10  ;;  %v338_v13 = vadd.f32 %v569_v35, %v337_v11 }
  0xc9   : > { %389 = vst.msk [vmem:[%s668_s16 + $0xc] sm:$0xf] %vm385_vm1, %v380_v12  ;;  %v367_v15 = vadd.f32 %v366_v14, %v338_v13 }
  0xcb   : > { %v376_v16 = vmax.f32 %v367_v15, 0.0 }
  0xcd   : > { %v384_v17 = vpack.c.bf16 %v376_v16, %v376_v16 }
  0xcf   : > { %393 = vst.msk [vmem:[%s668_s16 + $0x1c] sm:$0xf] %vm385_vm1, %v384_v17 }
  0xd0 PF: > { %s13_s12 = sadd.s32 1, %s576_s12  }
  0xd1   : > { %p10_p4 = scmp.ge.s32.totalorder %s13_s12, 4  }
  0xd3   :  { %12 = sbr.rel (!%p10_p4) target bundleno = 1 (0x1), region = 62 }

// kernel: _lambda_.66
= control target key start
LH: loop header
LB: loop body
LE: loop exit
PB: predicated region body
PF: predicated region fallthrough
CT: control target
= control target key end

     0   :  { %s147_s0 = inlined_call_operand.vmem [shape: bf16[8,2,128], index: 0, kind: input, shape index: {}]   ;;  %s148_s1 = inlined_call_operand.vmem [shape: bf16[8,128], index: 1, kind: input, shape index: {}]   ;;  %s149_s2 = inlined_call_operand.vmem [shape: bf16[8,2,128], index: 2, kind: output, shape index: {}]  }
   0x1   :  { %v11_v0 = vld [vmem:[%s147_s0] sm:$0x1]  ;;  %v12_v2 = vld [vmem:[%s147_s0 + $0x1] sm:$0x1]  ;;  %v13_v5 = vld [vmem:[%s147_s0 + $0x2] sm:$0x1] }
   0x2   :  { %v27_v1 = vld [vmem:[%s148_s1] sm:$0xf]  ;;  %v19_v3 = vunpack.c.l.bf16 %v11_v0  ;;  %v15_v7 = vld [vmem:[%s147_s0 + $0x4] sm:$0x1]  ;;  %v20_v8 = vunpack.c.l.bf16 %v12_v2  ;;  %v21_v9 = vunpack.c.l.bf16 %v13_v5  ;;  %v16_v12 = vld [vmem:[%s147_s0 + $0x5] sm:$0x1] }
   0x3   :  { %v28_v4 = vunpack.c.l.bf16 %v27_v1  ;;  %v14_v6 = vld [vmem:[%s147_s0 + $0x3] sm:$0x1]  ;;  %v23_v11 = vunpack.c.l.bf16 %v15_v7  ;;  %v17_v13 = vld [vmem:[%s147_s0 + $0x6] sm:$0x1]  ;;  %v18_v18 = vld [vmem:[%s147_s0 + $0x7] sm:$0x1]  ;;  %v24_v20 = vunpack.c.l.bf16 %v16_v12 }
   0x4   :  { %v22_v10 = vunpack.c.l.bf16 %v14_v6  ;;  %v25_v22 = vunpack.c.l.bf16 %v17_v13  ;;  %v26_v30 = vunpack.c.l.bf16 %v18_v18 }
   0x5   :  { %v37_v14 = vperm.slane %v28_v4, 0  ;;  %v30_v15 = vrot.slane %v28_v4, 1  ;;  %v31_v16 = vrot.slane %v28_v4, 2  ;;  %v32_v17 = vrot.slane %v28_v4, 3 }
   0x6   :  { %v33_v19 = vrot.slane %v28_v4, 4  ;;  %v34_v21 = vrot.slane %v28_v4, 5  ;;  %v35_v29 = vrot.slane %v28_v4, 6  ;;  %v36_v38 = vrot.slane %v28_v4, 7 }
   0x7   :  { %v53_v23 = vadd.f32 %v37_v14, %v19_v3  ;;  %v38_v24 = vperm.slane %v30_v15, 0  ;;  %v39_v25 = vperm.slane %v31_v16, 0  ;;  %v40_v26 = vperm.slane %v32_v17, 0 }
   0x8   :  { %v41_v27 = vperm.slane %v33_v19, 0  ;;  %v42_v28 = vperm.slane %v34_v21, 0  ;;  %v43_v37 = vperm.slane %v35_v29, 0  ;;  %v44_v44 = vperm.slane %v36_v38, 0 }
   0x9   :  { %v61_v31 = vpack.c.bf16 %v53_v23, %v53_v23  ;;  %v54_v32 = vadd.f32 %v38_v24, %v20_v8  ;;  %v55_v33 = vadd.f32 %v39_v25, %v21_v9  ;;  %v56_v34 = vadd.f32 %v40_v26, %v22_v10 }
   0xa   :  { %v57_v35 = vadd.f32 %v41_v27, %v23_v11  ;;  %v58_v36 = vadd.f32 %v42_v28, %v24_v20  ;;  %v59_v43 = vadd.f32 %v43_v37, %v25_v22  ;;  %v60_v47 = vadd.f32 %v44_v44, %v26_v30 }
   0xb   :  { %69 = vst [vmem:[%s149_s2] sm:$0x1] %v61_v31  ;;  %v62_v39 = vpack.c.bf16 %v54_v32, %v54_v32  ;;  %v63_v40 = vpack.c.bf16 %v55_v33, %v55_v33  ;;  %v64_v41 = vpack.c.bf16 %v56_v34, %v56_v34 }
   0xc   :  { %v65_v42 = vpack.c.bf16 %v57_v35, %v57_v35  ;;  %v66_v45 = vpack.c.bf16 %v58_v36, %v58_v36  ;;  %v67_v46 = vpack.c.bf16 %v59_v43, %v59_v43  ;;  %v68_v48 = vpack.c.bf16 %v60_v47, %v60_v47 }
   0xd   :  { %70 = vst [vmem:[%s149_s2 + $0x1] sm:$0x1] %v62_v39 }
   0xe   :  { %71 = vst [vmem:[%s149_s2 + $0x2] sm:$0x1] %v63_v40 }
   0xf   :  { %72 = vst [vmem:[%s149_s2 + $0x3] sm:$0x1] %v64_v41 }
  0x10   :  { %73 = vst [vmem:[%s149_s2 + $0x4] sm:$0x1] %v65_v42 }
  0x11   :  { %74 = vst [vmem:[%s149_s2 + $0x5] sm:$0x1] %v66_v45 }
  0x12   :  { %75 = vst [vmem:[%s149_s2 + $0x6] sm:$0x1] %v67_v46 }
  0x13   :  { %76 = vst [vmem:[%s149_s2 + $0x7] sm:$0x1] %v68_v48 }

// kernel: _lambda_.50
= control target key start
LH: loop header
LB: loop body
LE: loop exit
PB: predicated region body
PF: predicated region fallthrough
CT: control target
= control target key end

     0   :  { %s709_s15 = smov 0   ;;  %s822_s0 = inlined_call_operand.vmem [shape: bf16[128,144], index: 0, kind: input, shape index: {}]   ;;  %s823_s1 = inlined_call_operand.vmem [shape: bf16[144,16], index: 1, kind: input, shape index: {}]   ;;  %s824_s2 = inlined_call_operand.vmem [shape: f32[1,16], index: 2, kind: input, shape index: {}]   ;;  %s825_s3 = inlined_call_operand.vmem [shape: bf16[128,16], index: 3, kind: input, shape index: {}]   ;;  %s826_s4 = inlined_call_operand.vmem [shape: bf16[128,16], index: 4, kind: output, shape index: {}]  }
   0x1 LB: > { %s535_s16 = sadd.s32 4294967295, %s682_s15   ;;  %p539_p0 = scmp.ge.s32.totalorder %s682_s15, 1  ;;  %s682_s15 = sphi %s709_s15, %s14_s15  }
   0x2   : > { %p175_p1 = scmp.lt.s32.totalorder %s682_s15, 3 }
   0x4   : > { %p176_p2 = pnand %p539_p0, %p175_p1 }
   0x5   : > { %s540_s21 = sshll.u32 (!%p176_p2), %s535_s16, 3 }
   0x6   : > { %179 = sbr.rel (%p176_p2) target bundleno = 210 (0xd2), region = 36  ;;  %p208_p3 = scmp.lt.s32.totalorder (!%p176_p2), %s540_s21, 15 }
   0xb   : > { %v637_v0 = vld [vmem:[%s823_s1 + $0x38] sm:$0xff]  ;;  %v638_v1 = vld [vmem:[%s823_s1 + $0x40] sm:$0xff]  ;;  %v636_v2 = vld [vmem:[%s823_s1 + $0x30] sm:$0xff]  ;;  %s828_s21 = smov (!%p208_p3, %s540_s21), 15  ;;  %vm347_vm0 = vcmask 130048   ;;  %vm458_vm1 = vcmask 125952  }
   0xc   : > { %360 = vmatpush.bf16.msra.mxu0 %v637_v0  ;;  %658 = vmatpush.bf16.msra.mxu2 %v637_v0  ;;  %s621_s24 = sshll.u32 %s828_s21, 3  ;;  %v635_v3 = vld [vmem:[%s823_s1 + $0x28] sm:$0xff]  ;;  %v634_v8 = vld [vmem:[%s823_s1 + $0x20] sm:$0xff]  ;;  %v633_v11 = vld [vmem:[%s823_s1 + $0x18] sm:$0xff]  ;;  %s544_s14 = sshll.u32 %s828_s21, 2 }
   0xd   : > { %666 = vmatpush.bf16.msra.mxu3 %v638_v1  ;;  %396 = vmatpush.bf16.msra.mxu1 %v638_v1  ;;  %s735_s29 = scalar_lea.vmem %s822_s0, %s621_s24  ;;  %v632_v12 = vld [vmem:[%s823_s1 + $0x10] sm:$0xff]  ;;  %v631_v15 = vld [vmem:[%s823_s1 + $0x8] sm:$0xff]  ;;  %v630_v17 = vld [vmem:[%s823_s1] sm:$0xff]  ;;  %s778_s18 = scalar_lea.vmem %s825_s3, %s544_s14 }
   0xe   : > { %v624_v4 = vld [vmem:[%s735_s29 + $0x14] sm:$0xf]  ;;  %v559_v5 = vld [vmem:[%s735_s29 + $0x18] sm:$0xf0]  ;;  %v622_v7 = vld [vmem:[%s735_s29 + $0x4] sm:$0xf]  ;;  %s792_s23 = scalar_lea.vmem %s826_s4, %s544_s14 }
   0xf   : > { %v562_v6 = vor.u32 %v624_v4, %v559_v5  ;;  %v551_v9 = vld [vmem:[%s735_s29 + $0x8] sm:$0xf0]  ;;  %v626_v13 = vld [vmem:[%s735_s29 + $0x24] sm:$0xf]  ;;  %v549_v18 = vld [vmem:[%s735_s29] sm:$0xf] }
  0x10   : > { %361 = vmatpush.bf16.msra.mxu0 %v636_v2  ;;  %659 = vmatpush.bf16.msra.mxu2 %v636_v2  ;;  %v554_v10 = vor.u32 %v622_v7, %v551_v9  ;;  %v567_v14 = vld [vmem:[%s735_s29 + $0x28] sm:$0xf0]  ;;  %v623_v19 = vld [vmem:[%s735_s29 + $0x4] sm:$0xf0]  ;;  %v565_v20 = vld [vmem:[%s735_s29 + $0x20] sm:$0xf] }
  0x11   : > { %616 = vmatmul.msk.bf16.vlgmr.msra.gmra.mxu3 %vm347_vm0, %v562_v6  ;;  %v570_v16 = vor.u32 %v626_v13, %v567_v14  ;;  %v627_v21 = vld [vmem:[%s735_s29 + $0x24] sm:$0xf0]  ;;  %v550_v22 = vor.u32 %v623_v19, %v549_v18  ;;  %v628_v24 = vld [vmem:[%s735_s29 + $0x34] sm:$0xf]  ;;  %v575_v25 = vld [vmem:[%s735_s29 + $0x38] sm:$0xf0] }
  0x12   : > { %615 = vmatmul.msk.bf16.vlgmr.msra.gmra.mxu1 %vm347_vm0, %v554_v10  ;;  %v566_v23 = vor.u32 %v627_v21, %v565_v20  ;;  %v578_v26 = vor.u32 %v628_v24, %v575_v25  ;;  %v557_v27 = vld [vmem:[%s735_s29 + $0x10] sm:$0xf]  ;;  %v625_v28 = vld [vmem:[%s735_s29 + $0x14] sm:$0xf0]  ;;  %v783_v35 = vld [vmem:[%s824_s2] ss:$0 sm:$0xff] }
  0x13   : > { %v573_v29 = vld [vmem:[%s735_s29 + $0x30] sm:$0xf]  ;;  %v629_v30 = vld [vmem:[%s735_s29 + $0x34] sm:$0xf0]  ;;  %v558_v31 = vor.u32 %v625_v28, %v557_v27  ;;  %v640_v37 = vld [vmem:[%s778_s18] sm:$0xff]  }
  0x14   : > { %362 = vmatpush.bf16.msra.mxu0 %v635_v3  ;;  %660 = vmatpush.bf16.msra.mxu2 %v635_v3  ;;  %v574_v32 = vor.u32 %v629_v30, %v573_v29  ;;  %v641_v40 = vunpack.c.l.bf16 %v640_v37  ;;  %v656_v43 = vld [vmem:[%s778_s18 + $0x10] sm:$0xff]   ;;  %v642_v54 = vunpack.c.h.bf16 %v640_v37  ;;  %v655_v61 = vld [vmem:[%s778_s18 + $0x8] sm:$0xff]   ;;  %v657_v9 = vld [vmem:[%s778_s18 + $0x18] sm:$0xff]  }
  0x15   : > { %v649_v48 = vunpack.c.l.bf16 %v656_v43  ;;  %v650_v1 = vunpack.c.h.bf16 %v656_v43  ;;  %v645_v6 = vunpack.c.l.bf16 %v655_v61 }
  0x18   : > { %363 = vmatpush.bf16.msra.mxu0 %v634_v8  ;;  %661 = vmatpush.bf16.msra.mxu2 %v634_v8 }
  0x1c   : > { %364 = vmatpush.bf16.msra.mxu0 %v633_v11  ;;  %662 = vmatpush.bf16.msra.mxu2 %v633_v11 }
  0x20   : > { %365 = vmatpush.bf16.msra.mxu0 %v632_v12  ;;  %663 = vmatpush.bf16.msra.mxu2 %v632_v12 }
  0x21   : > { %617 = vmatmul.msk.bf16.gmra.mxu3 %vm347_vm0, %v570_v16 }
  0x24   : > { %366 = vmatpush.bf16.msra.mxu0 %v631_v15  ;;  %664 = vmatpush.bf16.msra.mxu2 %v631_v15 }
  0x28   : > { %367 = vmatpush.bf16.msra.mxu0 %v630_v17  ;;  %665 = vmatpush.bf16.msra.mxu2 %v630_v17  ;;  %v653_v17 = vunpack.c.l.bf16 %v657_v9 }
  0x2b   : > { %368 = vmatmul.bf16.vlgmr.msra.gmra.mxu0 %v550_v22  ;;  %378 = vmatmul.bf16.vlgmr.msra.gmra.mxu2 %v566_v23  ;;  %v646_v22 = vunpack.c.h.bf16 %v655_v61 }
  0x31   : > { %618 = vmatmul.msk.bf16.gmra.mxu3 %vm347_vm0, %v578_v26 }
  0x3b   : > { %373 = vmatmul.bf16.gmra.mxu0 %v558_v31  ;;  %383 = vmatmul.bf16.gmra.mxu2 %v574_v32  ;;  %v654_v31 = vunpack.c.h.bf16 %v657_v9 }
  0x8f   : > { %v398_v36 = vpop.f32.mrf.mxu1 }
  0x94   : > { %v403_v33 = vpop.f32.mrf.mxu3 }
  0x97   : > { %v400_v50 = vpop.f32.mrf.mxu1 }
  0x9c   : > { %v772_v34 = vpop.f32.mrf.mxu3 }
  0xa4   : > { %v408_v41 = vpop.f32.mrf.mxu3 }
  0xa8   : > { %v369_v38 = vpop.f32.mrf.mxu0 }
  0xa9   : > { %v370_v39 = vadd.f32 %v783_v35, %v369_v38 }
  0xab   : > { %v399_v42 = vadd.f32 %v398_v36, %v370_v39 }
  0xac   : > { %v410_v57 = vpop.f32.mrf.mxu3 }
  0xad   : > { %v434_v44 = vadd.f32 %v641_v40, %v399_v42 }
  0xae   : > { %v379_v45 = vpop.f32.mrf.mxu2 }
  0xaf   : > { %v442_v46 = vmax.f32 %v434_v44, 0.0  ;;  %v380_v47 = vadd.f32 %v783_v35, %v379_v45 }
  0xb0   : > { %v371_v49 = vpop.f32.mrf.mxu0 }
  0xb1   : > { %v450_v51 = vpack.c.bf16 %v442_v46, %v442_v46  ;;  %v409_v52 = vadd.f32 %v408_v41, %v380_v47  ;;  %v372_v53 = vadd.f32 %v783_v35, %v371_v49 }
  0xb3   : > { %459 = vst.msk [vmem:[%s792_s23] sm:$0xf] %vm458_vm1, %v450_v51  ;;  %v438_v55 = vadd.f32 %v649_v48, %v409_v52  ;;  %v401_v56 = vadd.f32 %v400_v50, %v372_v53 }
  0xb4   : > { %v413_v12 = vpop.f32.mrf.mxu3 }
  0xb5   : > { %v446_v58 = vmax.f32 %v438_v55, 0.0  ;;  %v435_v59 = vadd.f32 %v642_v54, %v401_v56 }
  0xb6   : > { %v381_v60 = vpop.f32.mrf.mxu2 }
  0xb7   : > { %v454_v62 = vpack.c.bf16 %v446_v58, %v446_v58  ;;  %v443_v63 = vmax.f32 %v435_v59, 0.0  ;;  %v382_v0 = vadd.f32 %v783_v35, %v381_v60 }
  0xb8   : > { %v374_v2 = vpop.f32.mrf.mxu0 }
  0xb9   : > { %463 = vst.msk [vmem:[%s792_s23 + $0x10] sm:$0xf] %vm458_vm1, %v454_v62  ;;  %v451_v3 = vpack.c.bf16 %v443_v63, %v443_v63  ;;  %v411_v4 = vadd.f32 %v410_v57, %v382_v0  ;;  %v375_v5 = vadd.f32 %v783_v35, %v374_v2 }
  0xbb   : > { %460 = vst.msk [vmem:[%s792_s23 + $0x4] sm:$0xf] %vm458_vm1, %v451_v3  ;;  %v439_v7 = vadd.f32 %v650_v1, %v411_v4  ;;  %v404_v8 = vadd.f32 %v403_v33, %v375_v5 }
  0xbc   : > { %v415_v32 = vpop.f32.mrf.mxu3 }
  0xbd   : > { %v447_v10 = vmax.f32 %v439_v7, 0.0  ;;  %v436_v11 = vadd.f32 %v645_v6, %v404_v8 }
  0xbe   : > { %v384_v13 = vpop.f32.mrf.mxu2 }
  0xbf   : > { %v455_v14 = vpack.c.bf16 %v447_v10, %v447_v10  ;;  %v444_v15 = vmax.f32 %v436_v11, 0.0  ;;  %v385_v16 = vadd.f32 %v783_v35, %v384_v13 }
  0xc0   : > { %v376_v18 = vpop.f32.mrf.mxu0 }
  0xc1   : > { %464 = vst.msk [vmem:[%s792_s23 + $0x14] sm:$0xf] %vm458_vm1, %v455_v14  ;;  %v452_v19 = vpack.c.bf16 %v444_v15, %v444_v15  ;;  %v414_v20 = vadd.f32 %v413_v12, %v385_v16  ;;  %v377_v21 = vadd.f32 %v783_v35, %v376_v18 }
  0xc3   : > { %461 = vst.msk [vmem:[%s792_s23 + $0x8] sm:$0xf] %vm458_vm1, %v452_v19  ;;  %v440_v23 = vadd.f32 %v653_v17, %v414_v20  ;;  %v406_v24 = vadd.f32 %v772_v34, %v377_v21 }
  0xc5   : > { %v448_v25 = vmax.f32 %v440_v23, 0.0  ;;  %v437_v26 = vadd.f32 %v646_v22, %v406_v24 }
  0xc6   : > { %v386_v27 = vpop.f32.mrf.mxu2 }
  0xc7   : > { %v456_v28 = vpack.c.bf16 %v448_v25, %v448_v25  ;;  %v445_v29 = vmax.f32 %v437_v26, 0.0  ;;  %v387_v30 = vadd.f32 %v783_v35, %v386_v27 }
  0xc9   : > { %465 = vst.msk [vmem:[%s792_s23 + $0x18] sm:$0xf] %vm458_vm1, %v456_v28  ;;  %v453_v33 = vpack.c.bf16 %v445_v29, %v445_v29  ;;  %v416_v36 = vadd.f32 %v415_v32, %v387_v30 }
  0xcb   : > { %462 = vst.msk [vmem:[%s792_s23 + $0xc] sm:$0xf] %vm458_vm1, %v453_v33  ;;  %v441_v37 = vadd.f32 %v654_v31, %v416_v36 }
  0xcd   : > { %v449_v38 = vmax.f32 %v441_v37, 0.0 }
  0xcf   : > { %v457_v39 = vpack.c.bf16 %v449_v38, %v449_v38 }
  0xd1   : > { %466 = vst.msk [vmem:[%s792_s23 + $0x1c] sm:$0xf] %vm458_vm1, %v457_v39 }
  0xd2 PF: > { %s14_s15 = sadd.s32 1, %s682_s15  }
  0xd3   : > { %p11_p4 = scmp.ge.s32.totalorder %s14_s15, 4  }
  0xd5   :  { %13 = sbr.rel (!%p11_p4) target bundleno = 1 (0x1), region = 69 }

// kernel: _lambda_.68
= control target key start
LH: loop header
LB: loop body
LE: loop exit
PB: predicated region body
PF: predicated region fallthrough
CT: control target
= control target key end

     0   :  { %s631_s18 = smov 0   ;;  %s686_s0 = inlined_call_operand.vmem [shape: bf16[128,16], index: 0, kind: input, shape index: {}]   ;;  %s687_s1 = inlined_call_operand.vmem [shape: bf16[16,16], index: 1, kind: input, shape index: {}]   ;;  %s688_s2 = inlined_call_operand.vmem [shape: bf16[128,16], index: 2, kind: input, shape index: {}]   ;;  %s689_s3 = inlined_call_operand.vmem [shape: bf16[16,16], index: 3, kind: input, shape index: {}]   ;;  %s690_s4 = inlined_call_operand.vmem [shape: f32[1,16], index: 4, kind: input, shape index: {}]   ;;  %s691_s5 = inlined_call_operand.vmem [shape: bf16[128,16], index: 5, kind: output, shape index: {}]  }
   0x1 LB: > { %s511_s19 = sadd.s32 4294967295, %s599_s18   ;;  %p515_p0 = scmp.ge.s32.totalorder %s599_s18, 1  ;;  %s599_s18 = sphi %s631_s18, %s15_s18  }
   0x2   : > { %p199_p1 = scmp.lt.s32.totalorder %s599_s18, 3 }
   0x4   : > { %p200_p2 = pnand %p515_p0, %p199_p1 }
   0x5   : > { %s516_s24 = sshll.u32 (!%p200_p2), %s511_s19, 3 }
   0x6   : > { %203 = sbr.rel (%p200_p2) target bundleno = 181 (0xb5), region = 40  ;;  %p233_p3 = scmp.lt.s32.totalorder (!%p200_p2), %s516_s24, 15 }
   0xb   : > { %v581_v0 = vld [vmem:[%s689_s3] sm:$0xff]  ;;  %s693_s24 = smov (!%p233_p3, %s516_s24), 15  ;;  %vm297_vm0 = vcmask 130048   ;;  %vm434_vm1 = vcmask 125952  }
   0xc   : > { %v576_v1 = vld [vmem:[%s687_s1] sm:$0xff]  ;;  %317 = vmatpush.bf16.msra.mxu0 %v581_v0  ;;  %582 = vmatpush.bf16.msra.mxu2 %v581_v0  ;;  %s517_s25 = sshll.u32 %s693_s24, 2 }
   0xd   : > { %384 = vmatpush.bf16.msra.mxu1 %v576_v1  ;;  %583 = vmatpush.bf16.msra.mxu3 %v576_v1  ;;  %s242_s28 = scalar_lea.vmem %s688_s2, %s517_s25  ;;  %s236_s6 = scalar_lea.vmem %s686_s0, %s517_s25  ;;  %v592_v11 = vld [vmem:[%s690_s4] ss:$0 sm:$0xff] }
   0xe   : > { %v577_v2 = vld [vmem:[%s242_s28] sm:$0xff]  ;;  %v579_v3 = vld [vmem:[%s242_s28 + $0x10] sm:$0xff]  ;;  %v578_v6 = vld [vmem:[%s242_s28 + $0x8] sm:$0xff]  ;;  %s665_s11 = scalar_lea.vmem %s691_s5, %s517_s25 }
   0xf   : > { %v572_v4 = vld [vmem:[%s236_s6] sm:$0xff]  ;;  %v574_v5 = vld [vmem:[%s236_s6 + $0x10] sm:$0xff]  ;;  %542 = vmatmul.msk.bf16.vlgmr.msra.gmra.mxu0 %vm297_vm0, %v577_v2  ;;  %544 = vmatmul.msk.bf16.vlgmr.msra.gmra.mxu2 %vm297_vm0, %v579_v3  ;;  %v580_v7 = vld [vmem:[%s242_s28 + $0x18] sm:$0xff] }
  0x10   : > { %566 = vmatmul.msk.bf16.vlgmr.msra.gmra.mxu1 %vm297_vm0, %v572_v4  ;;  %568 = vmatmul.msk.bf16.vlgmr.msra.gmra.mxu3 %vm297_vm0, %v574_v5  ;;  %v573_v8 = vld [vmem:[%s236_s6 + $0x8] sm:$0xff]  ;;  %v575_v9 = vld [vmem:[%s236_s6 + $0x18] sm:$0xff] }
  0x1f   : > { %543 = vmatmul.msk.bf16.gmra.mxu0 %vm297_vm0, %v578_v6  ;;  %545 = vmatmul.msk.bf16.gmra.mxu2 %vm297_vm0, %v580_v7 }
  0x20   : > { %567 = vmatmul.msk.bf16.gmra.mxu1 %vm297_vm0, %v573_v8  ;;  %569 = vmatmul.msk.bf16.gmra.mxu3 %vm297_vm0, %v575_v9 }
  0x8c   : > { %v319_v10 = vpop.f32.mrf.mxu0 }
  0x8d   : > { %v386_v12 = vpop.f32.mrf.mxu1 }
  0x8e   : > { %v387_v13 = vadd.f32 %v386_v12, %v319_v10 }
  0x90   : > { %v410_v14 = vadd.f32 %v592_v11, %v387_v13 }
  0x92   : > { %v418_v15 = vmax.f32 %v410_v14, 0.0  ;;  %v329_v16 = vpop.f32.mrf.mxu2 }
  0x93   : > { %v396_v17 = vpop.f32.mrf.mxu3 }
  0x94   : > { %v426_v18 = vpack.c.bf16 %v418_v15, %v418_v15  ;;  %v397_v19 = vadd.f32 %v396_v17, %v329_v16  ;;  %v321_v20 = vpop.f32.mrf.mxu0 }
  0x95   : > { %v388_v21 = vpop.f32.mrf.mxu1 }
  0x96   : > { %435 = vst.msk [vmem:[%s665_s11] sm:$0xf] %vm434_vm1, %v426_v18  ;;  %v414_v22 = vadd.f32 %v592_v11, %v397_v19  ;;  %v389_v23 = vadd.f32 %v388_v21, %v321_v20 }
  0x98   : > { %v422_v24 = vmax.f32 %v414_v22, 0.0  ;;  %v411_v25 = vadd.f32 %v592_v11, %v389_v23 }
  0x9a   : > { %v430_v26 = vpack.c.bf16 %v422_v24, %v422_v24  ;;  %v419_v27 = vmax.f32 %v411_v25, 0.0  ;;  %v331_v28 = vpop.f32.mrf.mxu2 }
  0x9b   : > { %v398_v29 = vpop.f32.mrf.mxu3 }
  0x9c   : > { %439 = vst.msk [vmem:[%s665_s11 + $0x10] sm:$0xf] %vm434_vm1, %v430_v26  ;;  %v427_v30 = vpack.c.bf16 %v419_v27, %v419_v27  ;;  %v399_v31 = vadd.f32 %v398_v29, %v331_v28  ;;  %v324_v32 = vpop.f32.mrf.mxu0 }
  0x9d   : > { %v391_v33 = vpop.f32.mrf.mxu1 }
  0x9e   : > { %436 = vst.msk [vmem:[%s665_s11 + $0x4] sm:$0xf] %vm434_vm1, %v427_v30  ;;  %v415_v34 = vadd.f32 %v592_v11, %v399_v31  ;;  %v392_v35 = vadd.f32 %v391_v33, %v324_v32 }
  0xa0   : > { %v423_v36 = vmax.f32 %v415_v34, 0.0  ;;  %v412_v37 = vadd.f32 %v592_v11, %v392_v35 }
  0xa2   : > { %v431_v38 = vpack.c.bf16 %v423_v36, %v423_v36  ;;  %v420_v39 = vmax.f32 %v412_v37, 0.0  ;;  %v334_v40 = vpop.f32.mrf.mxu2 }
  0xa3   : > { %v401_v41 = vpop.f32.mrf.mxu3 }
  0xa4   : > { %440 = vst.msk [vmem:[%s665_s11 + $0x14] sm:$0xf] %vm434_vm1, %v431_v38  ;;  %v428_v42 = vpack.c.bf16 %v420_v39, %v420_v39  ;;  %v402_v43 = vadd.f32 %v401_v41, %v334_v40  ;;  %v326_v44 = vpop.f32.mrf.mxu0 }
  0xa5   : > { %v393_v45 = vpop.f32.mrf.mxu1 }
  0xa6   : > { %437 = vst.msk [vmem:[%s665_s11 + $0x8] sm:$0xf] %vm434_vm1, %v428_v42  ;;  %v416_v46 = vadd.f32 %v592_v11, %v402_v43  ;;  %v394_v47 = vadd.f32 %v393_v45, %v326_v44 }
  0xa8   : > { %v424_v48 = vmax.f32 %v416_v46, 0.0  ;;  %v413_v49 = vadd.f32 %v592_v11, %v394_v47 }
  0xaa   : > { %v432_v50 = vpack.c.bf16 %v424_v48, %v424_v48  ;;  %v421_v51 = vmax.f32 %v413_v49, 0.0  ;;  %v336_v52 = vpop.f32.mrf.mxu2 }
  0xab   : > { %v403_v53 = vpop.f32.mrf.mxu3 }
  0xac   : > { %441 = vst.msk [vmem:[%s665_s11 + $0x18] sm:$0xf] %vm434_vm1, %v432_v50  ;;  %v429_v54 = vpack.c.bf16 %v421_v51, %v421_v51  ;;  %v404_v55 = vadd.f32 %v403_v53, %v336_v52 }
  0xae   : > { %438 = vst.msk [vmem:[%s665_s11 + $0xc] sm:$0xf] %vm434_vm1, %v429_v54  ;;  %v417_v56 = vadd.f32 %v592_v11, %v404_v55 }
  0xb0   : > { %v425_v57 = vmax.f32 %v417_v56, 0.0 }
  0xb2   : > { %v433_v58 = vpack.c.bf16 %v425_v57, %v425_v57 }
  0xb4   : > { %442 = vst.msk [vmem:[%s665_s11 + $0x1c] sm:$0xf] %vm434_vm1, %v433_v58 }
  0xb5 PF: > { %s15_s18 = sadd.s32 1, %s599_s18  }
  0xb6   : > { %p12_p4 = scmp.ge.s32.totalorder %s15_s18, 4  }
  0xb8   :  { %14 = sbr.rel (!%p12_p4) target bundleno = 1 (0x1), region = 73 }

// kernel: _lambda_.91
= control target key start
LH: loop header
LB: loop body
LE: loop exit
PB: predicated region body
PF: predicated region fallthrough
CT: control target
= control target key end

     0   :  { %s747_s18 = smov 0   ;;  %s847_s0 = inlined_call_operand.vmem [shape: bf16[128,144], index: 0, kind: input, shape index: {}]   ;;  %s848_s1 = inlined_call_operand.vmem [shape: bf16[144,48], index: 1, kind: input, shape index: {}]   ;;  %s849_s2 = inlined_call_operand.vmem [shape: f32[1,48], index: 2, kind: input, shape index: {}]   ;;  %s850_s3 = inlined_call_operand.vmem [shape: bf16[48,9], index: 3, kind: input, shape index: {}]   ;;  %s851_s4 = inlined_call_operand.vmem [shape: f32[1,9], index: 4, kind: input, shape index: {}]   ;;  %s852_s5 = inlined_call_operand.vmem [shape: f32[128,9], index: 5, kind: output, shape index: {}]  }
   0x1 LB: > { %s570_s19 = sadd.s32 4294967295, %s715_s18   ;;  %p574_p0 = scmp.ge.s32.totalorder %s715_s18, 1  ;;  %s715_s18 = sphi %s747_s18, %s15_s18  }
   0x2   : > { %p189_p1 = scmp.lt.s32.totalorder %s715_s18, 3 }
   0x4   : > { %p190_p2 = pnand %p574_p0, %p189_p1 }
   0x5   : > { %s575_s22 = sshll.u32 (!%p190_p2), %s570_s19, 3 }
   0x6   : > { %193 = sbr.rel (%p190_p2) target bundleno = 376 (0x178), region = 40  ;;  %p219_p3 = scmp.lt.s32.totalorder (!%p190_p2), %s575_s22, 15 }
   0xb   : > { %v686_v0 = vld [vmem:[%s848_s1 + $0x38] sm:$0xff]  ;;  %v685_v1 = vld [vmem:[%s848_s1 + $0x30] sm:$0xff]  ;;  %v687_v2 = vld [vmem:[%s848_s1 + $0x40] sm:$0xff]  ;;  %s854_s22 = smov (!%p219_p3, %s575_s22), 15  ;;  %vm352_vm0 = vcmask 130048   ;;  %vm463_vm1 = vcmask 392192  }
   0xc   : > { %365 = vmatpush.bf16.msra.mxu0 %v686_v0  ;;  %691 = vmatpush.bf16.msra.mxu3 %v686_v0  ;;  %s670_s27 = sshll.u32 %s854_s22, 3  ;;  %v684_v3 = vld [vmem:[%s848_s1 + $0x28] sm:$0xff]  ;;  %v683_v7 = vld [vmem:[%s848_s1 + $0x20] sm:$0xff]  ;;  %v682_v8 = vld [vmem:[%s848_s1 + $0x18] sm:$0xff]  ;;  %vm505_vm2 = vcmask 72704  }
   0xd   : > { %401 = vmatpush.bf16.msra.mxu1 %v687_v2  ;;  %s775_s7 = scalar_lea.vmem %s847_s0, %s670_s27  ;;  %v681_v9 = vld [vmem:[%s848_s1 + $0x10] sm:$0xff]  ;;  %v680_v12 = vld [vmem:[%s848_s1 + $0x8] sm:$0xff]  ;;  %v679_v14 = vld [vmem:[%s848_s1] sm:$0xff]  ;;  %s229_s8 = scalar_lea.vmem %s852_s5, %s670_s27 }
   0xe   : > { %v671_v4 = vld [vmem:[%s775_s7 + $0x4] sm:$0xf]  ;;  %v584_v5 = vld [vmem:[%s775_s7 + $0x8] sm:$0xf0]  ;;  %v673_v10 = vld [vmem:[%s775_s7 + $0x14] sm:$0xf] }
   0xf   : > { %v587_v6 = vor.u32 %v671_v4, %v584_v5  ;;  %v592_v11 = vld [vmem:[%s775_s7 + $0x18] sm:$0xf0]  ;;  %v582_v15 = vld [vmem:[%s775_s7] sm:$0xf]  ;;  %v672_v16 = vld [vmem:[%s775_s7 + $0x4] sm:$0xf0] }
  0x10   : > { %366 = vmatpush.bf16.msra.mxu0 %v685_v1  ;;  %692 = vmatpush.bf16.msra.mxu3 %v685_v1  ;;  %v595_v13 = vor.u32 %v673_v10, %v592_v11  ;;  %v590_v17 = vld [vmem:[%s775_s7 + $0x10] sm:$0xf]  ;;  %v674_v18 = vld [vmem:[%s775_s7 + $0x14] sm:$0xf0]  ;;  %v583_v19 = vor.u32 %v672_v16, %v582_v15  ;;  %v675_v21 = vld [vmem:[%s775_s7 + $0x24] sm:$0xf] }
  0x11   : > { %648 = vmatmul.msk.bf16.vlgmr.msra.gmra.mxu1 %vm352_vm0, %v587_v6  ;;  %v591_v20 = vor.u32 %v674_v18, %v590_v17  ;;  %v600_v22 = vld [vmem:[%s775_s7 + $0x28] sm:$0xf0]  ;;  %v598_v24 = vld [vmem:[%s775_s7 + $0x20] sm:$0xf]  ;;  %v676_v25 = vld [vmem:[%s775_s7 + $0x24] sm:$0xf0] }
  0x12   : > { %v603_v23 = vor.u32 %v675_v21, %v600_v22  ;;  %v599_v26 = vor.u32 %v676_v25, %v598_v24  ;;  %v677_v27 = vld [vmem:[%s775_s7 + $0x34] sm:$0xf]  ;;  %v608_v28 = vld [vmem:[%s775_s7 + $0x38] sm:$0xf0]  ;;  %v606_v30 = vld [vmem:[%s775_s7 + $0x30] sm:$0xf] }
  0x13   : > { %v611_v29 = vor.u32 %v677_v27, %v608_v28  ;;  %v678_v31 = vld [vmem:[%s775_s7 + $0x34] sm:$0xf0]  ;;  %v690_v33 = vld [vmem:[%s850_s3 + $0x10] sm:$0xff]  ;;  %v689_v34 = vld [vmem:[%s850_s3 + $0x8] sm:$0xff] }
  0x14   : > { %367 = vmatpush.bf16.msra.mxu0 %v684_v3  ;;  %693 = vmatpush.bf16.msra.mxu3 %v684_v3  ;;  %v607_v32 = vor.u32 %v678_v31, %v606_v30  ;;  %v688_v35 = vld [vmem:[%s850_s3] sm:$0xff] }
  0x15   : > { %481 = vmatpush.bf16.msra.mxu2 %v690_v33  ;;  %v707_v39 = vld [vmem:[%s849_s2] ss:$0 sm:$0xff] }
  0x16   : > { %v708_v17 = vld [vmem:[%s851_s4] ss:$0 sm:$0xff] }
  0x18   : > { %368 = vmatpush.bf16.msra.mxu0 %v683_v7  ;;  %694 = vmatpush.bf16.msra.mxu3 %v683_v7 }
  0x19   : > { %482 = vmatpush.bf16.msra.mxu2 %v689_v34 }
  0x1c   : > { %369 = vmatpush.bf16.msra.mxu0 %v682_v8  ;;  %695 = vmatpush.bf16.msra.mxu3 %v682_v8 }
  0x1d   : > { %483 = vmatpush.bf16.msra.mxu2 %v688_v35 }
  0x20   : > { %370 = vmatpush.bf16.msra.mxu0 %v681_v9  ;;  %696 = vmatpush.bf16.msra.mxu3 %v681_v9 }
  0x21   : > { %649 = vmatmul.msk.bf16.gmra.mxu1 %vm352_vm0, %v595_v13 }
  0x24   : > { %371 = vmatpush.bf16.msra.mxu0 %v680_v12  ;;  %697 = vmatpush.bf16.msra.mxu3 %v680_v12 }
  0x28   : > { %372 = vmatpush.bf16.msra.mxu0 %v679_v14  ;;  %698 = vmatpush.bf16.msra.mxu3 %v679_v14 }
  0x2b   : > { %373 = vmatmul.bf16.vlgmr.msra.gmra.mxu0 %v583_v19  ;;  %378 = vmatmul.bf16.vlgmr.msra.gmra.mxu3 %v591_v20 }
  0x31   : > { %650 = vmatmul.msk.bf16.gmra.mxu1 %vm352_vm0, %v603_v23 }
  0x3b   : > { %383 = vmatmul.bf16.gmra.mxu3 %v599_v26 }
  0x41   : > { %651 = vmatmul.msk.bf16.gmra.mxu1 %vm352_vm0, %v611_v29 }
  0x4b   : > { %388 = vmatmul.bf16.gmra.mxu3 %v607_v32 }
  0x8e   : > { %v403_v36 = vpop.f32.mrf.mxu1 }
  0x96   : > { %v405_v37 = vpop.f32.mrf.mxu1 }
  0x9e   : > { %v408_v40 = vpop.f32.mrf.mxu1 }
  0xa6   : > { %v410_v47 = vpop.f32.mrf.mxu1 }
  0xa8   : > { %v374_v38 = vpop.f32.mrf.mxu0 }
  0xa9   : > { %v375_v41 = vadd.f32 %v707_v39, %v374_v38 }
  0xab   : > { %v404_v44 = vadd.f32 %v403_v36, %v375_v41 }
  0xad   : > { %v423_v48 = vmax.f32 %v404_v44, 0.0 }
  0xae   : > { %v379_v42 = vpop.f32.mrf.mxu3  ;;  %v413_v55 = vpop.f32.mrf.mxu1 }
  0xaf   : > { %v380_v52 = vadd.f32 %v707_v39, %v379_v42 }
  0xb0   : > { %v376_v43 = vpop.f32.mrf.mxu0 }
  0xb1   : > { %v377_v45 = vadd.f32 %v707_v39, %v376_v43  ;;  %v409_v56 = vadd.f32 %v408_v40, %v380_v52 }
  0xb3   : > { %v406_v46 = vadd.f32 %v405_v37, %v377_v45  ;;  %v425_v58 = vmax.f32 %v409_v56, 0.0 }
  0xb5   : > { %v424_v49 = vmax.f32 %v406_v46, 0.0 }
  0xb6   : > { %v381_v50 = vpop.f32.mrf.mxu3  ;;  %v415_v62 = vpop.f32.mrf.mxu1 }
  0xb7   : > { %v431_v51 = vpack.c.bf16 %v424_v49, %v423_v48  ;;  %v382_v53 = vadd.f32 %v707_v39, %v381_v50 }
  0xb9   : > { %664 = vmatmul.msk.bf16.vlgmr.msra.gmra.mxu2 %vm463_vm1, %v431_v51  ;;  %v411_v57 = vadd.f32 %v410_v47, %v382_v53 }
  0xbb   : > { %v426_v59 = vmax.f32 %v411_v57, 0.0 }
  0xbd   : > { %v432_v61 = vpack.c.bf16 %v426_v59, %v425_v58 }
  0xbe   : > { %v384_v54 = vpop.f32.mrf.mxu3  ;;  %v418_v4 = vpop.f32.mrf.mxu1 }
  0xbf   : > { %v385_v63 = vadd.f32 %v707_v39, %v384_v54 }
  0xc1   : > { %v414_v2 = vadd.f32 %v413_v55, %v385_v63 }
  0xc3   : > { %v427_v5 = vmax.f32 %v414_v2, 0.0 }
  0xc6   : > { %v386_v60 = vpop.f32.mrf.mxu3  ;;  %v420_v11 = vpop.f32.mrf.mxu1 }
  0xc7   : > { %v387_v0 = vadd.f32 %v707_v39, %v386_v60 }
  0xc9   : > { %665 = vmatmul.msk.bf16.gmra.mxu2 %vm463_vm1, %v432_v61  ;;  %v416_v3 = vadd.f32 %v415_v62, %v387_v0 }
  0xcb   : > { %v428_v6 = vmax.f32 %v416_v3, 0.0 }
  0xcd   : > { %v433_v7 = vpack.c.bf16 %v428_v6, %v427_v5 }
  0xce   : > { %v389_v1 = vpop.f32.mrf.mxu3 }
  0xcf   : > { %v390_v9 = vadd.f32 %v707_v39, %v389_v1 }
  0xd1   : > { %v419_v12 = vadd.f32 %v418_v4, %v390_v9 }
  0xd3   : > { %v429_v14 = vmax.f32 %v419_v12, 0.0 }
  0xd6   : > { %v391_v8 = vpop.f32.mrf.mxu3 }
  0xd7   : > { %v392_v10 = vadd.f32 %v707_v39, %v391_v8 }
  0xd9   : > { %666 = vmatmul.msk.bf16.gmra.mxu2 %vm463_vm1, %v433_v7  ;;  %v421_v13 = vadd.f32 %v420_v11, %v392_v10 }
  0xdb   : > { %v430_v15 = vmax.f32 %v421_v13, 0.0 }
  0xdd   : > { %v434_v16 = vpack.c.bf16 %v430_v15, %v429_v14 }
  0xe9   : > { %667 = vmatmul.msk.bf16.gmra.mxu2 %vm463_vm1, %v434_v16 }
 0x13c   : > { %v485_v18 = vpop.f32.mrf.mxu2 }
 0x13d   : > { %v486_v19 = vadd.f32 %v708_v17, %v485_v18 }
 0x13f   : > { %506 = vst.msk [vmem:[%s229_s8] sm:$0xff] %vm505_vm2, %v486_v19 }
 0x144   : > { %v487_v20 = vpop.f32.mrf.mxu2 }
 0x145   : > { %v488_v21 = vadd.f32 %v708_v17, %v487_v20 }
 0x147   : > { %507 = vst.msk [vmem:[%s229_s8 + $0x8] sm:$0xff] %vm505_vm2, %v488_v21 }
 0x14c   : > { %v490_v22 = vpop.f32.mrf.mxu2 }
 0x14d   : > { %v491_v23 = vadd.f32 %v708_v17, %v490_v22 }
 0x14f   : > { %508 = vst.msk [vmem:[%s229_s8 + $0x10] sm:$0xff] %vm505_vm2, %v491_v23 }
 0x154   : > { %v492_v24 = vpop.f32.mrf.mxu2 }
 0x155   : > { %v493_v25 = vadd.f32 %v708_v17, %v492_v24 }
 0x157   : > { %509 = vst.msk [vmem:[%s229_s8 + $0x18] sm:$0xff] %vm505_vm2, %v493_v25 }
 0x15c   : > { %v495_v26 = vpop.f32.mrf.mxu2 }
 0x15d   : > { %v496_v27 = vadd.f32 %v708_v17, %v495_v26 }
 0x15f   : > { %510 = vst.msk [vmem:[%s229_s8 + $0x20] sm:$0xff] %vm505_vm2, %v496_v27 }
 0x164   : > { %v497_v28 = vpop.f32.mrf.mxu2 }
 0x165   : > { %v498_v29 = vadd.f32 %v708_v17, %v497_v28 }
 0x167   : > { %511 = vst.msk [vmem:[%s229_s8 + $0x28] sm:$0xff] %vm505_vm2, %v498_v29 }
 0x16c   : > { %v500_v30 = vpop.f32.mrf.mxu2 }
 0x16d   : > { %v501_v31 = vadd.f32 %v708_v17, %v500_v30 }
 0x16f   : > { %512 = vst.msk [vmem:[%s229_s8 + $0x30] sm:$0xff] %vm505_vm2, %v501_v31 }
 0x174   : > { %v502_v32 = vpop.f32.mrf.mxu2 }
 0x175   : > { %v503_v33 = vadd.f32 %v708_v17, %v502_v32 }
 0x177   : > { %513 = vst.msk [vmem:[%s229_s8 + $0x38] sm:$0xff] %vm505_vm2, %v503_v33 }
 0x178 PF: > { %s15_s18 = sadd.s32 1, %s715_s18  }
 0x179   : > { %p12_p4 = scmp.ge.s32.totalorder %s15_s18, 4  }
 0x17b   :  { %14 = sbr.rel (!%p12_p4) target bundleno = 1 (0x1), region = 70 }

</bundles_post_ra>
